<compile_context>
chip_gen: v5e
topology: v5e:2x2
jax: 0.10.0
libtpu: 0.0.40
codegen_flags: <defaults>
</compile_context>

<pallas_src>
import functools

import jax
import jax.numpy as jnp
from jax.experimental import pallas as pl
from jax.experimental.pallas import tpu as pltpu


def _round_up(x, m):
    return ((x + m - 1) // m) * m


def _auto_row_tile(Ho, Wo, Cp, Hdp, Coutp, budget_bytes=24 * 1024 * 1024):
    """Pick an output-row tile so the per-step f32 working set stays well under
    VMEM (budget re-derived for v7x's 64 MiB physical / 48 MiB scoped limit)."""
    # live f32 bytes per output row inside the kernel:
    #   ~5 W-shifted input slices + acc + y (~7*Cp), hidden (Hdp), z + skip (2*Coutp)
    per_row = 4 * Wo * (7 * Cp + Hdp + 2 * Coutp)
    th = int(max(1, min(Ho, budget_bytes // max(per_row, 1))))
    while Ho % th:               # snap to a divisor of Ho so every tile is full
        th -= 1
    return th


# ---------------------------------------------------------------------------
# Pallas kernel: one (batch, row-tile) grid step.
# ---------------------------------------------------------------------------
def convnext_kernel(x_ref, *rest, true_c, row_tile, has_skip):
    if has_skip:
        (skip_ref, wdw_ref, bdw_ref, g_ref, be_ref,
         w1_ref, b1_ref, w2_ref, b2_ref, o_ref) = rest
    else:
        skip_ref = None
        (wdw_ref, bdw_ref, g_ref, be_ref,
         w1_ref, b1_ref, w2_ref, b2_ref, o_ref) = rest

    TH = row_tile
    Wp, Cp = x_ref.shape[2], x_ref.shape[3]
    Wo = Wp - 4

    # Row-tile offset into the replicate-padded input (+4 halo rows for the
    # 5x5 valid conv).  H is a leading (non-tiled) dim -> cheap dynamic slice.
    t = pl.program_id(1)
    row0 = pl.multiple_of(t * TH, TH)
    xt = x_ref[0, pl.ds(row0, TH + 4), :, :]            # (TH+4, Wp, Cp), f32

    # Depthwise 5x5 conv: 5 W-(sublane)-shifted slices computed once; the
    # i-offsets only index the cheap leading H dim.  Weight load hoisted.
    wdw = wdw_ref[...]                                   # (5, 5, Cp)
    xw = [xt[:, j:j + Wo, :] for j in range(5)]
    acc = jnp.zeros((TH, Wo, Cp), jnp.float32)
    for i in range(5):
        for j in range(5):
            acc = acc + xw[j][i:i + TH, :, :] * wdw[i, j]
    acc = acc + bdw_ref[0]

    # LayerNorm over the *true* channel count (padded lanes are exactly zero).
    inv_c = jnp.float32(1.0 / true_c)
    mean = jnp.sum(acc, axis=-1, keepdims=True) * inv_c
    ex2 = jnp.sum(acc * acc, axis=-1, keepdims=True) * inv_c
    var = ex2 - mean * mean
    y = (acc - mean) * jax.lax.rsqrt(var + 1e-6)
    y = y * g_ref[0] + be_ref[0]

    # Pointwise MLP on the MXU: bf16 operands, f32 accumulation.
    y2 = y.reshape(TH * Wo, Cp).astype(jnp.bfloat16)
    h = jnp.dot(y2, w1_ref[...], preferred_element_type=jnp.float32) + b1_ref[0]
    h = jnp.where(h > 0, h, 0.01 * h)                    # nn.LeakyReLU default
    z = jnp.dot(h.astype(jnp.bfloat16), w2_ref[...],
                preferred_element_type=jnp.float32) + b2_ref[0]
    z = z.reshape(TH, Wo, -1)

    if has_skip:
        z = z + skip_ref[0]

    o_ref[0] = z.astype(o_ref.dtype)


# ---------------------------------------------------------------------------
# Wrapper: layout plumbing + pallas_call
# ---------------------------------------------------------------------------
def convnext_forward(x_nchw, params, padding, padding_mode="replicate",
                     row_tile=None):
    assert padding_mode == "replicate"
    N, C, H, W = x_nchw.shape
    hidden = params["w1"].shape[1]
    Cout = params["w2"].shape[1]
    crop = padding - 2                      # == int((2*padding - 4) / 2)
    skip = (C == Cout)

    # Lane-dense channel padding (multiples of 128).
    LANE = 128
    Cp = _round_up(C, LANE)
    Hdp = _round_up(hidden, LANE)
    Coutp = _round_up(Cout, LANE)

    x_nhwc = jnp.transpose(x_nchw, (0, 2, 3, 1)).astype(jnp.float32)

    # Replicate ("edge") spatial padding for the depthwise conv.
    xp = jnp.pad(x_nhwc, ((0, 0), (padding, padding), (padding, padding), (0, 0)),
                 mode="edge")
    Hp, Wp = H + 2 * padding, W + 2 * padding
    Ho, Wo = Hp - 4, Wp - 4
    xp = jnp.pad(xp, ((0, 0), (0, 0), (0, 0), (0, Cp - C)))   # zero channel pad

    # Skip path — only materialized / DMA'd when there actually is a skip.
    if skip:
        if crop < 0:
            skip_arr = x_nhwc[:, -crop:crop, -crop:crop, :]
        elif crop > 0:
            skip_arr = jnp.pad(
                x_nhwc, ((0, 0), (crop, crop), (crop, crop), (0, 0)), mode="edge")
        else:
            skip_arr = x_nhwc
        skip_arr = jnp.pad(skip_arr, ((0, 0), (0, 0), (0, 0), (0, Coutp - Cout)))
    else:
        skip_arr = None

    # Channel-padded parameters; MXU weights stored bf16.
    wdw_p = jnp.pad(params["wdw"].astype(jnp.float32), ((0, 0), (0, 0), (0, Cp - C)))
    bdw_p = jnp.pad(params["bdw"].astype(jnp.float32), ((0, 0), (0, Cp - C)))
    g_p = jnp.pad(params["gamma"].astype(jnp.float32), ((0, 0), (0, Cp - C)))
    be_p = jnp.pad(params["beta"].astype(jnp.float32), ((0, 0), (0, Cp - C)))
    w1_p = jnp.pad(params["w1"].astype(jnp.float32),
                   ((0, Cp - C), (0, Hdp - hidden))).astype(jnp.bfloat16)
    b1_p = jnp.pad(params["b1"].astype(jnp.float32), ((0, 0), (0, Hdp - hidden)))
    w2_p = jnp.pad(params["w2"].astype(jnp.float32),
                   ((0, Hdp - hidden), (0, Coutp - Cout))).astype(jnp.bfloat16)
    b2_p = jnp.pad(params["b2"].astype(jnp.float32), ((0, 0), (0, Coutp - Cout)))

    # Spatial row tiling (second, parallel grid axis).
    if row_tile is None:
        row_tile = _auto_row_tile(Ho, Wo, Cp, Hdp, Coutp)
    TH = max(1, min(int(row_tile), Ho))
    while Ho % TH:
        TH -= 1
    n_tiles = Ho // TH

    def _const_spec(arr):
        nd = arr.ndim
        return pl.BlockSpec(arr.shape, lambda n, t, _nd=nd: (0,) * _nd)

    in_arrays = [xp]
    in_specs = [pl.BlockSpec((1, Hp, Wp, Cp), lambda n, t: (n, 0, 0, 0))]
    if skip:
        in_arrays.append(skip_arr)
        in_specs.append(pl.BlockSpec((1, TH, Wo, Coutp), lambda n, t: (n, t, 0, 0)))
    for arr in (wdw_p, bdw_p, g_p, be_p, w1_p, b1_p, w2_p, b2_p):
        in_arrays.append(arr)
        in_specs.append(_const_spec(arr))

    weight_bytes = sum(int(a.size) * a.dtype.itemsize
                       for a in (wdw_p, bdw_p, g_p, be_p, w1_p, b1_p, w2_p, b2_p))
    cost = pl.CostEstimate(
        flops=int(2 * N * Ho * Wo * (25 * C + C * hidden + hidden * Cout)),
        transcendentals=int(N * Ho * Wo),
        bytes_accessed=int(xp.size * 4
                           + (skip_arr.size * 4 if skip else 0)
                           + N * Ho * Wo * Coutp * 4
                           + weight_bytes),
    )

    kernel = functools.partial(convnext_kernel, true_c=C, row_tile=TH,
                               has_skip=skip)

    out = pl.pallas_call(
        kernel,
        out_shape=jax.ShapeDtypeStruct((N, Ho, Wo, Coutp), jnp.float32),
        grid=(N, n_tiles),
        in_specs=in_specs,
        out_specs=pl.BlockSpec((1, TH, Wo, Coutp), lambda n, t: (n, t, 0, 0)),
        compiler_params=pltpu.CompilerParams(
            dimension_semantics=("parallel", "parallel"),
            vmem_limit_bytes=48 * 1024 * 1024,
        ),
        cost_estimate=cost,
    )(*in_arrays)

    out = out[:, :, :, :Cout]                 # drop lane padding
    return jnp.transpose(out, (0, 3, 1, 2))   # back to NCHW


# ---------------------------------------------------------------------------
# Pure-JAX f32 reference (correctness sanity check)
# ---------------------------------------------------------------------------
def convnext_reference(x_nchw, params, padding):
    N, C, H, W = x_nchw.shape
    Cout = params["w2"].shape[1]
    crop = padding - 2
    xp = jnp.pad(
        x_nchw, ((0, 0), (0, 0), (padding, padding), (padding, padding)), mode="edge")
    dw = jnp.transpose(params["wdw"], (2, 0, 1))[:, None, :, :]       # (C,1,5,5)
    y = jax.lax.conv_general_dilated(
        xp, dw, (1, 1), "VALID",
        dimension_numbers=("NCHW", "OIHW", "NCHW"),
        feature_group_count=C,
    ) + params["bdw"].reshape(1, C, 1, 1)
    y = jnp.transpose(y, (0, 2, 3, 1))
    mean = y.mean(-1, keepdims=True)
    var = ((y - mean) ** 2).mean(-1, keepdims=True)
    y = (y - mean) / jnp.sqrt(var + 1e-6) * params["gamma"][0] + params["beta"][0]
    h = y @ params["w1"] + params["b1"][0]
    h = jnp.where(h > 0, h, 0.01 * h)
    z = h @ params["w2"] + params["b2"][0]
    z = jnp.transpose(z, (0, 3, 1, 2))
    if C == Cout:
        if crop < 0:
            z = x_nchw[:, :, -crop:crop, -crop:crop] + z
        elif crop > 0:
            z = jnp.pad(
                x_nchw, ((0, 0), (0, 0), (crop, crop), (crop, crop)), mode="edge") + z
        else:
            z = x_nchw + z
    return z


# ---------------------------------------------------------------------------
# Deterministic parameter construction + run
# ---------------------------------------------------------------------------
def make_params(key, input_dim, output_dim):
    hidden = 4 * input_dim
    ks = jax.random.split(key, 6)
    scale = 0.1
    return {
        "wdw":   scale * jax.random.normal(ks[0], (5, 5, input_dim), jnp.float32),
        "bdw":   scale * jax.random.normal(ks[1], (1, input_dim), jnp.float32),
        "gamma": jnp.ones((1, input_dim), jnp.float32),
        "beta":  jnp.zeros((1, input_dim), jnp.float32),
        "w1":    scale * jax.random.normal(ks[2], (input_dim, hidden), jnp.float32),
        "b1":    scale * jax.random.normal(ks[3], (1, hidden), jnp.float32),
        "w2":    scale * jax.random.normal(ks[4], (hidden, output_dim), jnp.float32),
        "b2":    scale * jax.random.normal(ks[5], (1, output_dim), jnp.float32),
    }


if __name__ == "__main__":
    key = jax.random.PRNGKey(0)
    k_x, k_p1, k_p2 = jax.random.split(key, 3)

    N, C, H, W = 2, 4, 16, 16
    padding = 2
    x = jax.random.normal(k_x, (N, C, H, W), jnp.float32)

    # Test 1: skip path (input_dim == output_dim), explicit 8-row tiles
    # (exercises the halo slicing across 2 row tiles per image).
    params1 = make_params(k_p1, C, C)
    fwd1 = jax.jit(functools.partial(convnext_forward, padding=padding, row_tile=8))
    out1 = jax.block_until_ready(fwd1(x, params1))
    ref1 = convnext_reference(x, params1, padding)
    assert out1.shape == ref1.shape
    assert jnp.allclose(out1, ref1, atol=3e-2, rtol=3e-2), (
        float(jnp.max(jnp.abs(out1 - ref1))))

    # Test 2: no skip (input_dim != output_dim) — kernel variant without any
    # skip operand (no zero-tensor DMA), auto row tile.
    params2 = make_params(k_p2, C, 2 * C)
    fwd2 = jax.jit(functools.partial(convnext_forward, padding=padding))
    out2 = jax.block_until_ready(fwd2(x, params2))
    ref2 = convnext_reference(x, params2, padding)
    assert out2.shape == ref2.shape
    assert jnp.allclose(out2, ref2, atol=3e-2, rtol=3e-2), (
        float(jnp.max(jnp.abs(out2 - ref2))))

    print("KERNEL_OK")
</pallas_src>

<mosaic_0001>
module attributes {stable_mosaic.version = 11 : i64} {
  func.func @convnext_kernel(%arg0: i32, %arg1: i32, %arg2: memref<1x20x20x128xf32, #tpu.memory_space<vmem>>, %arg3: memref<1x8x16x128xf32, #tpu.memory_space<vmem>>, %arg4: memref<5x5x128xf32, #tpu.memory_space<vmem>>, %arg5: memref<1x128xf32, #tpu.memory_space<vmem>>, %arg6: memref<1x128xf32, #tpu.memory_space<vmem>>, %arg7: memref<1x128xf32, #tpu.memory_space<vmem>>, %arg8: memref<128x128xbf16, #tpu.memory_space<vmem>>, %arg9: memref<1x128xf32, #tpu.memory_space<vmem>>, %arg10: memref<128x128xbf16, #tpu.memory_space<vmem>>, %arg11: memref<1x128xf32, #tpu.memory_space<vmem>>, %arg12: memref<1x8x16x128xf32, #tpu.memory_space<vmem>>) attributes {dimension_semantics = [#tpu.dimension_semantics<parallel>, #tpu.dimension_semantics<parallel>], iteration_bounds = array<i64: 2, 2>, scalar_prefetch = 0 : i64, scratch_operands = 0 : i64, tpu.core_type = #tpu.core_type<tc>, window_params = [{transform_indices = @transform_0, window_bounds = array<i64: 1, 20, 20, 128>}, {transform_indices = @transform_1, window_bounds = array<i64: 1, 8, 16, 128>}, {pipeline_mode = #tpu.pipeline_mode<synchronous>, transform_indices = @transform_2, window_bounds = array<i64: 5, 5, 128>}, {pipeline_mode = #tpu.pipeline_mode<synchronous>, transform_indices = @transform_3, window_bounds = array<i64: 1, 128>}, {pipeline_mode = #tpu.pipeline_mode<synchronous>, transform_indices = @transform_4, window_bounds = array<i64: 1, 128>}, {pipeline_mode = #tpu.pipeline_mode<synchronous>, transform_indices = @transform_5, window_bounds = array<i64: 1, 128>}, {pipeline_mode = #tpu.pipeline_mode<synchronous>, transform_indices = @transform_6, window_bounds = array<i64: 128, 128>}, {pipeline_mode = #tpu.pipeline_mode<synchronous>, transform_indices = @transform_7, window_bounds = array<i64: 1, 128>}, {pipeline_mode = #tpu.pipeline_mode<synchronous>, transform_indices = @transform_8, window_bounds = array<i64: 128, 128>}, {pipeline_mode = #tpu.pipeline_mode<synchronous>, transform_indices = @transform_9, window_bounds = array<i64: 1, 128>}, {transform_indices = @transform_10, window_bounds = array<i64: 1, 8, 16, 128>}]} {
    %c8_i32 = arith.constant 8 : i32
    %0 = arith.muli %arg1, %c8_i32 : i32
    %1 = tpu.assume_multiple %0, 8 : i32
    %c0 = arith.constant 0 : index
    %2 = arith.index_cast %1 : i32 to index
    %c0_0 = arith.constant 0 : index
    %c0_1 = arith.constant 0 : index
    %3 = vector.load %arg2[%c0, %2, %c0_0, %c0_1] : memref<1x20x20x128xf32, #tpu.memory_space<vmem>>, vector<1x12x20x128xf32>
    %4 = vector.shape_cast %3 : vector<1x12x20x128xf32> to vector<12x20x128xf32>
    %c0_2 = arith.constant 0 : index
    %c0_3 = arith.constant 0 : index
    %c0_4 = arith.constant 0 : index
    %5 = vector.load %arg4[%c0_2, %c0_3, %c0_4] : memref<5x5x128xf32, #tpu.memory_space<vmem>>, vector<5x5x128xf32>
    %6 = vector.extract_strided_slice %4 {offsets = [0, 0, 0], sizes = [12, 16, 128], strides = [1, 1, 1]} : vector<12x20x128xf32> to vector<12x16x128xf32>
    %7 = vector.extract_strided_slice %4 {offsets = [0, 1, 0], sizes = [12, 16, 128], strides = [1, 1, 1]} : vector<12x20x128xf32> to vector<12x16x128xf32>
    %8 = vector.extract_strided_slice %4 {offsets = [0, 2, 0], sizes = [12, 16, 128], strides = [1, 1, 1]} : vector<12x20x128xf32> to vector<12x16x128xf32>
    %9 = vector.extract_strided_slice %4 {offsets = [0, 3, 0], sizes = [12, 16, 128], strides = [1, 1, 1]} : vector<12x20x128xf32> to vector<12x16x128xf32>
    %10 = vector.extract_strided_slice %4 {offsets = [0, 4, 0], sizes = [12, 16, 128], strides = [1, 1, 1]} : vector<12x20x128xf32> to vector<12x16x128xf32>
    %cst = arith.constant 0.000000e+00 : f32
    %11 = vector.broadcast %cst : f32 to vector<8x16x128xf32>
    %12 = vector.extract_strided_slice %6 {offsets = [0, 0, 0], sizes = [8, 16, 128], strides = [1, 1, 1]} : vector<12x16x128xf32> to vector<8x16x128xf32>
    %13 = vector.extract_strided_slice %5 {offsets = [0, 0, 0], sizes = [1, 1, 128], strides = [1, 1, 1]} : vector<5x5x128xf32> to vector<1x1x128xf32>
    %14 = vector.shape_cast %13 : vector<1x1x128xf32> to vector<128xf32>
    %15 = vector.shape_cast %14 : vector<128xf32> to vector<1x1x128xf32>
    %16 = vector.broadcast %15 : vector<1x1x128xf32> to vector<8x16x128xf32>
    %17 = arith.mulf %12, %16 : vector<8x16x128xf32>
    %18 = arith.addf %11, %17 : vector<8x16x128xf32>
    %19 = vector.extract_strided_slice %7 {offsets = [0, 0, 0], sizes = [8, 16, 128], strides = [1, 1, 1]} : vector<12x16x128xf32> to vector<8x16x128xf32>
    %20 = vector.extract_strided_slice %5 {offsets = [0, 1, 0], sizes = [1, 1, 128], strides = [1, 1, 1]} : vector<5x5x128xf32> to vector<1x1x128xf32>
    %21 = vector.shape_cast %20 : vector<1x1x128xf32> to vector<128xf32>
    %22 = vector.shape_cast %21 : vector<128xf32> to vector<1x1x128xf32>
    %23 = vector.broadcast %22 : vector<1x1x128xf32> to vector<8x16x128xf32>
    %24 = arith.mulf %19, %23 : vector<8x16x128xf32>
    %25 = arith.addf %18, %24 : vector<8x16x128xf32>
    %26 = vector.extract_strided_slice %8 {offsets = [0, 0, 0], sizes = [8, 16, 128], strides = [1, 1, 1]} : vector<12x16x128xf32> to vector<8x16x128xf32>
    %27 = vector.extract_strided_slice %5 {offsets = [0, 2, 0], sizes = [1, 1, 128], strides = [1, 1, 1]} : vector<5x5x128xf32> to vector<1x1x128xf32>
    %28 = vector.shape_cast %27 : vector<1x1x128xf32> to vector<128xf32>
    %29 = vector.shape_cast %28 : vector<128xf32> to vector<1x1x128xf32>
    %30 = vector.broadcast %29 : vector<1x1x128xf32> to vector<8x16x128xf32>
    %31 = arith.mulf %26, %30 : vector<8x16x128xf32>
    %32 = arith.addf %25, %31 : vector<8x16x128xf32>
    %33 = vector.extract_strided_slice %9 {offsets = [0, 0, 0], sizes = [8, 16, 128], strides = [1, 1, 1]} : vector<12x16x128xf32> to vector<8x16x128xf32>
    %34 = vector.extract_strided_slice %5 {offsets = [0, 3, 0], sizes = [1, 1, 128], strides = [1, 1, 1]} : vector<5x5x128xf32> to vector<1x1x128xf32>
    %35 = vector.shape_cast %34 : vector<1x1x128xf32> to vector<128xf32>
    %36 = vector.shape_cast %35 : vector<128xf32> to vector<1x1x128xf32>
    %37 = vector.broadcast %36 : vector<1x1x128xf32> to vector<8x16x128xf32>
    %38 = arith.mulf %33, %37 : vector<8x16x128xf32>
    %39 = arith.addf %32, %38 : vector<8x16x128xf32>
    %40 = vector.extract_strided_slice %10 {offsets = [0, 0, 0], sizes = [8, 16, 128], strides = [1, 1, 1]} : vector<12x16x128xf32> to vector<8x16x128xf32>
    %41 = vector.extract_strided_slice %5 {offsets = [0, 4, 0], sizes = [1, 1, 128], strides = [1, 1, 1]} : vector<5x5x128xf32> to vector<1x1x128xf32>
    %42 = vector.shape_cast %41 : vector<1x1x128xf32> to vector<128xf32>
    %43 = vector.shape_cast %42 : vector<128xf32> to vector<1x1x128xf32>
    %44 = vector.broadcast %43 : vector<1x1x128xf32> to vector<8x16x128xf32>
    %45 = arith.mulf %40, %44 : vector<8x16x128xf32>
    %46 = arith.addf %39, %45 : vector<8x16x128xf32>
    %47 = vector.extract_strided_slice %6 {offsets = [1, 0, 0], sizes = [8, 16, 128], strides = [1, 1, 1]} : vector<12x16x128xf32> to vector<8x16x128xf32>
    %48 = vector.extract_strided_slice %5 {offsets = [1, 0, 0], sizes = [1, 1, 128], strides = [1, 1, 1]} : vector<5x5x128xf32> to vector<1x1x128xf32>
    %49 = vector.shape_cast %48 : vector<1x1x128xf32> to vector<128xf32>
    %50 = vector.shape_cast %49 : vector<128xf32> to vector<1x1x128xf32>
    %51 = vector.broadcast %50 : vector<1x1x128xf32> to vector<8x16x128xf32>
    %52 = arith.mulf %47, %51 : vector<8x16x128xf32>
    %53 = arith.addf %46, %52 : vector<8x16x128xf32>
    %54 = vector.extract_strided_slice %7 {offsets = [1, 0, 0], sizes = [8, 16, 128], strides = [1, 1, 1]} : vector<12x16x128xf32> to vector<8x16x128xf32>
    %55 = vector.extract_strided_slice %5 {offsets = [1, 1, 0], sizes = [1, 1, 128], strides = [1, 1, 1]} : vector<5x5x128xf32> to vector<1x1x128xf32>
    %56 = vector.shape_cast %55 : vector<1x1x128xf32> to vector<128xf32>
    %57 = vector.shape_cast %56 : vector<128xf32> to vector<1x1x128xf32>
    %58 = vector.broadcast %57 : vector<1x1x128xf32> to vector<8x16x128xf32>
    %59 = arith.mulf %54, %58 : vector<8x16x128xf32>
    %60 = arith.addf %53, %59 : vector<8x16x128xf32>
    %61 = vector.extract_strided_slice %8 {offsets = [1, 0, 0], sizes = [8, 16, 128], strides = [1, 1, 1]} : vector<12x16x128xf32> to vector<8x16x128xf32>
    %62 = vector.extract_strided_slice %5 {offsets = [1, 2, 0], sizes = [1, 1, 128], strides = [1, 1, 1]} : vector<5x5x128xf32> to vector<1x1x128xf32>
    %63 = vector.shape_cast %62 : vector<1x1x128xf32> to vector<128xf32>
    %64 = vector.shape_cast %63 : vector<128xf32> to vector<1x1x128xf32>
    %65 = vector.broadcast %64 : vector<1x1x128xf32> to vector<8x16x128xf32>
    %66 = arith.mulf %61, %65 : vector<8x16x128xf32>
    %67 = arith.addf %60, %66 : vector<8x16x128xf32>
    %68 = vector.extract_strided_slice %9 {offsets = [1, 0, 0], sizes = [8, 16, 128], strides = [1, 1, 1]} : vector<12x16x128xf32> to vector<8x16x128xf32>
    %69 = vector.extract_strided_slice %5 {offsets = [1, 3, 0], sizes = [1, 1, 128], strides = [1, 1, 1]} : vector<5x5x128xf32> to vector<1x1x128xf32>
    %70 = vector.shape_cast %69 : vector<1x1x128xf32> to vector<128xf32>
    %71 = vector.shape_cast %70 : vector<128xf32> to vector<1x1x128xf32>
    %72 = vector.broadcast %71 : vector<1x1x128xf32> to vector<8x16x128xf32>
    %73 = arith.mulf %68, %72 : vector<8x16x128xf32>
    %74 = arith.addf %67, %73 : vector<8x16x128xf32>
    %75 = vector.extract_strided_slice %10 {offsets = [1, 0, 0], sizes = [8, 16, 128], strides = [1, 1, 1]} : vector<12x16x128xf32> to vector<8x16x128xf32>
    %76 = vector.extract_strided_slice %5 {offsets = [1, 4, 0], sizes = [1, 1, 128], strides = [1, 1, 1]} : vector<5x5x128xf32> to vector<1x1x128xf32>
    %77 = vector.shape_cast %76 : vector<1x1x128xf32> to vector<128xf32>
    %78 = vector.shape_cast %77 : vector<128xf32> to vector<1x1x128xf32>
    %79 = vector.broadcast %78 : vector<1x1x128xf32> to vector<8x16x128xf32>
    %80 = arith.mulf %75, %79 : vector<8x16x128xf32>
    %81 = arith.addf %74, %80 : vector<8x16x128xf32>
    %82 = vector.extract_strided_slice %6 {offsets = [2, 0, 0], sizes = [8, 16, 128], strides = [1, 1, 1]} : vector<12x16x128xf32> to vector<8x16x128xf32>
    %83 = vector.extract_strided_slice %5 {offsets = [2, 0, 0], sizes = [1, 1, 128], strides = [1, 1, 1]} : vector<5x5x128xf32> to vector<1x1x128xf32>
    %84 = vector.shape_cast %83 : vector<1x1x128xf32> to vector<128xf32>
    %85 = vector.shape_cast %84 : vector<128xf32> to vector<1x1x128xf32>
    %86 = vector.broadcast %85 : vector<1x1x128xf32> to vector<8x16x128xf32>
    %87 = arith.mulf %82, %86 : vector<8x16x128xf32>
    %88 = arith.addf %81, %87 : vector<8x16x128xf32>
    %89 = vector.extract_strided_slice %7 {offsets = [2, 0, 0], sizes = [8, 16, 128], strides = [1, 1, 1]} : vector<12x16x128xf32> to vector<8x16x128xf32>
    %90 = vector.extract_strided_slice %5 {offsets = [2, 1, 0], sizes = [1, 1, 128], strides = [1, 1, 1]} : vector<5x5x128xf32> to vector<1x1x128xf32>
    %91 = vector.shape_cast %90 : vector<1x1x128xf32> to vector<128xf32>
    %92 = vector.shape_cast %91 : vector<128xf32> to vector<1x1x128xf32>
    %93 = vector.broadcast %92 : vector<1x1x128xf32> to vector<8x16x128xf32>
    %94 = arith.mulf %89, %93 : vector<8x16x128xf32>
    %95 = arith.addf %88, %94 : vector<8x16x128xf32>
    %96 = vector.extract_strided_slice %8 {offsets = [2, 0, 0], sizes = [8, 16, 128], strides = [1, 1, 1]} : vector<12x16x128xf32> to vector<8x16x128xf32>
    %97 = vector.extract_strided_slice %5 {offsets = [2, 2, 0], sizes = [1, 1, 128], strides = [1, 1, 1]} : vector<5x5x128xf32> to vector<1x1x128xf32>
    %98 = vector.shape_cast %97 : vector<1x1x128xf32> to vector<128xf32>
    %99 = vector.shape_cast %98 : vector<128xf32> to vector<1x1x128xf32>
    %100 = vector.broadcast %99 : vector<1x1x128xf32> to vector<8x16x128xf32>
    %101 = arith.mulf %96, %100 : vector<8x16x128xf32>
    %102 = arith.addf %95, %101 : vector<8x16x128xf32>
    %103 = vector.extract_strided_slice %9 {offsets = [2, 0, 0], sizes = [8, 16, 128], strides = [1, 1, 1]} : vector<12x16x128xf32> to vector<8x16x128xf32>
    %104 = vector.extract_strided_slice %5 {offsets = [2, 3, 0], sizes = [1, 1, 128], strides = [1, 1, 1]} : vector<5x5x128xf32> to vector<1x1x128xf32>
    %105 = vector.shape_cast %104 : vector<1x1x128xf32> to vector<128xf32>
    %106 = vector.shape_cast %105 : vector<128xf32> to vector<1x1x128xf32>
    %107 = vector.broadcast %106 : vector<1x1x128xf32> to vector<8x16x128xf32>
    %108 = arith.mulf %103, %107 : vector<8x16x128xf32>
    %109 = arith.addf %102, %108 : vector<8x16x128xf32>
    %110 = vector.extract_strided_slice %10 {offsets = [2, 0, 0], sizes = [8, 16, 128], strides = [1, 1, 1]} : vector<12x16x128xf32> to vector<8x16x128xf32>
    %111 = vector.extract_strided_slice %5 {offsets = [2, 4, 0], sizes = [1, 1, 128], strides = [1, 1, 1]} : vector<5x5x128xf32> to vector<1x1x128xf32>
    %112 = vector.shape_cast %111 : vector<1x1x128xf32> to vector<128xf32>
    %113 = vector.shape_cast %112 : vector<128xf32> to vector<1x1x128xf32>
    %114 = vector.broadcast %113 : vector<1x1x128xf32> to vector<8x16x128xf32>
    %115 = arith.mulf %110, %114 : vector<8x16x128xf32>
    %116 = arith.addf %109, %115 : vector<8x16x128xf32>
    %117 = vector.extract_strided_slice %6 {offsets = [3, 0, 0], sizes = [8, 16, 128], strides = [1, 1, 1]} : vector<12x16x128xf32> to vector<8x16x128xf32>
    %118 = vector.extract_strided_slice %5 {offsets = [3, 0, 0], sizes = [1, 1, 128], strides = [1, 1, 1]} : vector<5x5x128xf32> to vector<1x1x128xf32>
    %119 = vector.shape_cast %118 : vector<1x1x128xf32> to vector<128xf32>
    %120 = vector.shape_cast %119 : vector<128xf32> to vector<1x1x128xf32>
    %121 = vector.broadcast %120 : vector<1x1x128xf32> to vector<8x16x128xf32>
    %122 = arith.mulf %117, %121 : vector<8x16x128xf32>
    %123 = arith.addf %116, %122 : vector<8x16x128xf32>
    %124 = vector.extract_strided_slice %7 {offsets = [3, 0, 0], sizes = [8, 16, 128], strides = [1, 1, 1]} : vector<12x16x128xf32> to vector<8x16x128xf32>
    %125 = vector.extract_strided_slice %5 {offsets = [3, 1, 0], sizes = [1, 1, 128], strides = [1, 1, 1]} : vector<5x5x128xf32> to vector<1x1x128xf32>
    %126 = vector.shape_cast %125 : vector<1x1x128xf32> to vector<128xf32>
    %127 = vector.shape_cast %126 : vector<128xf32> to vector<1x1x128xf32>
    %128 = vector.broadcast %127 : vector<1x1x128xf32> to vector<8x16x128xf32>
    %129 = arith.mulf %124, %128 : vector<8x16x128xf32>
    %130 = arith.addf %123, %129 : vector<8x16x128xf32>
    %131 = vector.extract_strided_slice %8 {offsets = [3, 0, 0], sizes = [8, 16, 128], strides = [1, 1, 1]} : vector<12x16x128xf32> to vector<8x16x128xf32>
    %132 = vector.extract_strided_slice %5 {offsets = [3, 2, 0], sizes = [1, 1, 128], strides = [1, 1, 1]} : vector<5x5x128xf32> to vector<1x1x128xf32>
    %133 = vector.shape_cast %132 : vector<1x1x128xf32> to vector<128xf32>
    %134 = vector.shape_cast %133 : vector<128xf32> to vector<1x1x128xf32>
    %135 = vector.broadcast %134 : vector<1x1x128xf32> to vector<8x16x128xf32>
    %136 = arith.mulf %131, %135 : vector<8x16x128xf32>
    %137 = arith.addf %130, %136 : vector<8x16x128xf32>
    %138 = vector.extract_strided_slice %9 {offsets = [3, 0, 0], sizes = [8, 16, 128], strides = [1, 1, 1]} : vector<12x16x128xf32> to vector<8x16x128xf32>
    %139 = vector.extract_strided_slice %5 {offsets = [3, 3, 0], sizes = [1, 1, 128], strides = [1, 1, 1]} : vector<5x5x128xf32> to vector<1x1x128xf32>
    %140 = vector.shape_cast %139 : vector<1x1x128xf32> to vector<128xf32>
    %141 = vector.shape_cast %140 : vector<128xf32> to vector<1x1x128xf32>
    %142 = vector.broadcast %141 : vector<1x1x128xf32> to vector<8x16x128xf32>
    %143 = arith.mulf %138, %142 : vector<8x16x128xf32>
    %144 = arith.addf %137, %143 : vector<8x16x128xf32>
    %145 = vector.extract_strided_slice %10 {offsets = [3, 0, 0], sizes = [8, 16, 128], strides = [1, 1, 1]} : vector<12x16x128xf32> to vector<8x16x128xf32>
    %146 = vector.extract_strided_slice %5 {offsets = [3, 4, 0], sizes = [1, 1, 128], strides = [1, 1, 1]} : vector<5x5x128xf32> to vector<1x1x128xf32>
    %147 = vector.shape_cast %146 : vector<1x1x128xf32> to vector<128xf32>
    %148 = vector.shape_cast %147 : vector<128xf32> to vector<1x1x128xf32>
    %149 = vector.broadcast %148 : vector<1x1x128xf32> to vector<8x16x128xf32>
    %150 = arith.mulf %145, %149 : vector<8x16x128xf32>
    %151 = arith.addf %144, %150 : vector<8x16x128xf32>
    %152 = vector.extract_strided_slice %6 {offsets = [4, 0, 0], sizes = [8, 16, 128], strides = [1, 1, 1]} : vector<12x16x128xf32> to vector<8x16x128xf32>
    %153 = vector.extract_strided_slice %5 {offsets = [4, 0, 0], sizes = [1, 1, 128], strides = [1, 1, 1]} : vector<5x5x128xf32> to vector<1x1x128xf32>
    %154 = vector.shape_cast %153 : vector<1x1x128xf32> to vector<128xf32>
    %155 = vector.shape_cast %154 : vector<128xf32> to vector<1x1x128xf32>
    %156 = vector.broadcast %155 : vector<1x1x128xf32> to vector<8x16x128xf32>
    %157 = arith.mulf %152, %156 : vector<8x16x128xf32>
    %158 = arith.addf %151, %157 : vector<8x16x128xf32>
    %159 = vector.extract_strided_slice %7 {offsets = [4, 0, 0], sizes = [8, 16, 128], strides = [1, 1, 1]} : vector<12x16x128xf32> to vector<8x16x128xf32>
    %160 = vector.extract_strided_slice %5 {offsets = [4, 1, 0], sizes = [1, 1, 128], strides = [1, 1, 1]} : vector<5x5x128xf32> to vector<1x1x128xf32>
    %161 = vector.shape_cast %160 : vector<1x1x128xf32> to vector<128xf32>
    %162 = vector.shape_cast %161 : vector<128xf32> to vector<1x1x128xf32>
    %163 = vector.broadcast %162 : vector<1x1x128xf32> to vector<8x16x128xf32>
    %164 = arith.mulf %159, %163 : vector<8x16x128xf32>
    %165 = arith.addf %158, %164 : vector<8x16x128xf32>
    %166 = vector.extract_strided_slice %8 {offsets = [4, 0, 0], sizes = [8, 16, 128], strides = [1, 1, 1]} : vector<12x16x128xf32> to vector<8x16x128xf32>
    %167 = vector.extract_strided_slice %5 {offsets = [4, 2, 0], sizes = [1, 1, 128], strides = [1, 1, 1]} : vector<5x5x128xf32> to vector<1x1x128xf32>
    %168 = vector.shape_cast %167 : vector<1x1x128xf32> to vector<128xf32>
    %169 = vector.shape_cast %168 : vector<128xf32> to vector<1x1x128xf32>
    %170 = vector.broadcast %169 : vector<1x1x128xf32> to vector<8x16x128xf32>
    %171 = arith.mulf %166, %170 : vector<8x16x128xf32>
    %172 = arith.addf %165, %171 : vector<8x16x128xf32>
    %173 = vector.extract_strided_slice %9 {offsets = [4, 0, 0], sizes = [8, 16, 128], strides = [1, 1, 1]} : vector<12x16x128xf32> to vector<8x16x128xf32>
    %174 = vector.extract_strided_slice %5 {offsets = [4, 3, 0], sizes = [1, 1, 128], strides = [1, 1, 1]} : vector<5x5x128xf32> to vector<1x1x128xf32>
    %175 = vector.shape_cast %174 : vector<1x1x128xf32> to vector<128xf32>
    %176 = vector.shape_cast %175 : vector<128xf32> to vector<1x1x128xf32>
    %177 = vector.broadcast %176 : vector<1x1x128xf32> to vector<8x16x128xf32>
    %178 = arith.mulf %173, %177 : vector<8x16x128xf32>
    %179 = arith.addf %172, %178 : vector<8x16x128xf32>
    %180 = vector.extract_strided_slice %10 {offsets = [4, 0, 0], sizes = [8, 16, 128], strides = [1, 1, 1]} : vector<12x16x128xf32> to vector<8x16x128xf32>
    %181 = vector.extract_strided_slice %5 {offsets = [4, 4, 0], sizes = [1, 1, 128], strides = [1, 1, 1]} : vector<5x5x128xf32> to vector<1x1x128xf32>
    %182 = vector.shape_cast %181 : vector<1x1x128xf32> to vector<128xf32>
    %183 = vector.shape_cast %182 : vector<128xf32> to vector<1x1x128xf32>
    %184 = vector.broadcast %183 : vector<1x1x128xf32> to vector<8x16x128xf32>
    %185 = arith.mulf %180, %184 : vector<8x16x128xf32>
    %186 = arith.addf %179, %185 : vector<8x16x128xf32>
    %c0_5 = arith.constant 0 : index
    %c0_6 = arith.constant 0 : index
    %187 = vector.load %arg5[%c0_5, %c0_6] : memref<1x128xf32, #tpu.memory_space<vmem>>, vector<1x128xf32>
    %188 = vector.shape_cast %187 : vector<1x128xf32> to vector<128xf32>
    %189 = vector.shape_cast %188 : vector<128xf32> to vector<1x1x128xf32>
    %190 = vector.broadcast %189 : vector<1x1x128xf32> to vector<8x16x128xf32>
    %191 = arith.addf %186, %190 : vector<8x16x128xf32>
    %cst_7 = arith.constant dense<0.000000e+00> : vector<8x16xf32>
    %192 = vector.multi_reduction <add>, %191, %cst_7 [2] : vector<8x16x128xf32> to vector<8x16xf32>
    %193 = vector.shape_cast %192 : vector<8x16xf32> to vector<8x16x1xf32>
    %cst_8 = arith.constant 2.500000e-01 : f32
    %194 = vector.broadcast %cst_8 : f32 to vector<8x16x1xf32>
    %195 = arith.mulf %193, %194 : vector<8x16x1xf32>
    %196 = arith.mulf %191, %191 : vector<8x16x128xf32>
    %cst_9 = arith.constant dense<0.000000e+00> : vector<8x16xf32>
    %197 = vector.multi_reduction <add>, %196, %cst_9 [2] : vector<8x16x128xf32> to vector<8x16xf32>
    %198 = vector.shape_cast %197 : vector<8x16xf32> to vector<8x16x1xf32>
    %cst_10 = arith.constant 2.500000e-01 : f32
    %199 = vector.broadcast %cst_10 : f32 to vector<8x16x1xf32>
    %200 = arith.mulf %198, %199 : vector<8x16x1xf32>
    %201 = arith.mulf %195, %195 : vector<8x16x1xf32>
    %202 = arith.subf %200, %201 : vector<8x16x1xf32>
    %203 = vector.broadcast %195 : vector<8x16x1xf32> to vector<8x16x128xf32>
    %204 = arith.subf %191, %203 : vector<8x16x128xf32>
    %cst_11 = arith.constant 9.99999997E-7 : f32
    %205 = vector.broadcast %cst_11 : f32 to vector<8x16x1xf32>
    %206 = arith.addf %202, %205 : vector<8x16x1xf32>
    %207 = math.rsqrt %206 : vector<8x16x1xf32>
    %208 = vector.broadcast %207 : vector<8x16x1xf32> to vector<8x16x128xf32>
    %209 = arith.mulf %204, %208 : vector<8x16x128xf32>
    %c0_12 = arith.constant 0 : index
    %c0_13 = arith.constant 0 : index
    %210 = vector.load %arg6[%c0_12, %c0_13] : memref<1x128xf32, #tpu.memory_space<vmem>>, vector<1x128xf32>
    %211 = vector.shape_cast %210 : vector<1x128xf32> to vector<128xf32>
    %212 = vector.shape_cast %211 : vector<128xf32> to vector<1x1x128xf32>
    %213 = vector.broadcast %212 : vector<1x1x128xf32> to vector<8x16x128xf32>
    %214 = arith.mulf %209, %213 : vector<8x16x128xf32>
    %c0_14 = arith.constant 0 : index
    %c0_15 = arith.constant 0 : index
    %215 = vector.load %arg7[%c0_14, %c0_15] : memref<1x128xf32, #tpu.memory_space<vmem>>, vector<1x128xf32>
    %216 = vector.shape_cast %215 : vector<1x128xf32> to vector<128xf32>
    %217 = vector.shape_cast %216 : vector<128xf32> to vector<1x1x128xf32>
    %218 = vector.broadcast %217 : vector<1x1x128xf32> to vector<8x16x128xf32>
    %219 = arith.addf %214, %218 : vector<8x16x128xf32>
    %220 = vector.shape_cast %219 : vector<8x16x128xf32> to vector<128x128xf32>
    %221 = arith.truncf %220 : vector<128x128xf32> to vector<128x128xbf16>
    %c0_16 = arith.constant 0 : index
    %c0_17 = arith.constant 0 : index
    %222 = vector.load %arg8[%c0_16, %c0_17] : memref<128x128xbf16, #tpu.memory_space<vmem>>, vector<128x128xbf16>
    %cst_18 = arith.constant dense<0.000000e+00> : vector<128x128xf32>
    %223 = tpu.matmul %221, %222, %cst_18 {dimension_numbers = #tpu.dot_dimension_numbers<[1], [0], [0], [1], [0, 0, 1, 1], [], []>} : vector<128x128xbf16>, vector<128x128xbf16>, vector<128x128xf32> -> vector<128x128xf32>
    %c0_19 = arith.constant 0 : index
    %c0_20 = arith.constant 0 : index
    %224 = vector.load %arg9[%c0_19, %c0_20] : memref<1x128xf32, #tpu.memory_space<vmem>>, vector<1x128xf32>
    %225 = vector.shape_cast %224 : vector<1x128xf32> to vector<128xf32>
    %226 = vector.shape_cast %225 : vector<128xf32> to vector<1x128xf32>
    %227 = vector.broadcast %226 : vector<1x128xf32> to vector<128x128xf32>
    %228 = arith.addf %223, %227 : vector<128x128xf32>
    %cst_21 = arith.constant 0.000000e+00 : f32
    %229 = vector.broadcast %cst_21 : f32 to vector<128x128xf32>
    %230 = arith.cmpf ogt, %228, %229 : vector<128x128xf32>
    %cst_22 = arith.constant 0.00999999977 : f32
    %231 = vector.broadcast %cst_22 : f32 to vector<128x128xf32>
    %232 = arith.mulf %231, %228 : vector<128x128xf32>
    %233 = arith.select %230, %228, %232 : vector<128x128xi1>, vector<128x128xf32>
    %234 = arith.truncf %233 : vector<128x128xf32> to vector<128x128xbf16>
    %c0_23 = arith.constant 0 : index
    %c0_24 = arith.constant 0 : index
    %235 = vector.load %arg10[%c0_23, %c0_24] : memref<128x128xbf16, #tpu.memory_space<vmem>>, vector<128x128xbf16>
    %cst_25 = arith.constant dense<0.000000e+00> : vector<128x128xf32>
    %236 = tpu.matmul %234, %235, %cst_25 {dimension_numbers = #tpu.dot_dimension_numbers<[1], [0], [0], [1], [0, 0, 1, 1], [], []>} : vector<128x128xbf16>, vector<128x128xbf16>, vector<128x128xf32> -> vector<128x128xf32>
    %c0_26 = arith.constant 0 : index
    %c0_27 = arith.constant 0 : index
    %237 = vector.load %arg11[%c0_26, %c0_27] : memref<1x128xf32, #tpu.memory_space<vmem>>, vector<1x128xf32>
    %238 = vector.shape_cast %237 : vector<1x128xf32> to vector<128xf32>
    %239 = vector.shape_cast %238 : vector<128xf32> to vector<1x128xf32>
    %240 = vector.broadcast %239 : vector<1x128xf32> to vector<128x128xf32>
    %241 = arith.addf %236, %240 : vector<128x128xf32>
    %242 = vector.shape_cast %241 : vector<128x128xf32> to vector<8x16x128xf32>
    %c0_28 = arith.constant 0 : index
    %c0_29 = arith.constant 0 : index
    %c0_30 = arith.constant 0 : index
    %c0_31 = arith.constant 0 : index
    %243 = vector.load %arg3[%c0_28, %c0_29, %c0_30, %c0_31] : memref<1x8x16x128xf32, #tpu.memory_space<vmem>>, vector<1x8x16x128xf32>
    %244 = vector.shape_cast %243 : vector<1x8x16x128xf32> to vector<8x16x128xf32>
    %245 = arith.addf %242, %244 : vector<8x16x128xf32>
    %c0_32 = arith.constant 0 : index
    %c0_33 = arith.constant 0 : index
    %c0_34 = arith.constant 0 : index
    %c0_35 = arith.constant 0 : index
    %246 = vector.load %arg12[%c0_32, %c0_33, %c0_34, %c0_35] : memref<1x8x16x128xf32, #tpu.memory_space<vmem>>, vector<1x8x16x128xf32>
    %247 = vector.shape_cast %246 : vector<1x8x16x128xf32> to vector<8x16x128xf32>
    %248 = vector.shape_cast %245 : vector<8x16x128xf32> to vector<1x8x16x128xf32>
    tpu.vector_store %arg12[%c0_32, %c0_33, %c0_34, %c0_35], %248 {strides = array<i32>} : memref<1x8x16x128xf32, #tpu.memory_space<vmem>>, vector<1x8x16x128xf32>,
    return
  }
  func.func @transform_0(%arg0: i32, %arg1: i32) -> (i32, i32, i32, i32) {
    %c0_i32 = arith.constant 0 : i32
    %c0_i32_0 = arith.constant 0 : i32
    %c0_i32_1 = arith.constant 0 : i32
    %c0_i32_2 = arith.constant 0 : i32
    return %arg0, %c0_i32, %c0_i32_0, %c0_i32_1 : i32, i32, i32, i32
  }
  func.func @transform_1(%arg0: i32, %arg1: i32) -> (i32, i32, i32, i32) {
    %c0_i32 = arith.constant 0 : i32
    %c0_i32_0 = arith.constant 0 : i32
    %c0_i32_1 = arith.constant 0 : i32
    return %arg0, %arg1, %c0_i32, %c0_i32_0 : i32, i32, i32, i32
  }
  func.func @transform_2(%arg0: i32, %arg1: i32) -> (i32, i32, i32) {
    %c0_i32 = arith.constant 0 : i32
    %c0_i32_0 = arith.constant 0 : i32
    %c0_i32_1 = arith.constant 0 : i32
    %c0_i32_2 = arith.constant 0 : i32
    return %c0_i32, %c0_i32_0, %c0_i32_1 : i32, i32, i32
  }
  func.func @transform_3(%arg0: i32, %arg1: i32) -> (i32, i32) {
    %c0_i32 = arith.constant 0 : i32
    %c0_i32_0 = arith.constant 0 : i32
    %c0_i32_1 = arith.constant 0 : i32
    return %c0_i32, %c0_i32_0 : i32, i32
  }
  func.func @transform_4(%arg0: i32, %arg1: i32) -> (i32, i32) {
    %c0_i32 = arith.constant 0 : i32
    %c0_i32_0 = arith.constant 0 : i32
    %c0_i32_1 = arith.constant 0 : i32
    return %c0_i32, %c0_i32_0 : i32, i32
  }
  func.func @transform_5(%arg0: i32, %arg1: i32) -> (i32, i32) {
    %c0_i32 = arith.constant 0 : i32
    %c0_i32_0 = arith.constant 0 : i32
    %c0_i32_1 = arith.constant 0 : i32
    return %c0_i32, %c0_i32_0 : i32, i32
  }
  func.func @transform_6(%arg0: i32, %arg1: i32) -> (i32, i32) {
    %c0_i32 = arith.constant 0 : i32
    %c0_i32_0 = arith.constant 0 : i32
    %c0_i32_1 = arith.constant 0 : i32
    return %c0_i32, %c0_i32_0 : i32, i32
  }
  func.func @transform_7(%arg0: i32, %arg1: i32) -> (i32, i32) {
    %c0_i32 = arith.constant 0 : i32
    %c0_i32_0 = arith.constant 0 : i32
    %c0_i32_1 = arith.constant 0 : i32
    return %c0_i32, %c0_i32_0 : i32, i32
  }
  func.func @transform_8(%arg0: i32, %arg1: i32) -> (i32, i32) {
    %c0_i32 = arith.constant 0 : i32
    %c0_i32_0 = arith.constant 0 : i32
    %c0_i32_1 = arith.constant 0 : i32
    return %c0_i32, %c0_i32_0 : i32, i32
  }
  func.func @transform_9(%arg0: i32, %arg1: i32) -> (i32, i32) {
    %c0_i32 = arith.constant 0 : i32
    %c0_i32_0 = arith.constant 0 : i32
    %c0_i32_1 = arith.constant 0 : i32
    return %c0_i32, %c0_i32_0 : i32, i32
  }
  func.func @transform_10(%arg0: i32, %arg1: i32) -> (i32, i32, i32, i32) {
    %c0_i32 = arith.constant 0 : i32
    %c0_i32_0 = arith.constant 0 : i32
    %c0_i32_1 = arith.constant 0 : i32
    return %arg0, %arg1, %c0_i32, %c0_i32_0 : i32, i32, i32, i32
  }
}

</mosaic_0001>

<bundles_post_ra>
// kernel: convnext_forward.1
= control target key start
LH: loop header
LB: loop body
LE: loop exit
PB: predicated region body
PF: predicated region fallthrough
CT: control target
= control target key end

     0   :  { %s4262_s13 = smov 0   ;;  %s4264_s14 = smov 0   ;;  %s7795_s0 = inlined_call_operand.vmem [shape: f32[2,20,20,128], index: 0, kind: input, shape index: {}]   ;;  %s7796_s1 = inlined_call_operand.vmem [shape: f32[2,16,16,128], index: 1, kind: input, shape index: {}]   ;;  %s7797_s2 = inlined_call_operand.vmem [shape: f32[5,5,128], index: 2, kind: input, shape index: {}]   ;;  %s7798_s3 = inlined_call_operand.vmem [shape: f32[1,128], index: 3, kind: input, shape index: {}]   ;;  %s7799_s4 = inlined_call_operand.vmem [shape: f32[1,128], index: 4, kind: input, shape index: {}]   ;;  %s7800_s5 = inlined_call_operand.vmem [shape: f32[1,128], index: 5, kind: input, shape index: {}]   ;;  %s7801_s6 = inlined_call_operand.vmem [shape: bf16[128,128], index: 6, kind: input, shape index: {}]   ;;  %s7802_s7 = inlined_call_operand.vmem [shape: f32[1,128], index: 7, kind: input, shape index: {}]   ;;  %s7803_s8 = inlined_call_operand.vmem [shape: bf16[128,128], index: 8, kind: input, shape index: {}]   ;;  %s7804_s9 = inlined_call_operand.vmem [shape: f32[1,128], index: 9, kind: input, shape index: {}]   ;;  %s7805_s10 = inlined_call_operand.vmem [shape: f32[2,16,16,128], index: 10, kind: output, shape index: {}]  }
   0x1   :  { %s4266_s15 = smov 0   ;;  %s4268_s16 = smov 0  }
   0x2   :  { %s4270_s17 = smov 0  }
   0x3 LB: > { %s29_s18 = sadd.s32 1, %s4197_s15  ;;  %s32_s19 = sadd.s32 1, %s4201_s16  ;;  %s4205_s17 = sphi %s4270_s17, %s20_s17   ;;  %s4201_s16 = sphi %s4268_s16, %s8684_s16   ;;  %s4197_s15 = sphi %s4266_s15, %s8683_s15   ;;  %s4193_s14 = sphi %s4264_s14, %s8682_s14   ;;  %s4189_s13 = sphi %s4262_s13, %s8681_s13  }
   0x4   : > { %p30_p0 = scmp.ge.s32.totalorder %s29_s18, 2  ;;  %p3932_p1 = scmp.ge.s32.totalorder %s4205_s17, 1 }
   0x5   : > { %p344_p2 = scmp.lt.s32.totalorder %s4205_s17, 5 }
   0x6   : > { %s8686_s18 = smov (%p30_p0, %s29_s18), 0  ;;  %s8688_s19 = smov (!%p30_p0, %s32_s19), %s4201_s16 }
   0x7   : > { %p345_p3 = pnand %p3932_p1, %p344_p2  ;;  %p34_p4 = scmp.ge.s32.totalorder %s8688_s19, 2 }
   0x9   : > { %s8690_s19 = smov (%p34_p4, %s8688_s19), 0  ;;  %348 = sbr.rel (%p345_p3) target bundleno = 961 (0x3c1), region = 60 }
   0xe   : > { %p397_p5 = scmp.lt.s32.totalorder %s4193_s14, 1  ;;  %s3943_s20 = smul.u32 192, %s4189_s13  ;;  %v463_v0 = vld [vmem:[%s7797_s2] sm:$0x1f]  ;;  %v464_v1 = vld [vmem:[%s7797_s2 + $0x8] sm:$0x1f] }
   0xf   : > { %v465_v2 = vld [vmem:[%s7797_s2 + $0x10] sm:$0x1f]  ;;  %v4307_v3 = vperm.slane %v463_v0, 0  ;;  %v4309_v4 = vperm.slane %v463_v0, 1  ;;  %vm550_vm0 = vcmask 1046528   ;;  %v4311_v5 = vperm.slane %v463_v0, 2 }
  0x10   : > { %s8692_s14 = smov (!%p397_p5, %s4193_s14), 1  ;;  %vm672_vm1 = vcmask 1045504   ;;  %v4313_v6 = vperm.slane %v463_v0, 3  ;;  %vm794_vm2 = vcmask 1044480   ;;  %v4315_v7 = vperm.slane %v463_v0, 4 }
  0x11   : > { %s4042_s27 = smul.u32 480, %s8692_s14  ;;  %8125 = vst [vmem:[#allocation2_spill] sm:$0xff] %v4307_v3  ;;  %vm916_vm3 = vcmask 1043456   ;;  %v4320_v8 = vperm.slane %v464_v1, 0  ;;  %v4322_v9 = vperm.slane %v464_v1, 1  ;;  %v4324_v10 = vperm.slane %v464_v1, 2 }
  0x12   : > { %8126 = vst [vmem:[#allocation3_spill] sm:$0xff] %v4309_v4  ;;  %v4328_v11 = vperm.slane %v464_v1, 3  ;;  %v4330_v12 = vperm.slane %v464_v1, 4  ;;  %v4338_v15 = vperm.slane %v465_v2, 0  ;;  %v4340_v16 = vperm.slane %v465_v2, 1  ;;  %s3936_s12 = sshll.u32 %s8692_s14, 5 }
  0x13   : > { %8127 = vst [vmem:[#allocation4_spill] sm:$0xff] %v4311_v5  ;;  %s401_s30 = scalar_lea.vmem %s7795_s0, %s4042_s27  ;;  %v4342_v17 = vperm.slane %v465_v2, 2  ;;  %v4344_v18 = vperm.slane %v465_v2, 3  ;;  %v4375_v29 = vld [vmem:[%s7797_s2 + $0x18] sm:$0x1f]  ;;  %v4384_v37 = vperm.slane %v465_v2, 4 }
  0x14   : > { %8128 = vst [vmem:[#allocation5_spill] sm:$0xff] %v4313_v6  ;;  %s4326_s11 = scalar_lea.vmem %s401_s30, %s3943_s20  ;;  %v4399_v45 = vperm.slane %v4375_v29, 0  ;;  %v4428_v59 = vperm.slane %v4375_v29, 1  ;;  %v4432_v63 = vperm.slane %v4375_v29, 2  ;;  %s3934_s30 = sshll.u32 %s4189_s13, 3 }
  0x15   : > { %8129 = vst [vmem:[#allocation6_spill] sm:$0xff] %v4315_v7  ;;  %v4333_v13 = vld [vmem:[%s4326_s11 + $0x60] sm:$0xff]  ;;  %v4336_v14 = vld [vmem:[%s4326_s11 + $0x68] sm:$0xff]  ;;  %v442_v23 = vld [vmem:[%s4326_s11 + $0x78] sm:$0xff]  ;;  %p405_p6 = scmp.lt.s32.totalorder %s3934_s30, 15 }
  0x16   : > { %8130 = vst [vmem:[#allocation7_spill] sm:$0xff] %v4320_v8  ;;  %v477_v19 = vmul.f32 %v4307_v3, %v4333_v13  ;;  %v514_v20 = vmul.f32 %v4309_v4, %v4333_v13  ;;  %v4352_v21 = vmul.f32 %v4309_v4, %v4336_v14  ;;  %v636_v22 = vmul.f32 %v4311_v5, %v4333_v13  ;;  %v4370_v28 = vld [vmem:[%s4326_s11 + $0x80] sm:$0xff]  ;;  %v445_v54 = vld [vmem:[%s4326_s11 + $0x90] sm:$0xff]  ;;  %v4417_v55 = vld [vmem:[%s4326_s11 + $0x98] sm:$0xff] }
  0x17   : > { %8131 = vst [vmem:[#allocation8_spill] sm:$0xff] %v4322_v9  ;;  %v4359_v24 = vmul.f32 %v4311_v5, %v4336_v14  ;;  %v758_v25 = vmul.f32 %v4313_v6, %v4333_v13  ;;  %v4365_v26 = vmul.f32 %v4313_v6, %v4336_v14  ;;  %v880_v27 = vmul.f32 %v4315_v7, %v4333_v13  ;;  %s8694_s30 = smov (!%p405_p6, %s3934_s30), 15 }
  0x18   : > { %8132 = vst [vmem:[#allocation9_spill] sm:$0xff] %v4324_v10  ;;  %v571_v30 = vrot.slane %v514_v20, 1  ;;  %v7816_v31 = vrot.slane %v4352_v21, 1  ;;  %v693_v32 = vrot.slane %v636_v22, 2  ;;  %v4380_v33 = vmul.f32 %v4315_v7, %v4336_v14 }
  0x19   : > { %8133 = vst [vmem:[#allocation10_spill] sm:$0xff] %v4328_v11  ;;  %v7814_v34 = vrot.slane %v4359_v24, 2  ;;  %v815_v35 = vrot.slane %v758_v25, 3  ;;  %v7813_v36 = vrot.slane %v4365_v26, 3  ;;  %v937_v39 = vrot.slane %v880_v27, 4 }
  0x1a   : > { %8134 = vst [vmem:[#allocation11_spill] sm:$0xff] %v4338_v15  ;;  %v573_v38 = vsel %vm550_vm0, %v571_v30, %v7816_v31  ;;  %v7812_v40 = vrot.slane %v4380_v33, 4  ;;  %v1035_v41 = vmul.f32 %v4322_v9, %v442_v23  ;;  %v4396_v44 = vmul.f32 %v4322_v9, %v4370_v28 }
  0x1b   : > { %8135 = vst [vmem:[#allocation12_spill] sm:$0xff] %v4344_v18  ;;  %v615_v42 = vadd.f32 %v573_v38, %v477_v19  ;;  %v695_v43 = vsel %vm672_vm1, %v693_v32, %v7814_v34  ;;  %v817_v46 = vsel %vm794_vm2, %v815_v35, %v7813_v36  ;;  %v1156_v48 = vmul.f32 %v4324_v10, %v442_v23  ;;  %v448_v38 = vld [vmem:[%s4326_s11 + $0xa8] sm:$0xff]  ;;  %v451_v36 = vld [vmem:[%s4326_s11 + $0xc0] sm:$0xff] }
  0x1c   : > { %8136 = vst [vmem:[#allocation13_spill] sm:$0xff] %v4352_v21  ;;  %v1091_v47 = vrot.slane %v1035_v41, 1  ;;  %v4407_v49 = vmul.f32 %v4324_v10, %v4370_v28  ;;  %v7810_v51 = vrot.slane %v4396_v44, 1  ;;  %v1277_v52 = vmul.f32 %v4328_v11, %v442_v23  ;;  %v4520_v34 = vld [vmem:[%s4326_s11 + $0xc8] sm:$0xff] }
  0x1d   : > { %8137 = vst [vmem:[#allocation14_spill] sm:$0xff] %v4359_v24  ;;  %v737_v50 = vadd.f32 %v695_v43, %v615_v42  ;;  %v4413_v53 = vmul.f32 %v4328_v11, %v4370_v28  ;;  %v939_v56 = vsel %vm916_vm3, %v937_v39, %v7812_v40  ;;  %v1398_v57 = vmul.f32 %v4330_v12, %v442_v23 }
  0x1e   : > { %8138 = vst [vmem:[#allocation15_spill] sm:$0xff] %v4365_v26  ;;  %v4425_v58 = vmul.f32 %v4330_v12, %v4370_v28  ;;  %v998_v61 = vmul.f32 %v4320_v8, %v442_v23  ;;  %v1212_v62 = vrot.slane %v1156_v48, 2  ;;  %v1093_v0 = vsel %vm550_vm0, %v1091_v47, %v7810_v51 }
  0x1f   : > { %8139 = vst [vmem:[#allocation16_spill] sm:$0xff] %v4370_v28  ;;  %v859_v60 = vadd.f32 %v817_v46, %v737_v50  ;;  %v7807_v1 = vrot.slane %v4407_v49, 2  ;;  %v1333_v2 = vrot.slane %v1277_v52, 3  ;;  %v7806_v19 = vrot.slane %v4413_v53, 3  ;;  %v4458_v46 = vld [vmem:[%s4326_s11 + $0xb0] sm:$0xff] }
  0x20   : > { %8140 = vst [vmem:[#allocation17_spill] sm:$0xff] %v4380_v33  ;;  %v1454_v22 = vrot.slane %v1398_v57, 4  ;;  %v1552_v25 = vmul.f32 %v4340_v16, %v445_v54  ;;  %v4442_v23 = vmul.f32 %v4340_v16, %v4417_v55  ;;  %v7809_v27 = vrot.slane %v4425_v58, 4 }
  0x21   : > { %8141 = vst [vmem:[#allocation18_spill] sm:$0xff] %v4384_v37  ;;  %v981_v20 = vadd.f32 %v939_v56, %v859_v60  ;;  %v1673_v30 = vmul.f32 %v4342_v17, %v445_v54  ;;  %v4448_v32 = vmul.f32 %v4342_v17, %v4417_v55  ;;  %v1794_v35 = vmul.f32 %v4344_v18, %v445_v54 }
  0x22   : > { %8142 = vst [vmem:[#allocation19_spill] sm:$0xff] %v4396_v44  ;;  %v1608_v41 = vrot.slane %v1552_v25, 1  ;;  %v7808_v42 = vrot.slane %v4442_v23, 1  ;;  %v4455_v43 = vmul.f32 %v4344_v18, %v4417_v55  ;;  %v1214_v47 = vsel %vm672_vm1, %v1212_v62, %v7807_v1 }
  0x23   : > { %8143 = vst [vmem:[#allocation20_spill] sm:$0xff] %v4407_v49  ;;  %v1014_v39 = vadd.f32 %v998_v61, %v981_v20  ;;  %v1335_v48 = vsel %vm794_vm2, %v1333_v2, %v7806_v19  ;;  %v1515_v50 = vmul.f32 %v4338_v15, %v445_v54  ;;  %v1915_v52 = vmul.f32 %v4384_v37, %v445_v54 }
  0x24   : > { %8144 = vst [vmem:[#allocation21_spill] sm:$0xff] %v4413_v53  ;;  %v1729_v57 = vrot.slane %v1673_v30, 2  ;;  %v7811_v60 = vrot.slane %v4448_v32, 2  ;;  %v4471_v61 = vmul.f32 %v4384_v37, %v4417_v55  ;;  %v1456_v62 = vsel %vm916_vm3, %v1454_v22, %v7809_v27 }
  0x25   : > { %8145 = vst [vmem:[#allocation22_spill] sm:$0xff] %v4417_v55  ;;  %v1135_v56 = vadd.f32 %v1093_v0, %v1014_v39  ;;  %v1850_v20 = vrot.slane %v1794_v35, 3  ;;  %v7815_v25 = vrot.slane %v4455_v43, 3  ;;  %v2069_v2 = vmul.f32 %v4428_v59, %v448_v38 }
  0x26   : > { %8146 = vst [vmem:[#allocation23_spill] sm:$0xff] %v4425_v58  ;;  %v1610_v54 = vsel %vm550_vm0, %v1608_v41, %v7808_v42  ;;  %v1971_v0 = vrot.slane %v1915_v52, 4  ;;  %v4483_v30 = vmul.f32 %v4428_v59, %v4458_v46  ;;  %v7821_v39 = vrot.slane %v4471_v61, 4  ;;  %v467_v42 = vld [vmem:[%s7797_s2 + $0x20] sm:$0x1f] }
  0x27   : > { %8147 = vst [vmem:[#allocation24_spill] sm:$0xff] %v4442_v23  ;;  %v1256_v19 = vadd.f32 %v1214_v47, %v1135_v56  ;;  %v2190_v1 = vmul.f32 %v4432_v63, %v448_v38  ;;  %v4489_v22 = vmul.f32 %v4432_v63, %v4458_v46  ;;  %v4492_v35 = vperm.slane %v4375_v29, 3 }
  0x28   : > { %8148 = vst [vmem:[#allocation25_spill] sm:$0xff] %v4448_v32  ;;  %v1731_v41 = vsel %vm672_vm1, %v1729_v57, %v7811_v60  ;;  %v2032_v52 = vmul.f32 %v4399_v45, %v448_v38  ;;  %v4499_v56 = vperm.slane %v4375_v29, 4  ;;  %v1852_v27 = vsel %vm794_vm2, %v1850_v20, %v7815_v25  ;;  %v4560_v25 = vld [vmem:[%s4326_s11 + $0x20] sm:$0xff] }
  0x29   : > { %8149 = vst [vmem:[#allocation26_spill] sm:$0xff] %v4455_v43  ;;  %v1377_v47 = vadd.f32 %v1335_v48, %v1256_v19  ;;  %v2125_v51 = vrot.slane %v2069_v2, 1  ;;  %v2311_v19 = vmul.f32 %v4492_v35, %v448_v38  ;;  %v4510_v48 = vmul.f32 %v4492_v35, %v4458_v46 }
  0x2a   : > { %8150 = vst [vmem:[#allocation27_spill] sm:$0xff] %v4458_v46  ;;  %v2432_v29 = vmul.f32 %v4499_v56, %v448_v38  ;;  %v4516_v40 = vmul.f32 %v4499_v56, %v4458_v46  ;;  %v1973_v20 = vsel %vm916_vm3, %v1971_v0, %v7821_v39  ;;  %v2246_v2 = vrot.slane %v2190_v1, 2 }
  0x2b   : > { %8151 = vst [vmem:[#allocation28_spill] sm:$0xff] %v4471_v61  ;;  %v1498_v57 = vadd.f32 %v1456_v62, %v1377_v47  ;;  %v2367_v31 = vrot.slane %v2311_v19, 3  ;;  %v4527_v60 = vperm.slane %v467_v42, 0  ;;  %v4529_v38 = vperm.slane %v467_v42, 1 }
  0x2c   : > { %8152 = vst [vmem:[#allocation29_spill] sm:$0xff] %v4483_v30  ;;  %v2488_v43 = vrot.slane %v2432_v29, 4  ;;  %v4532_v32 = vperm.slane %v467_v42, 2  ;;  %v4534_v61 = vperm.slane %v467_v42, 3  ;;  %v8160_v1 = vrot.slane %v4483_v30, 1 }
  0x2d   : > { %8153 = vst [vmem:[#allocation30_spill] sm:$0xff] %v4489_v22  ;;  %v1531_v62 = vadd.f32 %v1515_v50, %v1498_v57  ;;  %v2586_v50 = vmul.f32 %v4529_v38, %v451_v36  ;;  %v4542_v57 = vmul.f32 %v4529_v38, %v4520_v34  ;;  %v4557_v47 = vperm.slane %v467_v42, 4 }
  0x2e   : > { %8154 = vst [vmem:[#allocation31_spill] sm:$0xff] %v4499_v56  ;;  %v2127_v19 = vsel %vm550_vm0, %v2125_v51, %v8160_v1  ;;  %v2707_v29 = vmul.f32 %v4532_v32, %v451_v36  ;;  %v4547_v39 = vmul.f32 %v4532_v32, %v4520_v34  ;;  %v4550_v46 = vmul.f32 %v4534_v61, %v451_v36 }
  0x2f   : > { %8155 = vst [vmem:[#allocation32_spill] sm:$0xff] %v4510_v48  ;;  %v1652_v0 = vadd.f32 %v1610_v54, %v1531_v62  ;;  %v4554_v54 = vmul.f32 %v4534_v61, %v4520_v34  ;;  %v2642_v62 = vrot.slane %v2586_v50, 1  ;;  %v8166_v30 = vrot.slane %v4489_v22, 2 }
  0x30   : > { %8156 = vst [vmem:[#allocation33_spill] sm:$0xff] %v4516_v40  ;;  %v8167_v58 = vrot.slane %v4510_v48, 3  ;;  %v8168_v49 = vrot.slane %v4516_v40, 4  ;;  %v2763_v50 = vrot.slane %v2707_v29, 2  ;;  %v7834_v1 = vrot.slane %v4547_v39, 2 }
  0x31   : > { %8157 = vst [vmem:[#allocation34_spill] sm:$0xff] %v4520_v34  ;;  %v1773_v51 = vadd.f32 %v1731_v41, %v1652_v0  ;;  %v2248_v23 = vsel %vm672_vm1, %v2246_v2, %v8166_v30  ;;  %v2549_v41 = vmul.f32 %v4527_v60, %v451_v36  ;;  %v4573_v0 = vld [vmem:[%s4326_s11 + $0x28] sm:$0xf]  ;;  %v8170_v30 = vrot.slane %v4542_v57, 1 }
  0x32   : > { %8158 = vst [vmem:[#allocation35_spill] sm:$0xff] %v4527_v60  ;;  %v2369_v53 = vsel %vm794_vm2, %v2367_v31, %v8167_v58  ;;  %v2490_v55 = vsel %vm916_vm3, %v2488_v43, %v8168_v49  ;;  %v4584_v49 = vmul.f32 %v4557_v47, %v451_v36  ;;  %v4588_v58 = vmul.f32 %v4309_v4, %v4560_v25  ;;  %v4613_v31 = vld [vmem:[%s4326_s11 + $0x38] sm:$0xff] }
  0x33   : > { %8159 = vst [vmem:[#allocation36_spill] sm:$0xff] %v4534_v61  ;;  %v1894_v42 = vadd.f32 %v1852_v27, %v1773_v51  ;;  %v4580_v2 = vsel %vm550_vm0, %v2642_v62, %v8170_v30  ;;  %v4592_v43 = vmul.f32 %v4557_v47, %v4520_v34  ;;  %v472_v29 = vmul.f32 %v4307_v3, %v4560_v25 }
  0x34   : > { %8161 = vst [vmem:[#allocation37_spill] sm:$0xff] %v4542_v57  ;;  %v507_v51 = vmul.f32 %v4309_v4, %v4573_v0  ;;  %v4601_v36 = vmul.f32 %v4311_v5, %v4560_v25  ;;  %v2765_v22 = vsel %vm672_vm1, %v2763_v50, %v7834_v1  ;;  %v751_v62 = vmul.f32 %v4313_v6, %v4573_v0 }
  0x35   : > { %8162 = vst [vmem:[#allocation38_spill] sm:$0xff] %v4547_v39  ;;  %v2015_v27 = vadd.f32 %v1973_v20, %v1894_v42  ;;  %v629_v20 = vmul.f32 %v4311_v5, %v4573_v0  ;;  %v4607_v42 = vmul.f32 %v4313_v6, %v4560_v25  ;;  %v4621_v44 = vmul.f32 %v4315_v7, %v4560_v25 }
  0x36   : > { %8163 = vst [vmem:[#allocation39_spill] sm:$0xff] %v4554_v54  ;;  %v559_v57 = vrot.slane %v507_v51, 1  ;;  %v7839_v40 = vrot.slane %v4601_v36, 2  ;;  %v8177_v50 = vrot.slane %v4588_v58, 1  ;;  %v803_v51 = vrot.slane %v751_v62, 3 }
  0x37   : > { %8164 = vst [vmem:[#allocation40_spill] sm:$0xff] %v4557_v47  ;;  %v2048_v30 = vadd.f32 %v2032_v52, %v2015_v27  ;;  %v681_v48 = vrot.slane %v629_v20, 2  ;;  %v4624_v27 = vld [vmem:[%s4326_s11 + $0x40] sm:$0xf]  ;;  %v873_v39 = vmul.f32 %v4315_v7, %v4573_v0  ;;  %v7844_v34 = vrot.slane %v4621_v44, 4 }
  0x38   : > { %8165 = vst [vmem:[#allocation41_spill] sm:$0xff] %v4560_v25  ;;  %v560_v1 = vsel %vm550_vm0, %v8177_v50, %v559_v57  ;;  %v8178_v26 = vrot.slane %v4607_v42, 3  ;;  %v4642_v62 = vmul.f32 %v4322_v9, %v4613_v31 }
  0x39   : > { %8169 = vst [vmem:[#allocation42_spill] sm:$0xff] %v4573_v0  ;;  %v2169_v52 = vadd.f32 %v2127_v19, %v2048_v30  ;;  %v610_v33 = vadd.f32 %v560_v1, %v472_v29  ;;  %v682_v20 = vsel %vm672_vm1, %v7839_v40, %v681_v48  ;;  %v993_v19 = vmul.f32 %v4320_v8, %v4613_v31  ;;  %v4663_v0 = vld [vmem:[%s4326_s11 + $0x50] sm:$0xff] }
  0x3a   : > { %8171 = vst [vmem:[#allocation43_spill] sm:$0xff] %v4588_v58  ;;  %v804_v58 = vsel %vm794_vm2, %v8178_v26, %v803_v51  ;;  %v925_v57 = vrot.slane %v873_v39, 4  ;;  %v1028_v48 = vmul.f32 %v4322_v9, %v4624_v27  ;;  %v4648_v29 = vmul.f32 %v4324_v10, %v4613_v31 }
  0x3b   : > { %8172 = vst [vmem:[#allocation44_spill] sm:$0xff] %v4592_v43  ;;  %v2290_v30 = vadd.f32 %v2248_v23, %v2169_v52  ;;  %v732_v1 = vadd.f32 %v682_v20, %v610_v33  ;;  %v1149_v23 = vmul.f32 %v4324_v10, %v4624_v27  ;;  %v7848_v39 = vrot.slane %v4642_v62, 1 }
  0x3c   : > { %8173 = vst [vmem:[#allocation45_spill] sm:$0xff] %v4601_v36  ;;  %v926_v26 = vsel %vm916_vm3, %v7844_v34, %v925_v57  ;;  %v4658_v33 = vmul.f32 %v4328_v11, %v4613_v31  ;;  %v1079_v51 = vrot.slane %v1028_v48, 1  ;;  %v7847_v20 = vrot.slane %v4648_v29, 2 }
  0x3d   : > { %8174 = vst [vmem:[#allocation46_spill] sm:$0xff] %v4607_v42  ;;  %v2411_v52 = vadd.f32 %v2369_v53, %v2290_v30  ;;  %v854_v50 = vadd.f32 %v804_v58, %v732_v1  ;;  %v1200_v40 = vrot.slane %v1149_v23, 2  ;;  %v3005_v36 = vrot.slane %v4584_v49, 4  ;;  %v4666_v53 = vld [vmem:[%s4326_s11 + $0x58] sm:$0xf] }
  0x3e   : > { %8175 = vst [vmem:[#allocation47_spill] sm:$0xff] %v4621_v44  ;;  %v1270_v30 = vmul.f32 %v4328_v11, %v4624_v27  ;;  %v4672_v57 = vmul.f32 %v4330_v12, %v4613_v31  ;;  %v7851_v58 = vrot.slane %v4592_v43, 4  ;;  %v7850_v48 = vrot.slane %v4658_v33, 3 }
  0x3f   : > { %8176 = vst [vmem:[#allocation48_spill] sm:$0xff] %v4624_v27  ;;  %v2532_v42 = vadd.f32 %v2490_v55, %v2411_v52  ;;  %v976_v1 = vadd.f32 %v926_v26, %v854_v50  ;;  %v1391_v55 = vmul.f32 %v4330_v12, %v4624_v27  ;;  %v1080_v23 = vsel %vm550_vm0, %v7848_v39, %v1079_v51 }
  0x40   : > { %8179 = vst [vmem:[#allocation49_spill] sm:$0xff] %v4642_v62  ;;  %v1201_v52 = vsel %vm672_vm1, %v7847_v20, %v1200_v40  ;;  %v1321_v34 = vrot.slane %v1270_v30, 3  ;;  %v4687_v26 = vmul.f32 %v4340_v16, %v4663_v0  ;;  %v1545_v50 = vmul.f32 %v4340_v16, %v4666_v53 }
  0x41   : > { %8180 = vst [vmem:[#allocation50_spill] sm:$0xff] %v4648_v29  ;;  %v2565_v49 = vadd.f32 %v2549_v41, %v2532_v42  ;;  %v1009_v44 = vadd.f32 %v993_v19, %v976_v1  ;;  %v1442_v42 = vrot.slane %v1391_v55, 4  ;;  %v4694_v51 = vmul.f32 %v4342_v17, %v4663_v0 }
  0x42   : > { %8181 = vst [vmem:[#allocation51_spill] sm:$0xff] %v4658_v33  ;;  %v1666_v40 = vmul.f32 %v4342_v17, %v4666_v53  ;;  %v8187_v19 = vrot.slane %v4554_v54, 3  ;;  %v8188_v30 = vrot.slane %v4550_v46, 3  ;;  %v3007_v20 = vsel %vm916_vm3, %v3005_v36, %v7851_v58  ;;  %v427_v54 = vld [vmem:[%s4326_s11] sm:$0xff] }
  0x43   : > { %8182 = vst [vmem:[#allocation52_spill] sm:$0xff] %v4663_v0  ;;  %v2686_v41 = vadd.f32 %v4580_v2, %v2565_v49  ;;  %v1130_v2 = vadd.f32 %v1080_v23, %v1009_v44  ;;  %v1322_v55 = vsel %vm794_vm2, %v7850_v48, %v1321_v34  ;;  %v7852_v39 = vrot.slane %v4687_v26, 1  ;;  %v4720_v34 = vld [vmem:[%s7798_s3] ss:$0 sm:$0xff] }
  0x44   : > { %8183 = vst [vmem:[#allocation53_spill] sm:$0xff] %v4666_v53  ;;  %v2886_v1 = vsel %vm794_vm2, %v8188_v30, %v8187_v19  ;;  %v1596_v24 = vrot.slane %v1545_v50, 1  ;;  %v4712_v29 = vmul.f32 %v4344_v18, %v4663_v0  ;;  %v1717_v30 = vrot.slane %v1666_v40, 2 }
  0x45   : > { %8184 = vst [vmem:[#allocation54_spill] sm:$0xff] %v4672_v57  ;;  %v2807_v49 = vadd.f32 %v2765_v22, %v2686_v41  ;;  %v1251_v46 = vadd.f32 %v1201_v52, %v1130_v2  ;;  %v1787_v36 = vmul.f32 %v4344_v18, %v4666_v53  ;;  %v8191_v22 = vrot.slane %v4672_v57, 4  ;;  %v4732_v41 = vld [vmem:[%s4326_s11 + $0x70] sm:$0xf] }
  0x46   : > { %8185 = vst [vmem:[#allocation55_spill] sm:$0xff] %v4687_v26  ;;  %v4727_v50 = vmul.f32 %v4384_v37, %v4663_v0  ;;  %v1908_v52 = vmul.f32 %v4384_v37, %v4666_v53  ;;  %v7854_v2 = vrot.slane %v4712_v29, 3  ;;  %v2062_v58 = vmul.f32 %v4428_v59, %v4732_v41 }
  0x47   : > { %8186 = vst [vmem:[#allocation56_spill] sm:$0xff] %v4694_v51  ;;  %v2928_v44 = vadd.f32 %v2886_v1, %v2807_v49  ;;  %v1443_v23 = vsel %vm916_vm3, %v8191_v22, %v1442_v42  ;;  %v1372_v40 = vadd.f32 %v1322_v55, %v1251_v46  ;;  %v1510_v1 = vmul.f32 %v4338_v15, %v4663_v0 }
  0x48   : > { %8189 = vst [vmem:[#allocation57_spill] sm:$0xff] %v4712_v29  ;;  %v1838_v49 = vrot.slane %v1787_v36, 3  ;;  %v1597_v42 = vsel %vm550_vm0, %v7852_v39, %v1596_v24  ;;  %v4742_v22 = vmul.f32 %v4428_v59, %v4336_v14  ;;  %v8195_v55 = vrot.slane %v4694_v51, 2  ;;  %v4781_v29 = vld [vmem:[%s4326_s11 + $0x88] sm:$0xf] }
  0x49   : > { %8190 = vst [vmem:[#allocation58_spill] sm:$0xff] %v4720_v34  ;;  %v3049_v48 = vadd.f32 %v3007_v20, %v2928_v44  ;;  %v1493_v19 = vadd.f32 %v1443_v23, %v1372_v40  ;;  %v4751_v36 = vmul.f32 %v4432_v63, %v4336_v14  ;;  %v2183_v20 = vmul.f32 %v4432_v63, %v4732_v41 }
  0x4a   : > { %8192 = vst [vmem:[#allocation59_spill] sm:$0xff] %v4727_v50  ;;  %v1718_v46 = vsel %vm672_vm1, %v8195_v55, %v1717_v30  ;;  %v1959_v39 = vrot.slane %v1908_v52, 4  ;;  %v2027_v23 = vmul.f32 %v4399_v45, %v4336_v14  ;;  %v1839_v30 = vsel %vm794_vm2, %v7854_v2, %v1838_v49 }
  0x4b   : > { %8193 = vst [vmem:[#allocation60_spill] sm:$0xff] %v4732_v41  ;;  %v4756_v24 = vadd.f32 %v4720_v34, %v3049_v48  ;;  %v1526_v40 = vadd.f32 %v1510_v1, %v1493_v19  ;;  %v4767_v51 = vmul.f32 %v4492_v35, %v4336_v14  ;;  %v2113_v48 = vrot.slane %v2062_v58, 1 }
  0x4c   : > { %8194 = vst [vmem:[#allocation61_spill] sm:$0xff] %v4742_v22  ;;  %v2304_v52 = vmul.f32 %v4492_v35, %v4732_v41  ;;  %v4774_v44 = vmul.f32 %v4499_v56, %v4336_v14  ;;  %v2425_v19 = vmul.f32 %v4499_v56, %v4732_v41  ;;  %v2234_v2 = vrot.slane %v2183_v20, 2 }
  0x4d   : > { %8196 = vst [vmem:[#allocation62_spill] sm:$0xff] %v4751_v36  ;;  %3093 = vadd.xlane.f32.xlu0 %v4756_v24  ;;  %v1647_v1 = vadd.f32 %v1597_v42, %v1526_v40  ;;  %v4786_v33 = vmul.f32 %v4529_v38, %v4370_v28  ;;  %v2579_v42 = vmul.f32 %v4529_v38, %v4781_v29  ;;  %v8204_v58 = vrot.slane %v4742_v22, 1 }
  0x4e   : > { %8197 = vst [vmem:[#allocation63_spill] sm:$0xff] %v4756_v24  ;;  %v2355_v26 = vrot.slane %v2304_v52, 3  ;;  %v2476_v57 = vrot.slane %v2425_v19, 4  ;;  %v4792_v20 = vmul.f32 %v4532_v32, %v4370_v28  ;;  %v2700_v40 = vmul.f32 %v4532_v32, %v4781_v29 }
  0x4f   : > { %8198 = vst [vmem:[#allocation64_spill] sm:$0xff] %v4767_v51  ;;  %v1768_v62 = vadd.f32 %v1718_v46, %v1647_v1  ;;  %v8203_v52 = vrot.slane %v4727_v50, 4  ;;  %v2114_v55 = vsel %vm550_vm0, %v8204_v58, %v2113_v48  ;;  %v4805_v1 = vmul.f32 %v4534_v61, %v4370_v28 }
  0x50   : > { %8199 = vst [vmem:[#allocation65_spill] sm:$0xff] %v4774_v44  ;;  %v2630_v53 = vrot.slane %v2579_v42, 1  ;;  %v7868_v27 = vrot.slane %v4792_v20, 2  ;;  %v2751_v43 = vrot.slane %v2700_v40, 2  ;;  %v8206_v50 = vrot.slane %v4751_v36, 2  ;;  %v430_v36 = vld [vmem:[%s4326_s11 + $0x18] sm:$0xff] }
  0x51   : > { %8200 = vst [vmem:[#allocation66_spill] sm:$0xff] %v4781_v29  ;;  %v1960_v19 = vsel %vm916_vm3, %v8203_v52, %v1959_v39  ;;  %v1889_v49 = vadd.f32 %v1839_v30, %v1768_v62  ;;  %v8207_v52 = vrot.slane %v4767_v51, 3  ;;  %v2544_v58 = vmul.f32 %v4527_v60, %v4370_v28  ;;  %v4822_v62 = vld [vmem:[%s4326_s11 + $0x8] sm:$0xff] }
  0x52   : > { %8201 = vst [vmem:[#allocation67_spill] sm:$0xff] %v4786_v33  ;;  %v2235_v39 = vsel %vm672_vm1, %v8206_v50, %v2234_v2  ;;  %v4819_v46 = vmul.f32 %v4534_v61, %v4781_v29  ;;  %v8209_v42 = vrot.slane %v4774_v44, 4  ;;  %v4830_v2 = vmul.f32 %v4557_v47, %v4370_v28 }
  0x53   : > { %8202 = vst [vmem:[#allocation68_spill] sm:$0xff] %v4792_v20  ;;  %v2356_v48 = vsel %vm794_vm2, %v8207_v52, %v2355_v26  ;;  %v2010_v30 = vadd.f32 %v1960_v19, %v1889_v49  ;;  %v8211_v26 = vrot.slane %v4786_v33, 1  ;;  %v2752_v51 = vsel %vm672_vm1, %v7868_v27, %v2751_v43 }
  0x54   : > { %8205 = vst [vmem:[#allocation69_spill] sm:$0xff] %v4805_v1  ;;  %v2477_v40 = vsel %vm916_vm3, %v8209_v42, %v2476_v57  ;;  %v4840_v49 = vmul.f32 %v4557_v47, %v4781_v29  ;;  %v502_v57 = vmul.f32 %v4309_v4, %v427_v54  ;;  %v4845_v42 = vmul.f32 %v4309_v4, %v4822_v62 }
  0x55   : > { %8208 = vst [vmem:[#allocation70_spill] sm:$0xff] %v4822_v62  ;;  %v2631_v52 = vsel %vm550_vm0, %v8211_v26, %v2630_v53  ;;  %v2043_v19 = vadd.f32 %v2027_v23, %v2010_v30  ;;  %v624_v50 = vmul.f32 %v4311_v5, %v427_v54  ;;  %v4850_v53 = vmul.f32 %v4311_v5, %v4822_v62 }
  0x56   : > { %8210 = vst [vmem:[#allocation71_spill] sm:$0xff] %v4830_v2  ;;  %v2872_v26 = vrot.slane %v4819_v46, 3  ;;  %v469_v43 = vmul.f32 %v4307_v3, %v427_v54  ;;  %v551_v27 = vrot.slane %v502_v57, 1  ;;  %v746_v20 = vmul.f32 %v4313_v6, %v427_v54 }
  0x57   : > { %v2164_v33 = vadd.f32 %v2114_v55, %v2043_v19  ;;  %v7884_v23 = vrot.slane %v4845_v42, 1  ;;  %v673_v30 = vrot.slane %v624_v50, 2  ;;  %v7883_v44 = vrot.slane %v4850_v53, 2  ;;  %v433_v55 = vld [vmem:[%s4326_s11 + $0x30] sm:$0xff] }
  0x58   : > { %v4860_v22 = vmul.f32 %v4313_v6, %v4822_v62  ;;  %v795_v24 = vrot.slane %v746_v20, 3  ;;  %v868_v28 = vmul.f32 %v4315_v7, %v427_v54  ;;  %v4865_v46 = vmul.f32 %v4315_v7, %v4822_v62 }
  0x59   : > { %v2285_v57 = vadd.f32 %v2235_v39, %v2164_v33  ;;  %v553_v50 = vsel %vm550_vm0, %v551_v27, %v7884_v23  ;;  %v675_v19 = vsel %vm672_vm1, %v673_v30, %v7883_v44  ;;  %v1023_v62 = vmul.f32 %v4322_v9, %v430_v36 }
  0x5a   : > { %8212 = vst [vmem:[#allocation72_spill] sm:$0xff] %v4860_v22  ;;  %v607_v21 = vadd.f32 %v553_v50, %v469_v43  ;;  %v7885_v20 = vrot.slane %v4860_v22, 3  ;;  %v917_v29 = vrot.slane %v868_v28, 4  ;;  %v7887_v54 = vrot.slane %v4865_v46, 4 }
  0x5b   : > { %v2406_v6 = vadd.f32 %v2356_v48, %v2285_v57  ;;  %v4879_v33 = vmul.f32 %v4322_v9, %v4560_v25  ;;  %v1144_v27 = vmul.f32 %v4324_v10, %v430_v36  ;;  %v990_v30 = vmul.f32 %v4320_v8, %v430_v36 }
  0x5c   : > { %v729_v39 = vadd.f32 %v675_v19, %v607_v21  ;;  %v797_v43 = vsel %vm794_vm2, %v795_v24, %v7885_v20  ;;  %v4888_v28 = vmul.f32 %v4324_v10, %v4560_v25  ;;  %v919_v57 = vsel %vm916_vm3, %v917_v29, %v7887_v54 }
  0x5d   : > { %8213 = vst [vmem:[#allocation73_spill] sm:$0xff] %v4879_v33  ;;  %v2527_v48 = vadd.f32 %v2477_v40, %v2406_v6  ;;  %v1071_v50 = vrot.slane %v1023_v62, 1  ;;  %v7889_v44 = vrot.slane %v4879_v33, 1  ;;  %v1192_v21 = vrot.slane %v1144_v27, 2 }
  0x5e   : > { %8214 = vst [vmem:[#allocation74_spill] sm:$0xff] %v4888_v28  ;;  %v851_v23 = vadd.f32 %v797_v43, %v729_v39  ;;  %v1265_v19 = vmul.f32 %v4328_v11, %v430_v36  ;;  %v4897_v24 = vmul.f32 %v4328_v11, %v4560_v25  ;;  %v1386_v6 = vmul.f32 %v4330_v12, %v430_v36 }
  0x5f   : > { %v2560_v20 = vadd.f32 %v2544_v58, %v2527_v48  ;;  %v4904_v29 = vmul.f32 %v4330_v12, %v4560_v25  ;;  %v2993_v62 = vrot.slane %v4840_v49, 4  ;;  %v1073_v27 = vsel %vm550_vm0, %v1071_v50, %v7889_v44 }
  0x60   : > { %8215 = vst [vmem:[#allocation75_spill] sm:$0xff] %v4897_v24  ;;  %v973_v40 = vadd.f32 %v919_v57, %v851_v23  ;;  %v1313_v39 = vrot.slane %v1265_v19, 3  ;;  %v7891_v58 = vrot.slane %v4897_v24, 3  ;;  %v1434_v48 = vrot.slane %v1386_v6, 4 }
  0x61   : > { %8216 = vst [vmem:[#allocation76_spill] sm:$0xff] %v4904_v29  ;;  %v2681_v43 = vadd.f32 %v2631_v52, %v2560_v20  ;;  %v7892_v54 = vrot.slane %v4904_v29, 4  ;;  %v8217_v36 = vrot.slane %v4805_v1, 3  ;;  %v1540_v49 = vmul.f32 %v4340_v16, %v433_v55  ;;  %v8240_v29 = vld [vmem:[#allocation13_spill] sm:$0xff] }
  0x62   : > { %v1006_v25 = vadd.f32 %v990_v30, %v973_v40  ;;  %v4918_v23 = vmul.f32 %v4340_v16, %v4613_v31  ;;  %v8219_v52 = vrot.slane %v4888_v28, 2  ;;  %v1661_v50 = vmul.f32 %v4342_v17, %v433_v55  ;;  %v8242_v28 = vld [vmem:[#allocation14_spill] sm:$0xff] }
  0x63   : > { %v2873_v22 = vsel %vm794_vm2, %v8217_v36, %v2872_v26  ;;  %v2802_v57 = vadd.f32 %v2752_v51, %v2681_v43  ;;  %v4926_v19 = vmul.f32 %v4342_v17, %v4613_v31  ;;  %v8221_v26 = vrot.slane %v4830_v2, 4  ;;  %v4934_v43 = vld [vmem:[%s4326_s11 + $0x48] sm:$0xff] }
  0x64   : > { %8218 = vst [vmem:[#allocation77_spill] sm:$0xff] %v4918_v23  ;;  %v1194_v20 = vsel %vm672_vm1, %v1192_v21, %v8219_v52  ;;  %v1127_v6 = vadd.f32 %v1073_v27, %v1006_v25  ;;  %v1507_v40 = vmul.f32 %v4338_v15, %v433_v55  ;;  %v1782_v36 = vmul.f32 %v4344_v18, %v433_v55 }
  0x65   : > { %8220 = vst [vmem:[#allocation78_spill] sm:$0xff] %v4926_v19  ;;  %v2994_v30 = vsel %vm916_vm3, %v8221_v26, %v2993_v62  ;;  %v2923_v51 = vadd.f32 %v2873_v22, %v2802_v57  ;;  %v1315_v21 = vsel %vm794_vm2, %v1313_v39, %v7891_v58  ;;  %v1436_v52 = vsel %vm916_vm3, %v1434_v48, %v7892_v54 }
  0x66   : > { %8222 = vst [vmem:[#allocation79_spill] sm:$0xff] %v4934_v43  ;;  %v4944_v44 = vmul.f32 %v4344_v18, %v4613_v31  ;;  %v1248_v25 = vadd.f32 %v1194_v20, %v1127_v6  ;;  %v1588_v62 = vrot.slane %v1540_v49, 1  ;;  %v7893_v27 = vrot.slane %v4918_v23, 1 }
  0x67   : > { %v1903_v22 = vmul.f32 %v4384_v37, %v433_v55  ;;  %v3044_v57 = vadd.f32 %v2994_v30, %v2923_v51  ;;  %v1709_v26 = vrot.slane %v1661_v50, 2  ;;  %v7894_v2 = vrot.slane %v4926_v19, 2 }
  0x68   : > { %8223 = vst [vmem:[#allocation80_spill] sm:$0xff] %v4944_v44  ;;  %v4951_v39 = vmul.f32 %v4384_v37, %v4613_v31  ;;  %v1369_v58 = vadd.f32 %v1315_v21, %v1248_v25  ;;  %v1830_v48 = vrot.slane %v1782_v36, 3  ;;  %v7900_v54 = vrot.slane %v4944_v44, 3 }
  0x69   : > { %v2057_v20 = vmul.f32 %v4428_v59, %v4934_v43  ;;  %v4957_v49 = vadd.f32 %v4720_v34, %v3044_v57  ;;  %v1951_v6 = vrot.slane %v1903_v22, 4  ;;  %v4962_v50 = vmul.f32 %v4428_v59, %v4663_v0 }
  0x6a   : > { %8224 = vst [vmem:[#allocation81_spill] sm:$0xff] %v4951_v39  ;;  %v1490_v30 = vadd.f32 %v1436_v52, %v1369_v58  ;;  %v1590_v36 = vsel %vm550_vm0, %v1588_v62, %v7893_v27  ;;  %v2178_v51 = vmul.f32 %v4432_v63, %v4934_v43  ;;  %v4971_v21 = vmul.f32 %v4432_v63, %v4663_v0 }
  0x6b   : > { %8225 = vst [vmem:[#allocation82_spill] sm:$0xff] %v4957_v49  ;;  %3083 = vadd.xlane.f32.xlu1 %v4957_v49  ;;  %v1711_v25 = vsel %vm672_vm1, %v1709_v26, %v7894_v2  ;;  %v2024_v58 = vmul.f32 %v4399_v45, %v4934_v43  ;;  %v2299_v52 = vmul.f32 %v4492_v35, %v4934_v43  ;;  %v2105_v27 = vrot.slane %v2057_v20, 1 }
  0x6c   : > { %8226 = vst [vmem:[#allocation83_spill] sm:$0xff] %v4962_v50  ;;  %v4983_v62 = vmul.f32 %v4492_v35, %v4663_v0  ;;  %v1523_v22 = vadd.f32 %v1507_v40, %v1490_v30  ;;  %v1832_v57 = vsel %vm794_vm2, %v1830_v48, %v7900_v54  ;;  %v2420_v55 = vmul.f32 %v4499_v56, %v4934_v43 }
  0x6d   : > { %8227 = vst [vmem:[#allocation84_spill] sm:$0xff] %v4971_v21  ;;  %v8229_v26 = vrot.slane %v4951_v39, 4  ;;  %v7906_v49 = vrot.slane %v4962_v50, 1  ;;  %v2226_v1 = vrot.slane %v2178_v51, 2  ;;  %v4996_v19 = vmul.f32 %v4499_v56, %v4663_v0 }
  0x6e   : > { %8228 = vst [vmem:[#allocation85_spill] sm:$0xff] %v4983_v62  ;;  %v1644_v40 = vadd.f32 %v1590_v36, %v1523_v22  ;;  %v7907_v30 = vrot.slane %v4971_v21, 2  ;;  %v2347_v44 = vrot.slane %v2299_v52, 3  ;;  %v2468_v20 = vrot.slane %v2420_v55, 4 }
  0x6f   : > { %v1953_v2 = vsel %vm916_vm3, %v1951_v6, %v8229_v26  ;;  %8230 = vst [vmem:[#allocation86_spill] sm:$0xff] %v4996_v19  ;;  %v2574_v43 = vmul.f32 %v4529_v38, %v4333_v13  ;;  %v5005_v6 = vmul.f32 %v4529_v38, %v4336_v14  ;;  %v2695_v26 = vmul.f32 %v4532_v32, %v4333_v13 }
  0x70   : > { %v1765_v51 = vadd.f32 %v1711_v25, %v1644_v40  ;;  %v5011_v36 = vmul.f32 %v4532_v32, %v4336_v14  ;;  %v2816_v55 = vmul.f32 %v4534_v61, %v4333_v13  ;;  %v2107_v52 = vsel %vm550_vm0, %v2105_v27, %v7906_v49 }
  0x71   : > { %8231 = vst [vmem:[#allocation87_spill] sm:$0xff] %v5005_v6  ;;  %v2622_v22 = vrot.slane %v2574_v43, 1  ;;  %v5021_v25 = vmul.f32 %v4534_v61, %v4336_v14  ;;  %v2228_v48 = vsel %vm672_vm1, %v2226_v1, %v7907_v30  ;;  %v8234_v39 = vrot.slane %v4983_v62, 3 }
  0x72   : > { %8232 = vst [vmem:[#allocation88_spill] sm:$0xff] %v5011_v36  ;;  %v1886_v40 = vadd.f32 %v1832_v57, %v1765_v51  ;;  %v2541_v50 = vmul.f32 %v4527_v60, %v4333_v13  ;;  %v8235_v43 = vrot.slane %v4996_v19, 4  ;;  %v2743_v49 = vrot.slane %v2695_v26, 2  ;;  %v8239_v19 = vld [vmem:[#allocation66_spill] sm:$0xff] }
  0x73   : > { %8233 = vst [vmem:[#allocation89_spill] sm:$0xff] %v5021_v25  ;;  %v2349_v23 = vsel %vm794_vm2, %v2347_v44, %v8234_v39  ;;  %v7919_v54 = vrot.slane %v5011_v36, 2  ;;  %v2937_v57 = vmul.f32 %v4557_v47, %v4333_v13  ;;  %v8236_v1 = vrot.slane %v5005_v6, 1 }
  0x74   : > { %v2470_v27 = vsel %vm916_vm3, %v2468_v20, %v8235_v43  ;;  %v2007_v51 = vadd.f32 %v1953_v2, %v1886_v40  ;;  %v2864_v62 = vrot.slane %v2816_v55, 3  ;;  %v516_v44 = vmul.f32 %v4309_v4, %v4732_v41 }
  0x75   : > { %v2624_v30 = vsel %vm550_vm0, %v2622_v22, %v8236_v1  ;;  %v5045_v20 = vmul.f32 %v4557_v47, %v4336_v14  ;;  %v478_v26 = vmul.f32 %v4307_v3, %v4336_v14  ;;  %v638_v13 = vmul.f32 %v4311_v5, %v4732_v41  ;;  %v8238_v22 = vld [vmem:[#allocation5_spill] sm:$0xff] }
  0x76   : > { %v2040_v2 = vadd.f32 %v2024_v58, %v2007_v51  ;;  %v574_v40 = vrot.slane %v516_v44, 1  ;;  %v760_v55 = vmul.f32 %v8238_v22, %v4732_v41  ;;  %v882_v43 = vmul.f32 %v4315_v7, %v4732_v41 }
  0x77   : > { %8237 = vst [vmem:[#allocation90_spill] sm:$0xff] %v5045_v20  ;;  %v2745_v1 = vsel %vm672_vm1, %v2743_v49, %v7919_v54  ;;  %v2985_v39 = vrot.slane %v2937_v57, 4  ;;  %v696_v6 = vrot.slane %v638_v13, 2  ;;  %v1037_v14 = vmul.f32 %v4322_v9, %v8239_v19  ;;  %v8244_v54 = vld [vmem:[#allocation15_spill] sm:$0xff] }
  0x78   : > { %v2161_v21 = vadd.f32 %v2107_v52, %v2040_v2  ;;  %v8241_v58 = vrot.slane %v8240_v29, 1  ;;  %v818_v44 = vrot.slane %v760_v55, 3  ;;  %v940_v0 = vrot.slane %v882_v43, 4  ;;  %v5078_v55 = vld [vmem:[%s4326_s11 + $0xa0] sm:$0xf] }
  0x79   : > { %v7921_v24 = vrot.slane %v5045_v20, 4  ;;  %v8243_v36 = vrot.slane %v8242_v28, 2  ;;  %v1158_v57 = vmul.f32 %v4324_v10, %v8239_v19  ;;  %v8245_v33 = vrot.slane %v8244_v54, 3  ;;  %8247 = vst [vmem:[#allocation66_spill] sm:$0xff] %v5078_v55 }
  0x7a   : > { %v575_v51 = vsel %vm550_vm0, %v8241_v58, %v574_v40  ;;  %v2282_v13 = vadd.f32 %v2228_v48, %v2161_v21  ;;  %v1094_v29 = vrot.slane %v1037_v14, 1  ;;  %v1279_v2 = vmul.f32 %v4328_v11, %v8239_v19 }
  0x7b   : > { %v616_v41 = vadd.f32 %v575_v51, %v478_v26  ;;  %v697_v49 = vsel %vm672_vm1, %v8243_v36, %v696_v6  ;;  %v819_v52 = vsel %vm794_vm2, %v8245_v33, %v818_v44  ;;  %v8246_v40 = vrot.slane %v5021_v25, 3  ;;  %v8248_v6 = vld [vmem:[#allocation17_spill] sm:$0xff]  ;;  %v8250_v51 = vld [vmem:[#allocation16_spill] sm:$0xff] }
  0x7c   : > { %v8249_v36 = vrot.slane %v8248_v6, 4  ;;  %v1400_v54 = vmul.f32 %v4330_v12, %v8239_v19  ;;  %v2403_v21 = vadd.f32 %v2349_v23, %v2282_v13  ;;  %v1215_v33 = vrot.slane %v1158_v57, 2  ;;  %v8251_v23 = vld [vmem:[#allocation19_spill] sm:$0xff] }
  0x7d   : > { %v2866_v26 = vsel %vm794_vm2, %v2864_v62, %v8246_v40  ;;  %v738_v28 = vadd.f32 %v697_v49, %v616_v41  ;;  %v1336_v48 = vrot.slane %v1279_v2, 3  ;;  %v1554_v14 = vmul.f32 %v4340_v16, %v5078_v55  ;;  %v8253_v40 = vld [vmem:[#allocation22_spill] sm:$0xff] }
  0x7e   : > { %v941_v43 = vsel %vm916_vm3, %v8249_v36, %v940_v0  ;;  %v999_v62 = vmul.f32 %v4320_v8, %v8250_v51  ;;  %v1457_v44 = vrot.slane %v1400_v54, 4  ;;  %v1675_v41 = vmul.f32 %v4342_v17, %v5078_v55  ;;  %v5104_v54 = vld [vmem:[%s4326_s11 + $0xb8] sm:$0xf] }
  0x7f   : > { %v860_v58 = vadd.f32 %v819_v52, %v738_v28  ;;  %v2524_v49 = vadd.f32 %v2470_v27, %v2403_v21  ;;  %v2987_v0 = vsel %vm916_vm3, %v2985_v39, %v7921_v24  ;;  %v8252_v57 = vrot.slane %v8251_v23, 1  ;;  %8254 = vst [vmem:[#allocation13_spill] sm:$0xff] %v5104_v54  ;;  %v8255_v21 = vld [vmem:[#allocation20_spill] sm:$0xff]  ;;  %v8257_v23 = vld [vmem:[#allocation21_spill] sm:$0xff]  ;;  %v8259_v24 = vld [vmem:[#allocation23_spill] sm:$0xff] }
  0x80   : > { %v1796_v2 = vmul.f32 %v4344_v18, %v5078_v55  ;;  %v1516_v28 = vmul.f32 %v4338_v15, %v8253_v40  ;;  %v1611_v6 = vrot.slane %v1554_v14, 1  ;;  %v1917_v36 = vmul.f32 %v4384_v37, %v5078_v55 }
  0x81   : > { %v1095_v13 = vsel %vm550_vm0, %v8252_v57, %v1094_v29  ;;  %v982_v52 = vadd.f32 %v941_v43, %v860_v58  ;;  %v2557_v27 = vadd.f32 %v2541_v50, %v2524_v49  ;;  %v8256_v39 = vrot.slane %v8255_v21, 2 }
  0x82   : > { %v8258_v29 = vrot.slane %v8257_v23, 3  ;;  %v1732_v43 = vrot.slane %v1675_v41, 2  ;;  %v8260_v40 = vrot.slane %v8259_v24, 4  ;;  %v1853_v20 = vrot.slane %v1796_v2, 3  ;;  %v8266_v23 = vld [vmem:[#allocation27_spill] sm:$0xff] }
  0x83   : > { %v1216_v51 = vsel %vm672_vm1, %v8256_v39, %v1215_v33  ;;  %v1015_v58 = vadd.f32 %v999_v62, %v982_v52  ;;  %v2071_v50 = vmul.f32 %v4428_v59, %v5104_v54  ;;  %v2678_v49 = vadd.f32 %v2624_v30, %v2557_v27  ;;  %v5127_v52 = vld [vmem:[%s4326_s11 + $0xd0] sm:$0xf]  ;;  %v8264_v30 = vld [vmem:[#allocation25_spill] sm:$0xff] }
  0x84   : > { %v1337_v57 = vsel %vm794_vm2, %v8258_v29, %v1336_v48  ;;  %v1458_v14 = vsel %vm916_vm3, %v8260_v40, %v1457_v44  ;;  %v1974_v25 = vrot.slane %v1917_v36, 4  ;;  %v2192_v33 = vmul.f32 %v4432_v63, %v5104_v54  ;;  %v8261_v48 = vld [vmem:[#allocation24_spill] sm:$0xff]  ;;  %8263 = vst [vmem:[#allocation14_spill] sm:$0xff] %v5127_v52 }
  0x85   : > { %v2313_v21 = vmul.f32 %v4492_v35, %v5104_v54  ;;  %v1136_v39 = vadd.f32 %v1095_v13, %v1015_v58  ;;  %v8262_v41 = vrot.slane %v8261_v48, 1  ;;  %v2128_v24 = vrot.slane %v2071_v50, 1 }
  0x86   : > { %v2434_v44 = vmul.f32 %v4499_v56, %v5104_v54  ;;  %v2799_v2 = vadd.f32 %v2745_v1, %v2678_v49  ;;  %v8265_v36 = vrot.slane %v8264_v30, 2  ;;  %v5134_v29 = vmul.f32 %v4399_v45, %v8266_v23  ;;  %v8267_v1 = vld [vmem:[#allocation26_spill] sm:$0xff]  ;;  %v8269_v30 = vld [vmem:[#allocation28_spill] sm:$0xff] }
  0x87   : > { %v1612_v62 = vsel %vm550_vm0, %v8262_v41, %v1611_v6  ;;  %v2249_v13 = vrot.slane %v2192_v33, 2  ;;  %v1257_v58 = vadd.f32 %v1216_v51, %v1136_v39  ;;  %v2370_v40 = vrot.slane %v2313_v21, 3  ;;  %v8271_v33 = vld [vmem:[#allocation29_spill] sm:$0xff]  ;;  %v8273_v39 = vld [vmem:[#allocation34_spill] sm:$0xff] }
  0x88   : > { %v1733_v27 = vsel %vm672_vm1, %v8265_v36, %v1732_v43  ;;  %v2491_v6 = vrot.slane %v2434_v44, 4  ;;  %v2588_v50 = vmul.f32 %v4529_v38, %v5127_v52  ;;  %v2920_v48 = vadd.f32 %v2866_v26, %v2799_v2  ;;  %v429_v2 = vld [vmem:[%s4326_s11 + $0x10] sm:$0xf] }
  0x89   : > { %v8268_v49 = vrot.slane %v8267_v1, 3  ;;  %v8270_v54 = vrot.slane %v8269_v30, 4  ;;  %v2709_v36 = vmul.f32 %v4532_v32, %v5127_v52  ;;  %v1378_v23 = vadd.f32 %v1337_v57, %v1257_v58  ;;  %v8274_v1 = vld [vmem:[#allocation30_spill] sm:$0xff]  ;;  %v8276_v58 = vld [vmem:[#allocation32_spill] sm:$0xff] }
  0x8a   : > { %v8272_v51 = vrot.slane %v8271_v33, 1  ;;  %v5153_v26 = vmul.f32 %v4527_v60, %v8273_v39  ;;  %v2645_v44 = vrot.slane %v2588_v50, 1  ;;  %v2951_v57 = vmul.f32 %v4557_v47, %v5127_v52  ;;  %v8278_v50 = vld [vmem:[#allocation33_spill] sm:$0xff] }
  0x8b   : > { %v1854_v41 = vsel %vm794_vm2, %v8268_v49, %v1853_v20  ;;  %v1975_v43 = vsel %vm916_vm3, %v8270_v54, %v1974_v25  ;;  %v3041_v20 = vadd.f32 %v2987_v0, %v2920_v48  ;;  %v8275_v49 = vrot.slane %v8274_v1, 2  ;;  %v8280_v48 = vld [vmem:[#allocation63_spill] sm:$0xff] }
  0x8c   : > { %v5149_v21 = vsel %vm550_vm0, %v8272_v51, %v2128_v24  ;;  %v2830_v54 = vmul.f32 %v4534_v61, %v5127_v52  ;;  %v1499_v24 = vadd.f32 %v1458_v14, %v1378_v23  ;;  %v8277_v30 = vrot.slane %v8276_v58, 3 }
  0x8d   : > { %v5159_v25 = vsel %vm672_vm1, %v8275_v49, %v2249_v13  ;;  %v8279_v51 = vrot.slane %v8278_v50, 4  ;;  %v3133_v13 = vmul.f32 %v8280_v48, %v8280_v48  ;;  %v5178_v39 = vadd.f32 %v4720_v34, %v3041_v20  ;;  %v8282_v49 = vld [vmem:[#allocation70_spill] sm:$0xff] }
  0x8e   : > { %v5168_v33 = vsel %vm794_vm2, %v8277_v30, %v2370_v40  ;;  %v2766_v1 = vrot.slane %v2709_v36, 2  ;;  %v470_v14 = vmul.f32 %v4307_v3, %v8282_v49  ;;  %v504_v23 = vmul.f32 %v4309_v4, %v429_v2  ;;  %v8283_v40 = vld [vmem:[#allocation37_spill] sm:$0xff] }
  0x8f   : > { %v5173_v0 = vsel %vm916_vm3, %v8279_v51, %v2491_v6  ;;  %8281 = vst [vmem:[#allocation15_spill] sm:$0xff] %v5178_v39  ;;  %v1532_v58 = vadd.f32 %v1516_v28, %v1499_v24  ;;  %v8284_v30 = vrot.slane %v8283_v40, 1  ;;  %3157 = vadd.xlane.f32.xlu1 %v3133_v13  ;;  %v626_v6 = vmul.f32 %v4311_v5, %v429_v2  ;;  %v8285_v24 = vld [vmem:[#allocation42_spill] sm:$0xff] }
  0x90   : > { %v748_v51 = vmul.f32 %v8238_v22, %v429_v2  ;;  %3077 = vadd.xlane.f32.xlu2 %v5178_v39  ;;  %v2887_v20 = vrot.slane %v2830_v54, 3  ;;  %v3008_v36 = vrot.slane %v2951_v57, 4  ;;  %v554_v48 = vrot.slane %v504_v23, 1  ;;  %v8287_v23 = vld [vmem:[#allocation38_spill] sm:$0xff] }
  0x91   : > { %v5186_v50 = vsel %vm550_vm0, %v8284_v30, %v2645_v44  ;;  %v870_v49 = vmul.f32 %v4315_v7, %v429_v2  ;;  %v1653_v52 = vadd.f32 %v1612_v62, %v1532_v58  ;;  %v676_v34 = vrot.slane %v626_v6, 2 }
  0x92   : > { %v798_v28 = vrot.slane %v748_v51, 3  ;;  %v1025_v40 = vmul.f32 %v4322_v9, %v8285_v24  ;;  %v8286_v44 = vrot.slane %v4845_v42, 1  ;;  %v1146_v55 = vmul.f32 %v4324_v10, %v8285_v24  ;;  %v8290_v51 = vld [vmem:[#allocation39_spill] sm:$0xff] }
  0x93   : > { %v920_v30 = vrot.slane %v870_v49, 4  ;;  %v1267_v54 = vmul.f32 %v4328_v11, %v8285_v24  ;;  %v1774_v57 = vadd.f32 %v1733_v27, %v1653_v52  ;;  %v8288_v2 = vrot.slane %v8287_v23, 2  ;;  %v8294_v52 = vld [vmem:[#allocation72_spill] sm:$0xff] }
  0x94   : > { %v555_v13 = vsel %vm550_vm0, %v8286_v44, %v554_v48  ;;  %v8289_v6 = vrot.slane %v4850_v53, 2  ;;  %v8291_v48 = vrot.slane %v8290_v51, 3  ;;  %v8292_v44 = vld [vmem:[#allocation44_spill] sm:$0xff]  ;;  %v8295_v27 = vrot.slane %v8294_v52, 3  ;;  %v8301_v52 = vld [vmem:[#allocation74_spill] sm:$0xff] }
  0x95   : > { %v5204_v62 = vsel %vm672_vm1, %v8288_v2, %v2766_v1  ;;  %v608_v58 = vadd.f32 %v555_v13, %v470_v14  ;;  %v8293_v39 = vrot.slane %v8292_v44, 4  ;;  %v1074_v23 = vrot.slane %v1025_v40, 1 }
  0x96   : > { %v677_v42 = vsel %vm672_vm1, %v8289_v6, %v676_v34  ;;  %v5212_v49 = vsel %vm794_vm2, %v8291_v48, %v2887_v20  ;;  %v799_v1 = vsel %vm794_vm2, %v8295_v27, %v798_v28  ;;  %v1895_v14 = vadd.f32 %v1854_v41, %v1774_v57  ;;  %v8297_v6 = vld [vmem:[#allocation41_spill] sm:$0xff] }
  0x97   : > { %v5217_v11 = vsel %vm916_vm3, %v8293_v39, %v3008_v36  ;;  %v730_v13 = vadd.f32 %v677_v42, %v608_v58  ;;  %v1195_v53 = vrot.slane %v1146_v55, 2  ;;  %v1388_v34 = vmul.f32 %v4330_v12, %v8285_v24  ;;  %v8298_v36 = vld [vmem:[#allocation48_spill] sm:$0xff]  ;;  %v8299_v58 = vld [vmem:[#allocation73_spill] sm:$0xff] }
  0x98   : > { %v8296_v2 = vrot.slane %v4865_v46, 4  ;;  %v991_v51 = vmul.f32 %v4320_v8, %v8297_v6  ;;  %v1316_v39 = vrot.slane %v1267_v54, 3  ;;  %v1542_v48 = vmul.f32 %v4340_v16, %v8298_v36 }
  0x99   : > { %v2016_v44 = vadd.f32 %v1975_v43, %v1895_v14  ;;  %v852_v28 = vadd.f32 %v799_v1, %v730_v13  ;;  %v1508_v41 = vmul.f32 %v4338_v15, %v4613_v31  ;;  %v1663_v55 = vmul.f32 %v4342_v17, %v8298_v36  ;;  %v8303_v1 = vld [vmem:[#allocation75_spill] sm:$0xff] }
  0x9a   : > { %v921_v20 = vsel %vm916_vm3, %v8296_v2, %v920_v30  ;;  %v1437_v24 = vrot.slane %v1388_v34, 4  ;;  %v1591_v40 = vrot.slane %v1542_v48, 1  ;;  %v1784_v46 = vmul.f32 %v4344_v18, %v8298_v36  ;;  %v8305_v2 = vld [vmem:[#allocation52_spill] sm:$0xff] }
  0x9b   : > { %v1905_v30 = vmul.f32 %v4384_v37, %v8298_v36  ;;  %v2049_v54 = vadd.f32 %v5134_v29, %v2016_v44  ;;  %v974_v57 = vadd.f32 %v921_v20, %v852_v28  ;;  %v8300_v43 = vrot.slane %v8299_v58, 1  ;;  %v8306_v36 = vld [vmem:[#allocation53_spill] sm:$0xff] }
  0x9c   : > { %v8302_v31 = vrot.slane %v8301_v52, 2  ;;  %v8304_v14 = vrot.slane %v8303_v1, 3  ;;  %v1712_v34 = vrot.slane %v1663_v55, 2  ;;  %v5251_v6 = vmul.f32 %v4399_v45, %v8305_v2 }
  0x9d   : > { %v1075_v42 = vsel %vm550_vm0, %v8300_v43, %v1074_v23  ;;  %v2059_v29 = vmul.f32 %v4428_v59, %v8306_v36  ;;  %v2170_v20 = vadd.f32 %v5149_v21, %v2049_v54  ;;  %v1007_v48 = vadd.f32 %v991_v51, %v974_v57  ;;  %v8311_v54 = vld [vmem:[#allocation78_spill] sm:$0xff] }
  0x9e   : > { %v1196_v27 = vsel %vm672_vm1, %v8302_v31, %v1195_v53  ;;  %v1317_v13 = vsel %vm794_vm2, %v8304_v14, %v1316_v39  ;;  %v1833_v23 = vrot.slane %v1784_v46, 3  ;;  %v2180_v44 = vmul.f32 %v4432_v63, %v8306_v36  ;;  %v8307_v53 = vld [vmem:[#allocation76_spill] sm:$0xff]  ;;  %v8309_v39 = vld [vmem:[#allocation77_spill] sm:$0xff] }
  0x9f   : > { %v8308_v28 = vrot.slane %v8307_v53, 4  ;;  %v8310_v55 = vrot.slane %v8309_v39, 1  ;;  %v1954_v52 = vrot.slane %v1905_v30, 4  ;;  %v2301_v31 = vmul.f32 %v4492_v35, %v8306_v36  ;;  %v8313_v53 = vld [vmem:[#allocation60_spill] sm:$0xff] }
  0xa0   : > { %v2291_v1 = vadd.f32 %v5159_v25, %v2170_v20  ;;  %v1128_v21 = vadd.f32 %v1075_v42, %v1007_v48  ;;  %v2108_v51 = vrot.slane %v2059_v29, 1  ;;  %v2422_v46 = vmul.f32 %v4499_v56, %v8306_v36  ;;  %v8314_v39 = vld [vmem:[#allocation80_spill] sm:$0xff]  ;;  %v8316_v20 = vld [vmem:[#allocation81_spill] sm:$0xff] }
  0xa1   : > { %v1438_v58 = vsel %vm916_vm3, %v8308_v28, %v1437_v24  ;;  %v1592_v43 = vsel %vm550_vm0, %v8310_v55, %v1591_v40  ;;  %v8312_v57 = vrot.slane %v8311_v54, 2  ;;  %v2229_v14 = vrot.slane %v2180_v44, 2 }
  0xa2   : > { %v2350_v2 = vrot.slane %v2301_v31, 3  ;;  %v2576_v40 = vmul.f32 %v4529_v38, %v8313_v53  ;;  %v2412_v30 = vadd.f32 %v5168_v33, %v2291_v1  ;;  %v1249_v28 = vadd.f32 %v1196_v27, %v1128_v21  ;;  %v8318_v31 = vld [vmem:[#allocation83_spill] sm:$0xff] }
  0xa3   : > { %v1713_v24 = vsel %vm672_vm1, %v8312_v57, %v1712_v34  ;;  %v8315_v25 = vrot.slane %v8314_v39, 3  ;;  %v2471_v29 = vrot.slane %v2422_v46, 4  ;;  %v8317_v36 = vrot.slane %v8316_v20, 4  ;;  %v4120_v21 = vld [vmem:[%s4326_s11 + $0x68] sm:$0xff]  ;;  %v8320_v46 = vld [vmem:[#allocation84_spill] sm:$0xff] }
  0xa4   : > { %v2625_v55 = vrot.slane %v2576_v40, 1  ;;  %v5283_v34 = vmul.f32 %v4532_v32, %v8313_v53  ;;  %v5287_v44 = vmul.f32 %v4534_v61, %v8313_v53  ;;  %v2533_v33 = vadd.f32 %v5173_v0, %v2412_v30  ;;  %v8322_v40 = vld [vmem:[#allocation85_spill] sm:$0xff]  ;;  %v8324_v0 = vld [vmem:[#allocation86_spill] sm:$0xff] }
  0xa5   : > { %v1834_v42 = vsel %vm794_vm2, %v8315_v25, %v1833_v23  ;;  %v1955_v48 = vsel %vm916_vm3, %v8317_v36, %v1954_v52  ;;  %v1370_v27 = vadd.f32 %v1317_v13, %v1249_v28  ;;  %v8319_v23 = vrot.slane %v8318_v31, 1  ;;  %v8326_v36 = vld [vmem:[#allocation87_spill] sm:$0xff] }
  0xa6   : > { %v5297_v52 = vmul.f32 %v4120_v21, %v4527_v60  ;;  %v8321_v54 = vrot.slane %v8320_v46, 2  ;;  %v8323_v39 = vrot.slane %v8322_v40, 3  ;;  %v8325_v13 = vrot.slane %v8324_v0, 4  ;;  %v5362_v21 = vld [vmem:[%s4326_s11 + $0x98] sm:$0xff] }
  0xa7   : > { %v5293_v1 = vsel %vm550_vm0, %v8319_v23, %v2108_v51  ;;  %v5316_v51 = vmul.f32 %v4557_v47, %v8313_v53  ;;  %v2566_v28 = vadd.f32 %v5153_v26, %v2533_v33  ;;  %v1491_v20 = vadd.f32 %v1438_v58, %v1370_v27  ;;  %v4121_v23 = vld [vmem:[%s4326_s11 + $0x80] sm:$0xff]  ;;  %8328 = vst [vmem:[#allocation17_spill] sm:$0xff] %v5362_v21 }
  0xa8   : > { %v5302_v57 = vsel %vm672_vm1, %v8321_v54, %v2229_v14  ;;  %v5307_v25 = vsel %vm794_vm2, %v8323_v39, %v2350_v2  ;;  %v5312_v30 = vsel %vm916_vm3, %v8325_v13, %v2471_v29  ;;  %v8327_v14 = vrot.slane %v8326_v36, 1 }
  0xa9   : > { %v5326_v2 = vmul.f32 %v4121_v23, %v4309_v4  ;;  %v519_v53 = vmul.f32 %v4309_v4, %v8239_v19  ;;  %v5333_v46 = vmul.f32 %v4121_v23, %v4311_v5  ;;  %v2687_v26 = vadd.f32 %v5186_v50, %v2566_v28 }
  0xaa   : > { %v5322_v31 = vsel %vm550_vm0, %v8327_v14, %v2625_v55  ;;  %v1524_v58 = vadd.f32 %v1508_v41, %v1491_v20  ;;  %v480_v55 = vmul.f32 %v4121_v23, %v4307_v3  ;;  %v641_v54 = vmul.f32 %v4311_v5, %v8239_v19 }
  0xab   : > { %v7936_v33 = vrot.slane %v5326_v2, 1  ;;  %v579_v27 = vrot.slane %v519_v53, 1  ;;  %v7940_v40 = vrot.slane %v5333_v46, 2  ;;  %v5342_v39 = vmul.f32 %v4121_v23, %v8238_v22 }
  0xac   : > { %v2808_v0 = vadd.f32 %v5204_v62, %v2687_v26  ;;  %v1645_v13 = vadd.f32 %v1592_v43, %v1524_v58  ;;  %v763_v50 = vmul.f32 %v8238_v22, %v8239_v19  ;;  %v5348_v41 = vmul.f32 %v4121_v23, %v4315_v7 }
  0xad   : > { %v580_v28 = vsel %vm550_vm0, %v7936_v33, %v579_v27  ;;  %v701_v20 = vrot.slane %v641_v54, 2  ;;  %v7939_v36 = vrot.slane %v5342_v39, 3  ;;  %v885_v14 = vmul.f32 %v4315_v7, %v8239_v19 }
  0xae   : > { %v2929_v53 = vadd.f32 %v5212_v49, %v2808_v0  ;;  %v1766_v62 = vadd.f32 %v1713_v24, %v1645_v13  ;;  %v618_v43 = vadd.f32 %v580_v28, %v480_v55  ;;  %v823_v26 = vrot.slane %v763_v50, 3  ;;  %v8329_v0 = vld [vmem:[#allocation66_spill] sm:$0xff] }
  0xaf   : > { %v702_v23 = vsel %vm672_vm1, %v7940_v40, %v701_v20  ;;  %v7937_v58 = vrot.slane %v5348_v41, 4  ;;  %v945_v29 = vrot.slane %v885_v14, 4  ;;  %v1001_v27 = vmul.f32 %v5362_v21, %v4320_v8 }
  0xb0   : > { %v3050_v54 = vadd.f32 %v5217_v11, %v2929_v53  ;;  %v1887_v19 = vadd.f32 %v1834_v42, %v1766_v62  ;;  %v740_v33 = vadd.f32 %v702_v23, %v618_v43  ;;  %v824_v49 = vsel %vm794_vm2, %v7939_v36, %v823_v26  ;;  %v8330_v42 = vld [vmem:[#allocation58_spill] sm:$0xff]  ;;  %v5415_v36 = vld [vmem:[%s4326_s11 + $0xb0] sm:$0xff] }
  0xb1   : > { %v946_v24 = vsel %vm916_vm3, %v7937_v58, %v945_v29  ;;  %v5375_v55 = vmul.f32 %v5362_v21, %v4322_v9  ;;  %v1040_v13 = vmul.f32 %v4322_v9, %v8329_v0  ;;  %v5381_v11 = vmul.f32 %v5362_v21, %v4324_v10  ;;  %v8332_v43 = vld [vmem:[#allocation10_spill] sm:$0xff]  ;;  %8335 = vst [vmem:[#allocation20_spill] sm:$0xff] %v5415_v36 }
  0xb2   : > { %v5384_v50 = vadd.f32 %v8330_v42, %v3050_v54  ;;  %v2008_v28 = vadd.f32 %v1955_v48, %v1887_v19  ;;  %v862_v20 = vadd.f32 %v824_v49, %v740_v33  ;;  %v1161_v14 = vmul.f32 %v4324_v10, %v8329_v0 }
  0xb3   : > { %v7938_v29 = vrot.slane %v5375_v55, 1  ;;  %v1099_v53 = vrot.slane %v1040_v13, 1  ;;  %v7941_v62 = vrot.slane %v5381_v11, 2  ;;  %v5392_v26 = vmul.f32 %v5362_v21, %v8332_v43 }
  0xb4   : > { %8331 = vst [vmem:[#allocation16_spill] sm:$0xff] %v5384_v50  ;;  %3095 = vadd.xlane.f32.xlu0 %v5384_v50  ;;  %v2041_v23 = vadd.f32 %v5251_v6, %v2008_v28  ;;  %v984_v54 = vadd.f32 %v946_v24, %v862_v20  ;;  %v1220_v48 = vrot.slane %v1161_v14, 2  ;;  %v1282_v33 = vmul.f32 %v8332_v43, %v8329_v0 }
  0xb5   : > { %8333 = vst [vmem:[#allocation19_spill] sm:$0xff] %v5392_v26  ;;  %v1100_v19 = vsel %vm550_vm0, %v7938_v29, %v1099_v53  ;;  %v5404_v13 = vmul.f32 %v5362_v21, %v4330_v12  ;;  %v1403_v58 = vmul.f32 %v4330_v12, %v8329_v0  ;;  %v2988_v24 = vrot.slane %v5316_v51, 4  ;;  %v8337_v51 = vld [vmem:[#allocation88_spill] sm:$0xff] }
  0xb6   : > { %v2162_v6 = vadd.f32 %v5293_v1, %v2041_v23  ;;  %v1017_v28 = vadd.f32 %v1001_v27, %v984_v54  ;;  %v1341_v20 = vrot.slane %v1282_v33, 3  ;;  %v1221_v14 = vsel %vm672_vm1, %v7941_v62, %v1220_v48  ;;  %v8339_v33 = vld [vmem:[#allocation13_spill] sm:$0xff] }
  0xb7   : > { %8334 = vst [vmem:[#allocation22_spill] sm:$0xff] %v5404_v13  ;;  %v1462_v29 = vrot.slane %v1403_v58, 4  ;;  %v5419_v40 = vmul.f32 %v5415_v36, %v4340_v16  ;;  %v8336_v1 = vrot.slane %v5283_v34, 2  ;;  %v8338_v27 = vrot.slane %v8337_v51, 2  ;;  %v8341_v62 = vld [vmem:[#allocation89_spill] sm:$0xff] }
  0xb8   : > { %v2283_v49 = vadd.f32 %v5302_v57, %v2162_v6  ;;  %v1138_v54 = vadd.f32 %v1100_v19, %v1017_v28  ;;  %v1557_v48 = vmul.f32 %v4340_v16, %v8339_v33  ;;  %v8340_v58 = vrot.slane %v5287_v44, 3 }
  0xb9   : > { %v2747_v23 = vsel %vm672_vm1, %v8338_v27, %v8336_v1  ;;  %v8342_v53 = vrot.slane %v8341_v62, 3  ;;  %v8343_v21 = vrot.slane %v5392_v26, 3  ;;  %v5439_v34 = vmul.f32 %v5415_v36, %v4342_v17 }
  0xba   : > { %v1678_v19 = vmul.f32 %v4342_v17, %v8339_v33  ;;  %v2404_v6 = vadd.f32 %v5307_v25, %v2283_v49  ;;  %v1259_v28 = vadd.f32 %v1221_v14, %v1138_v54  ;;  %v8344_v44 = vrot.slane %v5404_v13, 4  ;;  %v8350_v14 = vld [vmem:[#allocation14_spill] sm:$0xff] }
  0xbb   : > { %v2868_v0 = vsel %vm794_vm2, %v8342_v53, %v8340_v58  ;;  %v1342_v57 = vsel %vm794_vm2, %v8343_v21, %v1341_v20  ;;  %v5449_v53 = vmul.f32 %v5415_v36, %v4344_v18  ;;  %v1616_v20 = vrot.slane %v1557_v48, 1  ;;  %v8346_v21 = vld [vmem:[#allocation90_spill] sm:$0xff] }
  0xbc   : > { %v1463_v62 = vsel %vm916_vm3, %v8344_v44, %v1462_v29  ;;  %v1799_v1 = vmul.f32 %v4344_v18, %v8339_v33  ;;  %v5456_v51 = vmul.f32 %v5415_v36, %v4384_v37  ;;  %v2525_v25 = vadd.f32 %v5312_v30, %v2404_v6 }
  0xbd   : > { %v1380_v49 = vadd.f32 %v1342_v57, %v1259_v28  ;;  %v1518_v29 = vmul.f32 %v5415_v36, %v4338_v15  ;;  %v1737_v27 = vrot.slane %v1678_v19, 2  ;;  %v1920_v48 = vmul.f32 %v4384_v37, %v8339_v33  ;;  %v5470_v57 = vld [vmem:[%s4326_s11 + $0xc8] sm:$0xff] }
  0xbe   : > { %8345 = vst [vmem:[#allocation21_spill] sm:$0xff] %v5456_v51  ;;  %v1858_v58 = vrot.slane %v1799_v1, 3  ;;  %v2558_v44 = vadd.f32 %v5297_v52, %v2525_v25  ;;  %v8347_v13 = vrot.slane %v8346_v21, 4  ;;  %v5474_v6 = vmul.f32 %v5470_v57, %v4428_v59 }
  0xbf   : > { %v1501_v30 = vadd.f32 %v1463_v62, %v1380_v49  ;;  %8348 = vst [vmem:[#allocation23_spill] sm:$0xff] %v5470_v57  ;;  %v8349_v19 = vrot.slane %v5419_v40, 1  ;;  %v1979_v54 = vrot.slane %v1920_v48, 4  ;;  %v2074_v52 = vmul.f32 %v4428_v59, %v8350_v14 }
  0xc0   : > { %v2989_v26 = vsel %vm916_vm3, %v8347_v13, %v2988_v24  ;;  %v2679_v21 = vadd.f32 %v5322_v31, %v2558_v44  ;;  %v5485_v24 = vmul.f32 %v5470_v57, %v4432_v63  ;;  %v2195_v62 = vmul.f32 %v4432_v63, %v8350_v14 }
  0xc1   : > { %v1617_v28 = vsel %vm550_vm0, %v8349_v19, %v1616_v20  ;;  %v1534_v13 = vadd.f32 %v1518_v29, %v1501_v30  ;;  %v8351_v25 = vrot.slane %v5439_v34, 2  ;;  %v8352_v49 = vrot.slane %v5449_v53, 3  ;;  %v5518_v19 = vld [vmem:[%s4326_s11 + $0xe8] sm:$0xf] }
  0xc2   : > { %v2035_v31 = vmul.f32 %v5470_v57, %v4399_v45  ;;  %v5499_v29 = vmul.f32 %v5470_v57, %v4492_v35  ;;  %v2800_v44 = vadd.f32 %v2747_v23, %v2679_v21  ;;  %v2316_v1 = vmul.f32 %v4492_v35, %v8350_v14  ;;  %v5514_v23 = vld [vmem:[%s4326_s11 + $0xe0] sm:$0xff]  ;;  %8356 = vst [vmem:[#allocation27_spill] sm:$0xff] %v5518_v19 }
  0xc3   : > { %v1738_v20 = vsel %vm672_vm1, %v8351_v25, %v1737_v27  ;;  %v1859_v48 = vsel %vm794_vm2, %v8352_v49, %v1858_v58  ;;  %v1655_v30 = vadd.f32 %v1617_v28, %v1534_v13  ;;  %v8353_v27 = vrot.slane %v5456_v51, 4  ;;  %8355 = vst [vmem:[#allocation25_spill] sm:$0xff] %v5514_v23 }
  0xc4   : > { %v2133_v58 = vrot.slane %v2074_v52, 1  ;;  %v5509_v49 = vmul.f32 %v5470_v57, %v4499_v56  ;;  %v2437_v33 = vmul.f32 %v4499_v56, %v8350_v14  ;;  %v2921_v36 = vadd.f32 %v2868_v0, %v2800_v44 }
  0xc5   : > { %v1980_v25 = vsel %vm916_vm3, %v8353_v27, %v1979_v54  ;;  %v1776_v28 = vadd.f32 %v1738_v20, %v1655_v30  ;;  %v7955_v21 = vrot.slane %v5485_v24, 2  ;;  %v2254_v13 = vrot.slane %v2195_v62, 2 }
  0xc6   : > { %8354 = vst [vmem:[#allocation24_spill] sm:$0xff] %v5509_v49  ;;  %v7954_v51 = vrot.slane %v5499_v29, 3  ;;  %v2375_v54 = vrot.slane %v2316_v1, 3  ;;  %v5524_v27 = vmul.f32 %v4529_v38, %v5514_v23  ;;  %v3042_v57 = vadd.f32 %v2989_v26, %v2921_v36 }
  0xc7   : > { %v1897_v14 = vadd.f32 %v1859_v48, %v1776_v28  ;;  %v2496_v0 = vrot.slane %v2437_v33, 4  ;;  %v2591_v20 = vmul.f32 %v4529_v38, %v5518_v19  ;;  %v8358_v44 = vrot.slane %v5474_v6, 1 }
  0xc8   : > { %8357 = vst [vmem:[#allocation26_spill] sm:$0xff] %v5524_v27  ;;  %v7960_v30 = vrot.slane %v5524_v27, 1  ;;  %v5534_v1 = vmul.f32 %v4532_v32, %v5514_v23  ;;  %v2712_v52 = vmul.f32 %v4532_v32, %v5518_v19  ;;  %v5539_v36 = vadd.f32 %v8330_v42, %v3042_v57  ;;  %v5587_v27 = vld [vmem:[%s4326_s11 + $0x90] sm:$0xff] }
  0xc9   : > { %v2134_v62 = vsel %vm550_vm0, %v8358_v44, %v2133_v58  ;;  %v2018_v26 = vadd.f32 %v1980_v25, %v1897_v14  ;;  %v2650_v33 = vrot.slane %v2591_v20, 1  ;;  %v5543_v48 = vmul.f32 %v4534_v61, %v5514_v23  ;;  %8362 = vst [vmem:[#allocation34_spill] sm:$0xff] %v5587_v27 }
  0xca   : > { %8359 = vst [vmem:[#allocation28_spill] sm:$0xff] %v5539_v36  ;;  %v2255_v58 = vsel %vm672_vm1, %v7955_v21, %v2254_v13  ;;  %v2376_v28 = vsel %vm794_vm2, %v7954_v51, %v2375_v54  ;;  %v2552_v44 = vmul.f32 %v4527_v60, %v5514_v23  ;;  %v2833_v42 = vmul.f32 %v4534_v61, %v5518_v19 }
  0xcb   : > { %3079 = vadd.xlane.f32.xlu2 %v5539_v36  ;;  %v2051_v14 = vadd.f32 %v2035_v31, %v2018_v26  ;;  %v8360_v57 = vrot.slane %v5509_v49, 4  ;;  %v5561_v13 = vmul.f32 %v4557_v47, %v5514_v23  ;;  %v2954_v54 = vmul.f32 %v4557_v47, %v5518_v19  ;;  %v5573_v23 = vld [vmem:[%s4326_s11 + $0x78] sm:$0xff] }
  0xcc   : > { %v2651_v20 = vsel %vm550_vm0, %v7960_v30, %v2650_v33  ;;  %v2771_v21 = vrot.slane %v2712_v52, 2  ;;  %v3134_v31 = vmul.f32 %v5384_v50, %v5384_v50  ;;  %8361 = vst [vmem:[#allocation29_spill] sm:$0xff] %v5573_v23  ;;  %v517_v19 = vmul.f32 %v5573_v23, %v4309_v4 }
  0xcd   : > { %v2497_v25 = vsel %vm916_vm3, %v8360_v57, %v2496_v0  ;;  %v2172_v26 = vadd.f32 %v2134_v62, %v2051_v14  ;;  %v2892_v57 = vrot.slane %v2833_v42, 3  ;;  %v479_v33 = vmul.f32 %v5573_v23, %v4307_v3 }
  0xce   : > { %3159 = vadd.xlane.f32.xlu1 %v3134_v31  ;;  %v639_v52 = vmul.f32 %v5573_v23, %v4311_v5  ;;  %v761_v30 = vmul.f32 %v5573_v23, %v8238_v22  ;;  %v883_v62 = vmul.f32 %v5573_v23, %v4315_v7  ;;  %v3013_v0 = vrot.slane %v2954_v54, 4 }
  0xcf   : > { %v2293_v14 = vadd.f32 %v2255_v58, %v2172_v26  ;;  %v576_v51 = vrot.slane %v517_v19, 1  ;;  %v1038_v49 = vmul.f32 %v5587_v27, %v4322_v9  ;;  %v8363_v22 = vrot.slane %v5326_v2, 1 }
  0xd0   : > { %v698_v50 = vrot.slane %v639_v52, 2  ;;  %v820_v36 = vrot.slane %v761_v30, 3  ;;  %v942_v31 = vrot.slane %v883_v62, 4  ;;  %v1159_v58 = vmul.f32 %v5587_v27, %v4324_v10 }
  0xd1   : > { %v2414_v5 = vadd.f32 %v2376_v28, %v2293_v14  ;;  %v578_v4 = vsel %vm550_vm0, %v576_v51, %v8363_v22  ;;  %v1280_v19 = vmul.f32 %v5587_v27, %v8332_v43  ;;  %v8364_v30 = vrot.slane %v5534_v1, 2 }
  0xd2   : > { %v8365_v26 = vrot.slane %v5543_v48, 3  ;;  %v617_v62 = vadd.f32 %v578_v4, %v479_v33  ;;  %v8366_v28 = vrot.slane %v5333_v46, 2  ;;  %v8367_v51 = vrot.slane %v5342_v39, 3 }
  0xd3   : > { %v2772_v54 = vsel %vm672_vm1, %v8364_v30, %v2771_v21  ;;  %v2535_v22 = vadd.f32 %v2497_v25, %v2414_v5  ;;  %v1096_v42 = vrot.slane %v1038_v49, 1  ;;  %v1217_v23 = vrot.slane %v1159_v58, 2  ;;  %v5613_v30 = vld [vmem:[%s4326_s11 + $0xa8] sm:$0xff] }
  0xd4   : > { %v2893_v52 = vsel %vm794_vm2, %v8365_v26, %v2892_v57  ;;  %v700_v2 = vsel %vm672_vm1, %v698_v50, %v8366_v28  ;;  %v822_v14 = vsel %vm794_vm2, %v820_v36, %v8367_v51  ;;  %v1338_v10 = vrot.slane %v1280_v19, 3  ;;  %8368 = vst [vmem:[#allocation30_spill] sm:$0xff] %v5613_v30  ;;  %v8373_v26 = vld [vmem:[#allocation19_spill] sm:$0xff] }
  0xd5   : > { %v739_v43 = vadd.f32 %v700_v2, %v617_v62  ;;  %v1401_v21 = vmul.f32 %v5587_v27, %v4330_v12  ;;  %v1555_v4 = vmul.f32 %v5613_v30, %v4340_v16  ;;  %v2568_v46 = vadd.f32 %v2552_v44, %v2535_v22 }
  0xd6   : > { %v8369_v50 = vrot.slane %v5561_v13, 4  ;;  %v8370_v39 = vrot.slane %v5348_v41, 4  ;;  %v1000_v36 = vmul.f32 %v5587_v27, %v4320_v8  ;;  %v8371_v57 = vrot.slane %v5375_v55, 1 }
  0xd7   : > { %v861_v25 = vadd.f32 %v822_v14, %v739_v43  ;;  %v1517_v44 = vmul.f32 %v5613_v30, %v4338_v15  ;;  %v2689_v58 = vadd.f32 %v2651_v20, %v2568_v46  ;;  %v1459_v41 = vrot.slane %v1401_v21, 4  ;;  %v5643_v14 = vld [vmem:[%s4326_s11 + $0xc0] sm:$0xff]  ;;  %v5648_v46 = vld [vmem:[%s4326_s11 + $0xd8] sm:$0xff] }
  0xd8   : > { %v3014_v5 = vsel %vm916_vm3, %v8369_v50, %v3013_v0  ;;  %v944_v49 = vsel %vm916_vm3, %v942_v31, %v8370_v39  ;;  %v1098_v33 = vsel %vm550_vm0, %v1096_v42, %v8371_v57  ;;  %v1676_v0 = vmul.f32 %v5613_v30, %v4342_v17  ;;  %8375 = vst [vmem:[#allocation32_spill] sm:$0xff] %v5643_v14 }
  0xd9   : > { %v1797_v31 = vmul.f32 %v5613_v30, %v4344_v18  ;;  %v1918_v19 = vmul.f32 %v5613_v30, %v4384_v37  ;;  %v983_v43 = vadd.f32 %v944_v49, %v861_v25  ;;  %v8372_v55 = vrot.slane %v5381_v11, 2  ;;  %8376 = vst [vmem:[#allocation33_spill] sm:$0xff] %v5648_v46 }
  0xda   : > { %v8374_v62 = vrot.slane %v8373_v26, 3  ;;  %v1613_v2 = vrot.slane %v1555_v4, 1  ;;  %v2810_v22 = vadd.f32 %v2772_v54, %v2689_v58  ;;  %v1734_v51 = vrot.slane %v1676_v0, 2  ;;  %v8377_v4 = vld [vmem:[#allocation22_spill] sm:$0xff] }
  0xdb   : > { %v1219_v42 = vsel %vm672_vm1, %v1217_v23, %v8372_v55  ;;  %v1855_v20 = vrot.slane %v1797_v31, 3  ;;  %v2072_v21 = vmul.f32 %v5643_v14, %v4428_v59  ;;  %v1016_v50 = vadd.f32 %v1000_v36, %v983_v43 }
  0xdc   : > { %v1340_v28 = vsel %vm794_vm2, %v1338_v10, %v8374_v62  ;;  %v1976_v39 = vrot.slane %v1918_v19, 4  ;;  %v2193_v11 = vmul.f32 %v5643_v14, %v4432_v63  ;;  %v2314_v23 = vmul.f32 %v5643_v14, %v4492_v35 }
  0xdd   : > { %v2931_v10 = vadd.f32 %v2893_v52, %v2810_v22  ;;  %v8378_v54 = vrot.slane %v8377_v4, 4  ;;  %v5659_v25 = vmul.f32 %v5643_v14, %v4399_v45  ;;  %v2130_v57 = vrot.slane %v2072_v21, 1 }
  0xde   : > { %v1137_v0 = vadd.f32 %v1098_v33, %v1016_v50  ;;  %v8379_v36 = vrot.slane %v5419_v40, 1  ;;  %v2251_v31 = vrot.slane %v2193_v11, 2  ;;  %v2435_v19 = vmul.f32 %v5643_v14, %v4499_v56 }
  0xdf   : > { %v1461_v49 = vsel %vm916_vm3, %v1459_v41, %v8378_v54  ;;  %v3052_v43 = vadd.f32 %v3014_v5, %v2931_v10  ;;  %v8380_v52 = vrot.slane %v5439_v34, 2  ;;  %v2372_v41 = vrot.slane %v2314_v23, 3 }
  0xe0   : > { %v1615_v58 = vsel %vm550_vm0, %v1613_v2, %v8379_v36  ;;  %v2589_v26 = vmul.f32 %v4529_v38, %v5648_v46  ;;  %v1258_v62 = vadd.f32 %v1219_v42, %v1137_v0  ;;  %v8381_v33 = vrot.slane %v5449_v53, 3  ;;  %v8382_v2 = vld [vmem:[#allocation21_spill] sm:$0xff]  ;;  %v8389_v0 = vld [vmem:[#allocation3_spill] sm:$0xff] }
  0xe1   : > { %v1736_v55 = vsel %vm672_vm1, %v1734_v51, %v8380_v52  ;;  %v8383_v22 = vrot.slane %v8382_v2, 4  ;;  %v8384_v5 = vrot.slane %v5474_v6, 1  ;;  %v5685_v51 = vld [vmem:[%s7798_s3] ss:$0 sm:$0xff]  ;;  %v2493_v53 = vrot.slane %v2435_v19, 4 }
  0xe2   : > { %v1857_v40 = vsel %vm794_vm2, %v1855_v20, %v8381_v33  ;;  %8385 = vst [vmem:[#allocation70_spill] sm:$0xff] %v5685_v51  ;;  %v5688_v42 = vadd.f32 %v5685_v51, %v3052_v43  ;;  %v2647_v50 = vrot.slane %v2589_v26, 1  ;;  %v2710_v20 = vmul.f32 %v4532_v32, %v5648_v46  ;;  %v8390_v43 = vld [vmem:[#allocation4_spill] sm:$0xff]  ;;  %v8391_v26 = vld [vmem:[#allocation5_spill] sm:$0xff]  ;;  %v8394_v2 = vld [vmem:[#allocation26_spill] sm:$0xff] }
  0xe3   : > { %v1978_v21 = vsel %vm916_vm3, %v1976_v39, %v8383_v22  ;;  %v5680_v34 = vsel %vm550_vm0, %v2130_v57, %v8384_v5  ;;  %v1379_v11 = vadd.f32 %v1340_v28, %v1258_v62  ;;  %v8387_v39 = vrot.slane %v5485_v24, 2  ;;  %v4130_v28 = vld [vmem:[%s4326_s11 + $0x18] sm:$0xff]  ;;  %v8392_v33 = vld [vmem:[#allocation24_spill] sm:$0xff] }
  0xe4   : > { %8386 = vst [vmem:[#allocation37_spill] sm:$0xff] %v5688_v42  ;;  %v5699_v23 = vmul.f32 %v4527_v60, %v5648_v46  ;;  %v2831_v10 = vmul.f32 %v4534_v61, %v5648_v46  ;;  %3099 = vadd.xlane.f32.xlu0 %v5688_v42  ;;  %v8388_v4 = vrot.slane %v5499_v29, 3  ;;  %v2952_v24 = vmul.f32 %v4557_v47, %v5648_v46  ;;  %v8396_v42 = vld [vmem:[#allocation43_spill] sm:$0xff] }
  0xe5   : > { %v5695_v6 = vsel %vm672_vm1, %v2251_v31, %v8387_v39  ;;  %v471_v57 = vmul.f32 %v4130_v28, %v4307_v3  ;;  %v505_v36 = vmul.f32 %v4130_v28, %v8389_v0  ;;  %v1500_v31 = vadd.f32 %v1461_v49, %v1379_v11 }
  0xe6   : > { %v5707_v54 = vsel %vm794_vm2, %v2372_v41, %v8388_v4  ;;  %v2768_v19 = vrot.slane %v2710_v20, 2  ;;  %v627_v52 = vmul.f32 %v4130_v28, %v8390_v43  ;;  %v749_v62 = vmul.f32 %v4130_v28, %v8391_v26 }
  0xe7   : > { %v8393_v29 = vrot.slane %v8392_v33, 4  ;;  %v8395_v22 = vrot.slane %v8394_v2, 1  ;;  %v556_v39 = vrot.slane %v505_v36, 1  ;;  %v871_v4 = vmul.f32 %v4130_v28, %v4315_v7  ;;  %v8404_v2 = vld [vmem:[#allocation9_spill] sm:$0xff] }
  0xe8   : > { %v1533_v46 = vadd.f32 %v1517_v44, %v1500_v31  ;;  %v2889_v49 = vrot.slane %v2831_v10, 3  ;;  %v678_v20 = vrot.slane %v627_v52, 2  ;;  %v800_v11 = vrot.slane %v749_v62, 3  ;;  %v8400_v10 = vld [vmem:[#allocation45_spill] sm:$0xff] }
  0xe9   : > { %v5719_v41 = vsel %vm916_vm3, %v2493_v53, %v8393_v29  ;;  %v5724_v5 = vsel %vm550_vm0, %v2647_v50, %v8395_v22  ;;  %v3010_v14 = vrot.slane %v2952_v24, 4  ;;  %v8397_v30 = vrot.slane %v8396_v42, 1  ;;  %v5731_v53 = vld [vmem:[%s4326_s11 + $0x30] sm:$0xff]  ;;  %v8402_v42 = vld [vmem:[#allocation46_spill] sm:$0xff] }
  0xea   : > { %v922_v27 = vrot.slane %v871_v4, 4  ;;  %8398 = vst [vmem:[#allocation42_spill] sm:$0xff] %v5731_v53  ;;  %v1026_v29 = vmul.f32 %v5731_v53, %v4322_v9  ;;  %v1654_v50 = vadd.f32 %v1615_v58, %v1533_v46  ;;  %v8399_v36 = vrot.slane %v5534_v1, 2  ;;  %v8405_v58 = vld [vmem:[#allocation10_spill] sm:$0xff]  ;;  %v8406_v4 = vld [vmem:[#allocation47_spill] sm:$0xff] }
  0xeb   : > { %v558_v33 = vsel %vm550_vm0, %v556_v39, %v8397_v30  ;;  %v8401_v31 = vrot.slane %v8400_v10, 2  ;;  %v8403_v52 = vrot.slane %v8402_v42, 3  ;;  %v992_v62 = vmul.f32 %v5731_v53, %v4320_v8  ;;  %v8408_v10 = vld [vmem:[#allocation79_spill] sm:$0xff] }
  0xec   : > { %v5738_v28 = vsel %vm672_vm1, %v2768_v19, %v8399_v36  ;;  %v609_v44 = vadd.f32 %v558_v33, %v471_v57  ;;  %v1147_v46 = vmul.f32 %v5731_v53, %v8404_v2  ;;  %v1268_v1 = vmul.f32 %v5731_v53, %v8405_v58 }
  0xed   : > { %v680_v24 = vsel %vm672_vm1, %v678_v20, %v8401_v31  ;;  %v802_v30 = vsel %vm794_vm2, %v800_v11, %v8403_v52  ;;  %v1775_v19 = vadd.f32 %v1736_v55, %v1654_v50  ;;  %v1076_v22 = vrot.slane %v1026_v29, 1 }
  0xee   : > { %v731_v57 = vadd.f32 %v680_v24, %v609_v44  ;;  %v1389_v39 = vmul.f32 %v5731_v53, %v4330_v12  ;;  %v8407_v20 = vrot.slane %v8406_v4, 4  ;;  %v1197_v33 = vrot.slane %v1147_v46, 2  ;;  %v5772_v24 = vld [vmem:[%s4326_s11 + $0x48] sm:$0xff] }
  0xef   : > { %v1318_v36 = vrot.slane %v1268_v1, 3  ;;  %v1543_v31 = vmul.f32 %v4340_v16, %v8408_v10  ;;  %v1896_v42 = vadd.f32 %v1857_v40, %v1775_v19  ;;  %v1664_v55 = vmul.f32 %v4342_v17, %v8408_v10  ;;  %8411 = vst [vmem:[#allocation38_spill] sm:$0xff] %v5772_v24  ;;  %v8416_v4 = vld [vmem:[#allocation51_spill] sm:$0xff] }
  0xf0   : > { %v924_v11 = vsel %vm916_vm3, %v922_v27, %v8407_v20  ;;  %v853_v52 = vadd.f32 %v802_v30, %v731_v57  ;;  %v1439_v51 = vrot.slane %v1389_v39, 4  ;;  %v8409_v29 = vrot.slane %v5543_v48, 3  ;;  %v8412_v48 = vld [vmem:[#allocation49_spill] sm:$0xff] }
  0xf1   : > { %v8410_v44 = vrot.slane %v5561_v13, 4  ;;  %v1509_v40 = vmul.f32 %v5772_v24, %v4338_v15  ;;  %v1785_v30 = vmul.f32 %v5772_v24, %v4344_v18  ;;  %v2017_v46 = vadd.f32 %v1978_v21, %v1896_v42  ;;  %v8414_v13 = vld [vmem:[#allocation50_spill] sm:$0xff] }
  0xf2   : > { %v5764_v50 = vsel %vm794_vm2, %v2889_v49, %v8409_v29  ;;  %v975_v1 = vadd.f32 %v924_v11, %v853_v52  ;;  %v8413_v19 = vrot.slane %v8412_v48, 1  ;;  %v1593_v57 = vrot.slane %v1543_v31, 1  ;;  %v8418_v29 = vld [vmem:[#allocation54_spill] sm:$0xff] }
  0xf3   : > { %v5769_v27 = vsel %vm916_vm3, %v3010_v14, %v8410_v44  ;;  %v8415_v39 = vrot.slane %v8414_v13, 2  ;;  %v8417_v20 = vrot.slane %v8416_v4, 3  ;;  %v8419_v44 = vrot.slane %v8418_v29, 4  ;;  %v5794_v31 = vld [vmem:[%s4326_s11 + $0x60] sm:$0xff] }
  0xf4   : > { %v1078_v49 = vsel %vm550_vm0, %v1076_v22, %v8413_v19  ;;  %v1906_v21 = vmul.f32 %v5772_v24, %v4384_v37  ;;  %v2050_v11 = vadd.f32 %v5659_v25, %v2017_v46  ;;  %v1008_v42 = vadd.f32 %v992_v62, %v975_v1  ;;  %8420 = vst [vmem:[#allocation39_spill] sm:$0xff] %v5794_v31 }
  0xf5   : > { %v1199_v14 = vsel %vm672_vm1, %v1197_v33, %v8415_v39  ;;  %v1320_v10 = vsel %vm794_vm2, %v1318_v36, %v8417_v20  ;;  %v1441_v53 = vsel %vm916_vm3, %v1439_v51, %v8419_v44  ;;  %v1714_v22 = vrot.slane %v1664_v55, 2  ;;  %v8421_v39 = vld [vmem:[#allocation55_spill] sm:$0xff]  ;;  %v8423_v44 = vld [vmem:[#allocation56_spill] sm:$0xff] }
  0xf6   : > { %v2060_v33 = vmul.f32 %v5794_v31, %v4428_v59  ;;  %v1835_v52 = vrot.slane %v1785_v30, 3  ;;  %v1956_v48 = vrot.slane %v1906_v21, 4  ;;  %v2181_v36 = vmul.f32 %v5794_v31, %v4432_v63 }
  0xf7   : > { %v2302_v51 = vmul.f32 %v5794_v31, %v4492_v35  ;;  %v2171_v19 = vadd.f32 %v5680_v34, %v2050_v11  ;;  %v1129_v13 = vadd.f32 %v1078_v49, %v1008_v42  ;;  %v8422_v25 = vrot.slane %v8421_v39, 1  ;;  %v8425_v11 = vld [vmem:[#allocation57_spill] sm:$0xff]  ;;  %v8427_v39 = vld [vmem:[#allocation59_spill] sm:$0xff] }
  0xf8   : > { %v2423_v55 = vmul.f32 %v5794_v31, %v4499_v56  ;;  %v5810_v30 = vmul.f32 %v5794_v31, %v4399_v45  ;;  %v2110_v46 = vrot.slane %v2060_v33, 1  ;;  %v2231_v1 = vrot.slane %v2181_v36, 2  ;;  %v8429_v33 = vld [vmem:[#allocation29_spill] sm:$0xff] }
  0xf9   : > { %v1595_v62 = vsel %vm550_vm0, %v1593_v57, %v8422_v25  ;;  %v2352_v4 = vrot.slane %v2302_v51, 3  ;;  %v2292_v20 = vadd.f32 %v5695_v6, %v2171_v19  ;;  %v1250_v29 = vadd.f32 %v1199_v14, %v1129_v13  ;;  %v8430_v19 = vld [vmem:[#allocation61_spill] sm:$0xff] }
  0xfa   : > { %v8424_v34 = vrot.slane %v8423_v44, 2  ;;  %v2473_v21 = vrot.slane %v2423_v55, 4  ;;  %v8426_v57 = vrot.slane %v8425_v11, 3  ;;  %v8428_v25 = vrot.slane %v8427_v39, 4  ;;  %v8432_v55 = vld [vmem:[#allocation62_spill] sm:$0xff]  ;;  %v8434_v11 = vld [vmem:[#allocation64_spill] sm:$0xff] }
  0xfb   : > { %v2577_v36 = vmul.f32 %v8429_v33, %v4529_v38  ;;  %v5826_v6 = vmul.f32 %v8429_v33, %v4532_v32  ;;  %v2413_v14 = vadd.f32 %v5707_v54, %v2292_v20  ;;  %v1371_v51 = vadd.f32 %v1320_v10, %v1250_v29  ;;  %v8436_v39 = vld [vmem:[#allocation65_spill] sm:$0xff] }
  0xfc   : > { %v1716_v49 = vsel %vm672_vm1, %v1714_v22, %v8424_v34  ;;  %v1837_v42 = vsel %vm794_vm2, %v1835_v52, %v8426_v57  ;;  %v1958_v31 = vsel %vm916_vm3, %v1956_v48, %v8428_v25  ;;  %v5831_v22 = vmul.f32 %v8429_v33, %v4527_v60 }
  0xfd   : > { %v5835_v52 = vmul.f32 %v8429_v33, %v4534_v61  ;;  %v8431_v48 = vrot.slane %v8430_v19, 1  ;;  %v8433_v44 = vrot.slane %v8432_v55, 2  ;;  %v8435_v54 = vrot.slane %v8434_v11, 3 }
  0xfe   : > { %v2627_v20 = vrot.slane %v2577_v36, 1  ;;  %v2534_v29 = vadd.f32 %v5719_v41, %v2413_v14  ;;  %v1492_v57 = vadd.f32 %v1441_v53, %v1371_v51  ;;  %v8437_v25 = vrot.slane %v8436_v39, 4  ;;  %v8440_v51 = vld [vmem:[#allocation66_spill] sm:$0xff] }
  0xff   : > { %v2112_v13 = vsel %vm550_vm0, %v2110_v46, %v8431_v48  ;;  %v5843_v34 = vsel %vm672_vm1, %v2231_v1, %v8433_v44  ;;  %v5848_v10 = vsel %vm794_vm2, %v2352_v4, %v8435_v54  ;;  %v8438_v46 = vld [vmem:[#allocation28_spill] sm:$0xff]  ;;  %v2748_v1 = vrot.slane %v5826_v6, 2  ;;  %v8439_v4 = vld [vmem:[#allocation17_spill] sm:$0xff]  ;;  %v8441_v44 = vld [vmem:[#allocation67_spill] sm:$0xff] }
 0x100   : > { %v5854_v19 = vsel %vm916_vm3, %v2473_v21, %v8437_v25  ;;  %v3126_v48 = vmul.f32 %v8438_v46, %v8438_v46  ;;  %v5861_v55 = vmul.f32 %v8429_v33, %v4557_v47  ;;  %v482_v36 = vmul.f32 %v8439_v4, %v4307_v3 }
 0x101   : > { %v5867_v41 = vmul.f32 %v8439_v4, %v8389_v0  ;;  %v2567_v53 = vadd.f32 %v5699_v23, %v2534_v29  ;;  %v1525_v21 = vadd.f32 %v1509_v40, %v1492_v57  ;;  %v522_v6 = vmul.f32 %v8389_v0, %v8440_v51 }
 0x102   : > { %3143 = vadd.xlane.f32.xlu1 %v3126_v48  ;;  %v8442_v11 = vrot.slane %v8441_v44, 1  ;;  %v5881_v39 = vmul.f32 %v8439_v4, %v8390_v43  ;;  %v644_v23 = vmul.f32 %v8390_v43, %v8440_v51  ;;  %v5888_v25 = vmul.f32 %v8439_v4, %v8391_v26 }
 0x103   : > { %v2688_v40 = vadd.f32 %v5724_v5, %v2567_v53  ;;  %v1646_v29 = vadd.f32 %v1595_v62, %v1525_v21  ;;  %v584_v57 = vrot.slane %v522_v6, 1  ;;  %v766_v44 = vmul.f32 %v8391_v26, %v8440_v51 }
 0x104   : > { %v5876_v33 = vsel %vm550_vm0, %v2627_v20, %v8442_v11  ;;  %v7997_v20 = vrot.slane %v5881_v39, 2  ;;  %v706_v48 = vrot.slane %v644_v23, 2  ;;  %v5895_v11 = vmul.f32 %v8439_v4, %v4315_v7 }
 0x105   : > { %v2809_v14 = vadd.f32 %v5738_v28, %v2688_v40  ;;  %v1767_v54 = vadd.f32 %v1716_v49, %v1646_v29  ;;  %v8443_v5 = vrot.slane %v5867_v41, 1  ;;  %v7995_v53 = vrot.slane %v5888_v25, 3  ;;  %v8444_v49 = vld [vmem:[#allocation20_spill] sm:$0xff] }
 0x106   : > { %v707_v6 = vsel %vm672_vm1, %v7997_v20, %v706_v48  ;;  %v828_v23 = vrot.slane %v766_v44, 3  ;;  %v888_v46 = vmul.f32 %v4315_v7, %v8440_v51  ;;  %v7994_v28 = vrot.slane %v5895_v11, 4 }
 0x107   : > { %v585_v62 = vsel %vm550_vm0, %v8443_v5, %v584_v57  ;;  %v2930_v4 = vadd.f32 %v5764_v50, %v2809_v14  ;;  %v1888_v24 = vadd.f32 %v1837_v42, %v1767_v54  ;;  %v1003_v40 = vmul.f32 %v8444_v49, %v4320_v8  ;;  %v8445_v50 = vld [vmem:[#allocation13_spill] sm:$0xff] }
 0x108   : > { %v620_v21 = vadd.f32 %v585_v62, %v482_v36  ;;  %v829_v36 = vsel %vm794_vm2, %v7995_v53, %v828_v23  ;;  %v950_v57 = vrot.slane %v888_v46, 4  ;;  %v5916_v48 = vmul.f32 %v8444_v49, %v4322_v9 }
 0x109   : > { %v3051_v51 = vadd.f32 %v5769_v27, %v2930_v4  ;;  %v2009_v44 = vadd.f32 %v1958_v31, %v1888_v24  ;;  %v1043_v42 = vmul.f32 %v4322_v9, %v8445_v50  ;;  %v5923_v14 = vmul.f32 %v8444_v49, %v8404_v2 }
 0x10a   : > { %v742_v29 = vadd.f32 %v707_v6, %v620_v21  ;;  %v951_v5 = vsel %vm916_vm3, %v7994_v28, %v950_v57  ;;  %v7996_v46 = vrot.slane %v5916_v48, 1  ;;  %v1164_v62 = vmul.f32 %v8404_v2, %v8445_v50  ;;  %v8446_v21 = vld [vmem:[#allocation70_spill] sm:$0xff] }
 0x10b   : > { %v5932_v27 = vadd.f32 %v8446_v21, %v3051_v51  ;;  %v2042_v24 = vadd.f32 %v5810_v30, %v2009_v44  ;;  %v1104_v31 = vrot.slane %v1043_v42, 1  ;;  %v7999_v6 = vrot.slane %v5923_v14, 2  ;;  %v8448_v42 = vld [vmem:[#allocation68_spill] sm:$0xff] }
 0x10c   : > { %v864_v54 = vadd.f32 %v829_v36, %v742_v29  ;;  %v1225_v4 = vrot.slane %v1164_v62, 2  ;;  %v5938_v29 = vmul.f32 %v8444_v49, %v8405_v58  ;;  %v1285_v36 = vmul.f32 %v8405_v58, %v8445_v50 }
 0x10d   : > { %8447 = vst [vmem:[#allocation44_spill] sm:$0xff] %v5932_v27  ;;  %3097 = vadd.xlane.f32.xlu2 %v5932_v27  ;;  %v2163_v57 = vadd.f32 %v2112_v13, %v2042_v24  ;;  %v1105_v51 = vsel %vm550_vm0, %v7996_v46, %v1104_v31  ;;  %v5948_v30 = vmul.f32 %v8444_v49, %v4330_v12  ;;  %v2990_v46 = vrot.slane %v5861_v55, 4 }
 0x10e   : > { %v986_v23 = vadd.f32 %v951_v5, %v864_v54  ;;  %v1406_v44 = vmul.f32 %v4330_v12, %v8445_v50  ;;  %v8449_v54 = vrot.slane %v8448_v42, 2  ;;  %v7998_v28 = vrot.slane %v5938_v29, 3  ;;  %v8450_v42 = vld [vmem:[#allocation23_spill] sm:$0xff] }
 0x10f   : > { %v1346_v53 = vrot.slane %v1285_v36, 3  ;;  %v2284_v13 = vadd.f32 %v5843_v34, %v2163_v57  ;;  %v1226_v24 = vsel %vm672_vm1, %v7999_v6, %v1225_v4  ;;  %v8001_v49 = vrot.slane %v5948_v30, 4 }
 0x110   : > { %v2750_v5 = vsel %vm672_vm1, %v2748_v1, %v8449_v54  ;;  %v1019_v62 = vadd.f32 %v1003_v40, %v986_v23  ;;  %v1467_v31 = vrot.slane %v1406_v44, 4  ;;  %v5964_v20 = vmul.f32 %v8450_v42, %v4340_v16  ;;  %v8452_v1 = vld [vmem:[#allocation14_spill] sm:$0xff]  ;;  %v8455_v54 = vld [vmem:[#allocation69_spill] sm:$0xff] }
 0x111   : > { %v1560_v40 = vmul.f32 %v4340_v16, %v8452_v1  ;;  %v2405_v23 = vadd.f32 %v5848_v10, %v2284_v13  ;;  %v1347_v34 = vsel %vm794_vm2, %v7998_v28, %v1346_v53  ;;  %v5974_v4 = vmul.f32 %v8450_v42, %v4342_v17 }
 0x112   : > { %v1140_v50 = vadd.f32 %v1105_v51, %v1019_v62  ;;  %8451 = vst [vmem:[#allocation72_spill] sm:$0xff] %v5964_v20  ;;  %v1681_v55 = vmul.f32 %v4342_v17, %v8452_v1  ;;  %v8000_v57 = vrot.slane %v5964_v20, 1  ;;  %v5981_v44 = vmul.f32 %v8450_v42, %v4344_v18 }
 0x113   : > { %8453 = vst [vmem:[#allocation41_spill] sm:$0xff] %v5974_v4  ;;  %v1621_v51 = vrot.slane %v1560_v40, 1  ;;  %v2526_v10 = vadd.f32 %v5854_v19, %v2405_v23  ;;  %v8456_v53 = vrot.slane %v8455_v54, 3  ;;  %v8457_v62 = vrot.slane %v5835_v52, 3  ;;  %v6006_v54 = vld [vmem:[%s4326_s11 + $0xd0] sm:$0xf] }
 0x114   : > { %v1261_v36 = vadd.f32 %v1226_v24, %v1140_v50  ;;  %8454 = vst [vmem:[#allocation48_spill] sm:$0xff] %v5981_v44  ;;  %v1468_v28 = vsel %vm916_vm3, %v8001_v49, %v1467_v31  ;;  %v1802_v24 = vmul.f32 %v4344_v18, %v8452_v1  ;;  %v1520_v40 = vmul.f32 %v8450_v42, %v4338_v15  ;;  %v8462_v49 = vld [vmem:[#allocation71_spill] sm:$0xff] }
 0x115   : > { %v2871_v13 = vsel %vm794_vm2, %v8457_v62, %v8456_v53  ;;  %v5999_v19 = vmul.f32 %v8450_v42, %v4384_v37  ;;  %v2559_v52 = vadd.f32 %v5831_v22, %v2526_v10  ;;  %v1622_v23 = vsel %vm550_vm0, %v8000_v57, %v1621_v51  ;;  %8459 = vst [vmem:[#allocation74_spill] sm:$0xff] %v6006_v54  ;;  %v8460_v62 = vld [vmem:[#allocation25_spill] sm:$0xff] }
 0x116   : > { %v1382_v50 = vadd.f32 %v1347_v34, %v1261_v36  ;;  %v1742_v31 = vrot.slane %v1681_v55, 2  ;;  %v1923_v1 = vmul.f32 %v6006_v54, %v4384_v37  ;;  %v1863_v53 = vrot.slane %v1802_v24, 3  ;;  %v8461_v55 = vld [vmem:[#allocation27_spill] sm:$0xff] }
 0x117   : > { %8458 = vst [vmem:[#allocation73_spill] sm:$0xff] %v5999_v19  ;;  %v6013_v42 = vmul.f32 %v4428_v59, %v8460_v62  ;;  %v2680_v22 = vadd.f32 %v5876_v33, %v2559_v52  ;;  %v2077_v57 = vmul.f32 %v4428_v59, %v8461_v55  ;;  %v8463_v6 = vrot.slane %v8462_v49, 4 }
 0x118   : > { %v1503_v34 = vadd.f32 %v1468_v28, %v1382_v50  ;;  %v1984_v51 = vrot.slane %v1923_v1, 4  ;;  %v6024_v24 = vmul.f32 %v4432_v63, %v8460_v62  ;;  %v2198_v36 = vmul.f32 %v4432_v63, %v8461_v55 }
 0x119   : > { %v2992_v28 = vsel %vm916_vm3, %v2990_v46, %v8463_v6  ;;  %v2801_v33 = vadd.f32 %v2750_v5, %v2680_v22  ;;  %v8464_v52 = vrot.slane %v5974_v4, 2  ;;  %v2037_v10 = vmul.f32 %v4399_v45, %v8460_v62  ;;  %v6038_v46 = vld [vmem:[%s4326_s11 + $0xf8] sm:$0xff] }
 0x11a   : > { %v1536_v50 = vadd.f32 %v1520_v40, %v1503_v34  ;;  %v6035_v49 = vmul.f32 %v4492_v35, %v8460_v62  ;;  %8465 = vst [vmem:[#allocation75_spill] sm:$0xff] %v6038_v46  ;;  %v8466_v40 = vrot.slane %v5981_v44, 3  ;;  %v2319_v22 = vmul.f32 %v4492_v35, %v8461_v55 }
 0x11b   : > { %v1743_v1 = vsel %vm672_vm1, %v8464_v52, %v1742_v31  ;;  %v2922_v31 = vadd.f32 %v2871_v13, %v2801_v33  ;;  %v6047_v52 = vld [vmem:[%s4326_s11 + $0x100] sm:$0xf]  ;;  %v8468_v54 = vrot.slane %v5999_v19, 4  ;;  %v2138_v20 = vrot.slane %v2077_v57, 1 }
 0x11c   : > { %v1657_v6 = vadd.f32 %v1622_v23, %v1536_v50  ;;  %v1864_v34 = vsel %vm794_vm2, %v8466_v40, %v1863_v53  ;;  %8467 = vst [vmem:[#allocation52_spill] sm:$0xff] %v6047_v52  ;;  %v6054_v23 = vmul.f32 %v4499_v56, %v8460_v62  ;;  %v8010_v53 = vrot.slane %v6024_v24, 2 }
 0x11d   : > { %v1985_v4 = vsel %vm916_vm3, %v8468_v54, %v1984_v51  ;;  %v2259_v40 = vrot.slane %v2198_v36, 2  ;;  %v2440_v5 = vmul.f32 %v4499_v56, %v8461_v55  ;;  %v3043_v44 = vadd.f32 %v2992_v28, %v2922_v31 }
 0x11e   : > { %v1778_v50 = vadd.f32 %v1743_v1, %v1657_v6  ;;  %v8008_v13 = vrot.slane %v6035_v49, 3  ;;  %v2380_v33 = vrot.slane %v2319_v22, 3  ;;  %v6062_v19 = vmul.f32 %v4529_v38, %v6038_v46 }
 0x11f   : > { %v8009_v54 = vrot.slane %v6054_v23, 4  ;;  %v2501_v62 = vrot.slane %v2440_v5, 4  ;;  %v2594_v51 = vmul.f32 %v4529_v38, %v6047_v52  ;;  %v6068_v36 = vadd.f32 %v8446_v21, %v3043_v44 }
 0x120   : > { %8469 = vst [vmem:[#allocation53_spill] sm:$0xff] %v6062_v19  ;;  %v1899_v57 = vadd.f32 %v1864_v34, %v1778_v50  ;;  %v6072_v55 = vmul.f32 %v4532_v32, %v6038_v46  ;;  %v2715_v28 = vmul.f32 %v4532_v32, %v6047_v52  ;;  %v6079_v5 = vmul.f32 %v4534_v61, %v6038_v46 }
 0x121   : > { %8470 = vst [vmem:[#allocation76_spill] sm:$0xff] %v6068_v36  ;;  %v2655_v34 = vrot.slane %v2594_v51, 1  ;;  %3081 = vadd.xlane.f32.xlu0 %v6068_v36  ;;  %v8471_v44 = vrot.slane %v6013_v42, 1  ;;  %v2260_v31 = vsel %vm672_vm1, %v8010_v53, %v2259_v40  ;;  %v2502_v51 = vsel %vm916_vm3, %v8009_v54, %v2501_v62 }
 0x122   : > { %v2020_v1 = vadd.f32 %v1985_v4, %v1899_v57  ;;  %v2836_v4 = vmul.f32 %v4534_v61, %v6047_v52  ;;  %v2381_v57 = vsel %vm794_vm2, %v8008_v13, %v2380_v33  ;;  %v2554_v6 = vmul.f32 %v4527_v60, %v6038_v46 }
 0x123   : > { %v2139_v22 = vsel %vm550_vm0, %v8471_v44, %v2138_v20  ;;  %v2776_v44 = vrot.slane %v2715_v28, 2  ;;  %v6101_v40 = vmul.f32 %v4557_v47, %v6038_v46  ;;  %v8472_v33 = vrot.slane %v6062_v19, 1  ;;  %v8473_v28 = vld [vmem:[#allocation15_spill] sm:$0xff]  ;;  %v8474_v46 = vld [vmem:[#allocation34_spill] sm:$0xff] }
 0x124   : > { %v2053_v50 = vadd.f32 %v2037_v10, %v2020_v1  ;;  %v3135_v10 = vmul.f32 %v5932_v27, %v5932_v27  ;;  %v2957_v54 = vmul.f32 %v4557_v47, %v6047_v52  ;;  %v2897_v53 = vrot.slane %v2836_v4, 3 }
 0x125   : > { %v2656_v13 = vsel %vm550_vm0, %v8472_v33, %v2655_v34  ;;  %v3125_v20 = vmul.f32 %v8473_v28, %v8473_v28  ;;  %v520_v36 = vmul.f32 %v8474_v46, %v8389_v0  ;;  %v481_v34 = vmul.f32 %v8474_v46, %v4307_v3  ;;  %v8475_v28 = vld [vmem:[#allocation30_spill] sm:$0xff] }
 0x126   : > { %v2174_v1 = vadd.f32 %v2139_v22, %v2053_v50  ;;  %3161 = vadd.xlane.f32.xlu1 %v3135_v10  ;;  %v642_v22 = vmul.f32 %v8474_v46, %v8390_v43  ;;  %v764_v33 = vmul.f32 %v8474_v46, %v8391_v26  ;;  %v886_v4 = vmul.f32 %v8474_v46, %v4315_v7 }
 0x127   : > { %v581_v62 = vrot.slane %v520_v36, 1  ;;  %v1041_v52 = vmul.f32 %v8475_v28, %v4322_v9  ;;  %v3018_v47 = vrot.slane %v2957_v54, 4  ;;  %v8477_v46 = vrot.slane %v5881_v39, 2 }
 0x128   : > { %v2295_v50 = vadd.f32 %v2260_v31, %v2174_v1  ;;  %v703_v27 = vrot.slane %v642_v22, 2  ;;  %v825_v43 = vrot.slane %v764_v33, 3  ;;  %v1162_v31 = vmul.f32 %v8475_v28, %v8404_v2 }
 0x129   : > { %3141 = vadd.xlane.f32.xlu0 %v3125_v20  ;;  %v8476_v1 = vrot.slane %v5867_v41, 1  ;;  %v947_v36 = vrot.slane %v886_v4, 4  ;;  %v1283_v22 = vmul.f32 %v8475_v28, %v8405_v58  ;;  %v8478_v54 = vrot.slane %v6072_v55, 2 }
 0x12a   : > { %v2416_v19 = vadd.f32 %v2381_v57, %v2295_v50  ;;  %v705_v10 = vsel %vm672_vm1, %v703_v27, %v8477_v46  ;;  %v8479_v50 = vld [vmem:[#allocation37_spill] sm:$0xff]  ;;  %v8481_v27 = vrot.slane %v5888_v25, 3  ;;  %v1101_v4 = vrot.slane %v1041_v52, 1  ;;  %v8484_v25 = vld [vmem:[#allocation32_spill] sm:$0xff] }
 0x12b   : > { %v583_v26 = vsel %vm550_vm0, %v581_v62, %v8476_v1  ;;  %v2777_v57 = vsel %vm672_vm1, %v8478_v54, %v2776_v44  ;;  %v6141_v20 = vmul.f32 %v8479_v50, %v8479_v50  ;;  %v8480_v62 = vrot.slane %v6079_v5, 3 }
 0x12c   : > { %v2537_v9 = vadd.f32 %v2502_v51, %v2416_v19  ;;  %v619_v41 = vadd.f32 %v583_v26, %v481_v34  ;;  %v827_v33 = vsel %vm794_vm2, %v825_v43, %v8481_v27  ;;  %v1404_v19 = vmul.f32 %v8475_v28, %v4330_v12 }
 0x12d   : > { %v2898_v39 = vsel %vm794_vm2, %v8480_v62, %v2897_v53  ;;  %v1222_v44 = vrot.slane %v1162_v31, 2  ;;  %v1343_v46 = vrot.slane %v1283_v22, 3  ;;  %v8482_v54 = vrot.slane %v6101_v40, 4 }
 0x12e   : > { %v2570_v51 = vadd.f32 %v2554_v6, %v2537_v9  ;;  %v741_v1 = vadd.f32 %v705_v10, %v619_v41  ;;  %v8483_v34 = vrot.slane %v5895_v11, 4  ;;  %v1558_v62 = vmul.f32 %v8484_v25, %v4340_v16 }
 0x12f   : > { %v3019_v26 = vsel %vm916_vm3, %v8482_v54, %v3018_v47  ;;  %v1679_v43 = vmul.f32 %v8484_v25, %v4342_v17  ;;  %v1002_v9 = vmul.f32 %v8475_v28, %v4320_v8  ;;  %v1800_v6 = vmul.f32 %v8484_v25, %v4344_v18 }
 0x130   : > { %v949_v53 = vsel %vm916_vm3, %v947_v36, %v8483_v34  ;;  %v2691_v52 = vadd.f32 %v2656_v13, %v2570_v51  ;;  %v863_v27 = vadd.f32 %v827_v33, %v741_v1  ;;  %v8485_v47 = vrot.slane %v5916_v48, 1 }
 0x131   : > { %v1464_v10 = vrot.slane %v1404_v19, 4  ;;  %v1519_v31 = vmul.f32 %v8484_v25, %v4338_v15  ;;  %v1921_v36 = vmul.f32 %v8484_v25, %v4384_v37  ;;  %v8486_v41 = vrot.slane %v5923_v14, 2  ;;  %v6183_v25 = vld [vmem:[%s4326_s11 + $0xf0] sm:$0xff] }
 0x132   : > { %v1103_v11 = vsel %vm550_vm0, %v1101_v4, %v8485_v47  ;;  %v2812_v13 = vadd.f32 %v2777_v57, %v2691_v52  ;;  %v985_v22 = vadd.f32 %v949_v53, %v863_v27  ;;  %v8487_v33 = vrot.slane %v5938_v29, 3  ;;  %v8488_v4 = vld [vmem:[#allocation33_spill] sm:$0xff]  ;;  %8489 = vst [vmem:[#allocation77_spill] sm:$0xff] %v6183_v25 }
 0x133   : > { %v1224_v28 = vsel %vm672_vm1, %v1222_v44, %v8486_v41  ;;  %v1618_v48 = vrot.slane %v1558_v62, 1  ;;  %v1739_v1 = vrot.slane %v1679_v43, 2  ;;  %v2075_v19 = vmul.f32 %v4428_v59, %v8488_v4 }
 0x134   : > { %v1345_v51 = vsel %vm794_vm2, %v1343_v46, %v8487_v33  ;;  %v2196_v54 = vmul.f32 %v4432_v63, %v8488_v4  ;;  %v2933_v34 = vadd.f32 %v2898_v39, %v2812_v13  ;;  %v1018_v57 = vadd.f32 %v1002_v9, %v985_v22  ;;  %v8494_v33 = vld [vmem:[#allocation41_spill] sm:$0xff] }
 0x135   : > { %v1860_v53 = vrot.slane %v1800_v6, 3  ;;  %v2317_v14 = vmul.f32 %v4492_v35, %v8488_v4  ;;  %v8490_v29 = vrot.slane %v5948_v30, 4  ;;  %v1981_v46 = vrot.slane %v1921_v36, 4  ;;  %v8491_v6 = vld [vmem:[#allocation72_spill] sm:$0xff] }
 0x136   : > { %v6192_v62 = vmul.f32 %v4399_v45, %v8488_v4  ;;  %v2438_v43 = vmul.f32 %v4499_v56, %v8488_v4  ;;  %v3054_v39 = vadd.f32 %v3019_v26, %v2933_v34  ;;  %v1139_v52 = vadd.f32 %v1103_v11, %v1018_v57  ;;  %v8496_v11 = vld [vmem:[#allocation48_spill] sm:$0xff] }
 0x137   : > { %v1466_v44 = vsel %vm916_vm3, %v1464_v10, %v8490_v29  ;;  %v2135_v27 = vrot.slane %v2075_v19, 1  ;;  %v2256_v9 = vrot.slane %v2196_v54, 2  ;;  %v8492_v47 = vrot.slane %v8491_v6, 1 }
 0x138   : > { %v2377_v30 = vrot.slane %v2317_v14, 3  ;;  %v2498_v22 = vrot.slane %v2438_v43, 4  ;;  %v2592_v10 = vmul.f32 %v4529_v38, %v6183_v25  ;;  %v6202_v36 = vadd.f32 %v8446_v21, %v3054_v39 }
 0x139   : > { %v1620_v13 = vsel %vm550_vm0, %v1618_v48, %v8492_v47  ;;  %v1260_v41 = vadd.f32 %v1224_v28, %v1139_v52  ;;  %v8495_v4 = vrot.slane %v8494_v33, 2  ;;  %v8497_v19 = vrot.slane %v8496_v11, 3  ;;  %v8498_v48 = vld [vmem:[#allocation73_spill] sm:$0xff]  ;;  %v8505_v33 = vld [vmem:[#allocation40_spill] sm:$0xff] }
 0x13a   : > { %8493 = vst [vmem:[#allocation78_spill] sm:$0xff] %v6202_v36  ;;  %v8499_v34 = vrot.slane %v8498_v48, 4  ;;  %v6215_v14 = vmul.f32 %v4527_v60, %v6183_v25  ;;  %v2652_v29 = vrot.slane %v2592_v10, 1  ;;  %v6219_v28 = vmul.f32 %v4532_v32, %v6183_v25  ;;  %3103 = vadd.xlane.f32.xlu2 %v6202_v36  ;;  %v4135_v52 = vld [vmem:[%s4326_s11 + $0x38] sm:$0xff] }
 0x13b   : > { %v1741_v26 = vsel %vm672_vm1, %v1739_v1, %v8495_v4  ;;  %v1862_v54 = vsel %vm794_vm2, %v1860_v53, %v8497_v19  ;;  %v1381_v1 = vadd.f32 %v1345_v51, %v1260_v41  ;;  %v8500_v43 = vrot.slane %v6013_v42, 1 }
 0x13c   : > { %v1983_v57 = vsel %vm916_vm3, %v1981_v46, %v8499_v34  ;;  %v8501_v39 = vrot.slane %v6024_v24, 2  ;;  %v6234_v6 = vmul.f32 %v4135_v52, %v8389_v0  ;;  %v8503_v47 = vrot.slane %v6035_v49, 3  ;;  %v8508_v34 = vld [vmem:[#allocation4_spill] sm:$0xff] }
 0x13d   : > { %v6225_v53 = vsel %vm550_vm0, %v2135_v27, %v8500_v43  ;;  %v8504_v51 = vrot.slane %v6054_v23, 4  ;;  %v6248_v24 = vmul.f32 %v4534_v61, %v6183_v25  ;;  %v4136_v27 = vld [vmem:[%s4326_s11 + $0x40] sm:$0xf]  ;;  %v1502_v41 = vadd.f32 %v1466_v44, %v1381_v1  ;;  %v8506_v23 = vld [vmem:[#allocation53_spill] sm:$0xff] }
 0x13e   : > { %v6230_v46 = vsel %vm672_vm1, %v2256_v9, %v8501_v39  ;;  %8502 = vst [vmem:[#allocation60_spill] sm:$0xff] %v6234_v6  ;;  %v6239_v10 = vsel %vm794_vm2, %v2377_v30, %v8503_v47  ;;  %v510_v9 = vmul.f32 %v4136_v27, %v8389_v0  ;;  %v6254_v4 = vmul.f32 %v8505_v33, %v6183_v25  ;;  %v8509_v39 = vld [vmem:[#allocation5_spill] sm:$0xff] }
 0x13f   : > { %v6244_v42 = vsel %vm916_vm3, %v2498_v22, %v8504_v51  ;;  %v474_v49 = vmul.f32 %v4135_v52, %v4307_v3  ;;  %v8033_v30 = vrot.slane %v6234_v6, 1  ;;  %v8507_v11 = vrot.slane %v8506_v23, 1  ;;  %v6283_v6 = vld [vmem:[%s4326_s11 + $0x50] sm:$0xff] }
 0x140   : > { %v2773_v19 = vrot.slane %v6219_v28, 2  ;;  %v564_v48 = vrot.slane %v510_v9, 1  ;;  %v6265_v43 = vmul.f32 %v4135_v52, %v8508_v34  ;;  %v1535_v44 = vadd.f32 %v1519_v31, %v1502_v41  ;;  %8511 = vst [vmem:[#allocation81_spill] sm:$0xff] %v6283_v6 }
 0x141   : > { %v6261_v22 = vsel %vm550_vm0, %v2652_v29, %v8507_v11  ;;  %v632_v1 = vmul.f32 %v4136_v27, %v8508_v34  ;;  %v6269_v47 = vmul.f32 %v4135_v52, %v8509_v39  ;;  %v754_v51 = vmul.f32 %v4136_v27, %v8509_v39 }
 0x142   : > { %v565_v29 = vsel %vm550_vm0, %v8033_v30, %v564_v48  ;;  %v8032_v23 = vrot.slane %v6265_v43, 2  ;;  %v6277_v28 = vmul.f32 %v4135_v52, %v4315_v7  ;;  %v876_v9 = vmul.f32 %v4136_v27, %v4315_v7  ;;  %3163 = vadd.xlane.f32.xlu2 %v6141_v20  ;;  %v8512_v27 = vld [vmem:[#allocation8_spill] sm:$0xff] }
 0x143   : > { %v1656_v31 = vadd.f32 %v1620_v13, %v1535_v44  ;;  %v612_v41 = vadd.f32 %v565_v29, %v474_v49  ;;  %v686_v11 = vrot.slane %v632_v1, 2  ;;  %v8035_v50 = vrot.slane %v6269_v47, 3  ;;  %v4138_v44 = vld [vmem:[%s4326_s11 + $0x58] sm:$0xf] }
 0x144   : > { %8510 = vst [vmem:[#allocation80_spill] sm:$0xff] %v6277_v28  ;;  %v808_v25 = vrot.slane %v754_v51, 3  ;;  %v8034_v60 = vrot.slane %v6277_v28, 4  ;;  %v930_v36 = vrot.slane %v876_v9, 4  ;;  %v995_v48 = vmul.f32 %v6283_v6, %v4320_v8 }
 0x145   : > { %v1777_v52 = vadd.f32 %v1741_v26, %v1656_v31  ;;  %v687_v13 = vsel %vm672_vm1, %v8032_v23, %v686_v11  ;;  %v6293_v49 = vmul.f32 %v6283_v6, %v8512_v27  ;;  %v1031_v1 = vmul.f32 %v4138_v44, %v8512_v27 }
 0x146   : > { %v734_v51 = vadd.f32 %v687_v13, %v612_v41  ;;  %v809_v29 = vsel %vm794_vm2, %v8035_v50, %v808_v25  ;;  %v931_v20 = vsel %vm916_vm3, %v8034_v60, %v930_v36  ;;  %v6305_v26 = vmul.f32 %v6283_v6, %v8404_v2  ;;  %v8513_v60 = vld [vmem:[#allocation76_spill] sm:$0xff] }
 0x147   : > { %v1898_v9 = vadd.f32 %v1862_v54, %v1777_v52  ;;  %v8043_v31 = vrot.slane %v6293_v49, 1  ;;  %v1084_v11 = vrot.slane %v1031_v1, 1  ;;  %v1152_v23 = vmul.f32 %v4138_v44, %v8404_v2 }
 0x148   : > { %v856_v30 = vadd.f32 %v809_v29, %v734_v51  ;;  %v6312_v25 = vmul.f32 %v6283_v6, %v8405_v58  ;;  %v1273_v13 = vmul.f32 %v4138_v44, %v8405_v58  ;;  %v3127_v50 = vmul.f32 %v8513_v60, %v8513_v60 }
 0x149   : > { %v2019_v36 = vadd.f32 %v1983_v57, %v1898_v9  ;;  %v1205_v54 = vrot.slane %v1152_v23, 2  ;;  %v6319_v52 = vmul.f32 %v6283_v6, %v4330_v12  ;;  %v2894_v1 = vrot.slane %v6248_v24, 3 }
 0x14a   : > { %v978_v51 = vadd.f32 %v931_v20, %v856_v30  ;;  %v1085_v29 = vsel %vm550_vm0, %v8043_v31, %v1084_v11  ;;  %v1394_v41 = vmul.f32 %v4138_v44, %v4330_v12  ;;  %v8042_v9 = vrot.slane %v6312_v25, 3  ;;  %v6333_v30 = vld [vmem:[%s4326_s11 + $0x68] sm:$0xff]  ;;  %3145 = vadd.xlane.f32.xlu2 %v3127_v50 }
 0x14b   : > { %v2052_v57 = vadd.f32 %v6192_v62, %v2019_v36  ;;  %v1326_v60 = vrot.slane %v1273_v13, 3  ;;  %v8041_v23 = vrot.slane %v6319_v52, 4  ;;  %v8514_v6 = vrot.slane %v6305_v26, 2  ;;  %8515 = vst [vmem:[#allocation83_spill] sm:$0xff] %v6333_v30  ;;  %v4140_v62 = vld [vmem:[%s4326_s11 + $0x70] sm:$0xf] }
 0x14c   : > { %v1011_v8 = vadd.f32 %v995_v48, %v978_v51  ;;  %v1447_v24 = vrot.slane %v1394_v41, 4  ;;  %v6337_v20 = vmul.f32 %v6333_v30, %v4340_v16  ;;  %v1548_v11 = vmul.f32 %v4140_v62, %v4340_v16 }
 0x14d   : > { %v1206_v28 = vsel %vm672_vm1, %v8514_v6, %v1205_v54  ;;  %v2173_v44 = vadd.f32 %v6225_v53, %v2052_v57  ;;  %v6344_v48 = vmul.f32 %v6333_v30, %v4342_v17  ;;  %v1669_v13 = vmul.f32 %v4140_v62, %v4342_v17 }
 0x14e   : > { %v8516_v6 = vrot.slane %v6072_v55, 2  ;;  %v3015_v36 = vrot.slane %v6254_v4, 4  ;;  %v1132_v54 = vadd.f32 %v1085_v29, %v1011_v8  ;;  %v6353_v53 = vmul.f32 %v6333_v30, %v4344_v18 }
 0x14f   : > { %v2294_v50 = vadd.f32 %v6230_v46, %v2173_v44  ;;  %v1327_v51 = vsel %vm794_vm2, %v8042_v9, %v1326_v60  ;;  %v1448_v57 = vsel %vm916_vm3, %v8041_v23, %v1447_v24  ;;  %v1512_v55 = vmul.f32 %v6333_v30, %v4338_v15 }
 0x150   : > { %v2775_v41 = vsel %vm672_vm1, %v2773_v19, %v8516_v6  ;;  %8517 = vst [vmem:[#allocation84_spill] sm:$0xff] %v6353_v53  ;;  %v1253_v4 = vadd.f32 %v1206_v28, %v1132_v54  ;;  %v8046_v8 = vrot.slane %v6337_v20, 1  ;;  %v1601_v19 = vrot.slane %v1548_v11, 1 }
 0x151   : > { %v1790_v29 = vmul.f32 %v4140_v62, %v4344_v18  ;;  %v2415_v46 = vadd.f32 %v6239_v10, %v2294_v50  ;;  %v8045_v44 = vrot.slane %v6344_v48, 2  ;;  %v1722_v60 = vrot.slane %v1669_v13, 2  ;;  %v6382_v50 = vld [vmem:[%s4326_s11 + $0x80] sm:$0xff] }
 0x152   : > { %v6370_v6 = vmul.f32 %v6333_v30, %v4384_v37  ;;  %v1374_v24 = vadd.f32 %v1327_v51, %v1253_v4  ;;  %v8044_v23 = vrot.slane %v6353_v53, 3  ;;  %v1911_v28 = vmul.f32 %v4140_v62, %v4384_v37  ;;  %8520 = vst [vmem:[#allocation85_spill] sm:$0xff] %v6382_v50 }
 0x153   : > { %v1843_v9 = vrot.slane %v1790_v29, 3  ;;  %v2536_v11 = vadd.f32 %v6244_v42, %v2415_v46  ;;  %v8518_v54 = vrot.slane %v6079_v5, 3  ;;  %v8519_v10 = vrot.slane %v6101_v40, 4  ;;  %v4142_v42 = vld [vmem:[%s4326_s11 + $0x88] sm:$0xf] }
 0x154   : > { %v6386_v51 = vmul.f32 %v6382_v50, %v4428_v59  ;;  %v1495_v4 = vadd.f32 %v1448_v57, %v1374_v24  ;;  %v1602_v62 = vsel %vm550_vm0, %v8046_v8, %v1601_v19  ;;  %v2065_v5 = vmul.f32 %v4142_v42, %v4428_v59 }
 0x155   : > { %v2896_v31 = vsel %vm794_vm2, %v2894_v1, %v8518_v54  ;;  %v3017_v13 = vsel %vm916_vm3, %v3015_v36, %v8519_v10  ;;  %v6395_v1 = vmul.f32 %v6382_v50, %v4432_v63  ;;  %v2569_v40 = vadd.f32 %v6215_v14, %v2536_v11 }
 0x156   : > { %v1723_v36 = vsel %vm672_vm1, %v8045_v44, %v1722_v60  ;;  %v2186_v57 = vmul.f32 %v4142_v42, %v4432_v63  ;;  %v1528_v46 = vadd.f32 %v1512_v55, %v1495_v4  ;;  %v1844_v19 = vsel %vm794_vm2, %v8044_v23, %v1843_v9 }
 0x157   : > { %v1964_v24 = vrot.slane %v1911_v28, 4  ;;  %v6408_v54 = vmul.f32 %v6382_v50, %v4492_v35  ;;  %v2690_v14 = vadd.f32 %v6261_v22, %v2569_v40  ;;  %v2307_v60 = vmul.f32 %v4142_v42, %v4492_v35 }
 0x158   : > { %v6415_v10 = vmul.f32 %v6382_v50, %v4499_v56  ;;  %v1649_v55 = vadd.f32 %v1602_v62, %v1528_v46  ;;  %v2118_v4 = vrot.slane %v2065_v5, 1  ;;  %v8052_v9 = vrot.slane %v6395_v1, 2  ;;  %v6427_v46 = vld [vmem:[%s4326_s11 + $0x98] sm:$0xff] }
 0x159   : > { %v2428_v28 = vmul.f32 %v4142_v42, %v4499_v56  ;;  %v2811_v23 = vadd.f32 %v2775_v41, %v2690_v14  ;;  %v2239_v44 = vrot.slane %v2186_v57, 2  ;;  %v8050_v22 = vrot.slane %v6408_v54, 3  ;;  %8523 = vst [vmem:[#allocation87_spill] sm:$0xff] %v6427_v46  ;;  %v4144_v42 = vld [vmem:[%s4326_s11 + $0xa0] sm:$0xf] }
 0x15a   : > { %8521 = vst [vmem:[#allocation86_spill] sm:$0xff] %v6415_v10  ;;  %v2360_v40 = vrot.slane %v2307_v60, 3  ;;  %v1770_v8 = vadd.f32 %v1723_v36, %v1649_v55  ;;  %v2029_v11 = vmul.f32 %v6382_v50, %v4399_v45  ;;  %v8051_v29 = vrot.slane %v6415_v10, 4  ;;  %v8526_v50 = vld [vmem:[#allocation42_spill] sm:$0xff] }
 0x15b   : > { %v2481_v30 = vrot.slane %v2428_v28, 4  ;;  %v2932_v53 = vadd.f32 %v2896_v31, %v2811_v23  ;;  %v8522_v62 = vrot.slane %v6370_v6, 4  ;;  %v6431_v41 = vmul.f32 %v6427_v46, %v4529_v38 }
 0x15c   : > { %v2582_v36 = vmul.f32 %v4144_v42, %v4529_v38  ;;  %v1891_v57 = vadd.f32 %v1844_v19, %v1770_v8  ;;  %v8524_v14 = vrot.slane %v6386_v51, 1  ;;  %v6440_v31 = vmul.f32 %v6427_v46, %v4532_v32 }
 0x15d   : > { %v1965_v5 = vsel %vm916_vm3, %v8522_v62, %v1964_v24  ;;  %v2703_v23 = vmul.f32 %v4144_v42, %v4532_v32  ;;  %v3053_v24 = vadd.f32 %v3017_v13, %v2932_v53  ;;  %v2240_v55 = vsel %vm672_vm1, %v8052_v9, %v2239_v44 }
 0x15e   : > { %v2119_v60 = vsel %vm550_vm0, %v8524_v14, %v2118_v4  ;;  %v2361_v28 = vsel %vm794_vm2, %v8050_v22, %v2360_v40  ;;  %v6451_v8 = vmul.f32 %v6427_v46, %v4534_v61  ;;  %v2012_v19 = vadd.f32 %v1965_v5, %v1891_v57 }
 0x15f   : > { %v2482_v4 = vsel %vm916_vm3, %v8051_v29, %v2481_v30  ;;  %v2824_v62 = vmul.f32 %v4144_v42, %v4534_v61  ;;  %v6459_v53 = vmul.f32 %v6427_v46, %v8505_v33  ;;  %v6462_v44 = vadd.f32 %v8446_v21, %v3053_v24 }
 0x160   : > { %v2635_v40 = vrot.slane %v2582_v36, 1  ;;  %v2945_v14 = vmul.f32 %v4144_v42, %v8505_v33  ;;  %v2045_v22 = vadd.f32 %v2029_v11, %v2012_v19  ;;  %v2756_v57 = vrot.slane %v2703_v23, 2 }
 0x161   : > { %8525 = vst [vmem:[#allocation58_spill] sm:$0xff] %v6462_v44  ;;  %3101 = vadd.xlane.f32.xlu1 %v6462_v44  ;;  %v2877_v29 = vrot.slane %v2824_v62, 3  ;;  %v508_v21 = vmul.f32 %v8526_v50, %v8389_v0  ;;  %v630_v24 = vmul.f32 %v8526_v50, %v8508_v34  ;;  %v473_v11 = vmul.f32 %v8526_v50, %v4307_v3  ;;  %v8527_v62 = vld [vmem:[#allocation78_spill] sm:$0xff]  ;;  %v8529_v34 = vld [vmem:[#allocation60_spill] sm:$0xff] }
 0x162   : > { %v2166_v36 = vadd.f32 %v2119_v60, %v2045_v22  ;;  %v752_v42 = vmul.f32 %v8526_v50, %v8509_v39  ;;  %v874_v23 = vmul.f32 %v8526_v50, %v4315_v7  ;;  %v2998_v19 = vrot.slane %v2945_v14, 4  ;;  %v8528_v22 = vld [vmem:[#allocation38_spill] sm:$0xff] }
 0x163   : > { %v3138_v9 = vmul.f32 %v8527_v62, %v8527_v62  ;;  %v561_v30 = vrot.slane %v508_v21, 1  ;;  %v683_v5 = vrot.slane %v630_v24, 2  ;;  %v1029_v60 = vmul.f32 %v8528_v22, %v8512_v27  ;;  %v8532_v24 = vld [vmem:[#allocation35_spill] sm:$0xff] }
 0x164   : > { %v2287_v13 = vadd.f32 %v2240_v55, %v2166_v36  ;;  %v805_v44 = vrot.slane %v752_v42, 3  ;;  %v927_v0 = vrot.slane %v874_v23, 4  ;;  %v8530_v3 = vrot.slane %v8529_v34, 1 }
 0x165   : > { %v8531_v39 = vrot.slane %v6265_v43, 2  ;;  %v1150_v14 = vmul.f32 %v8528_v22, %v8404_v2  ;;  %v1271_v21 = vmul.f32 %v8528_v22, %v8405_v58  ;;  %v2546_v36 = vmul.f32 %v6427_v46, %v8532_v24 }
 0x166   : > { %v563_v10 = vsel %vm550_vm0, %v561_v30, %v8530_v3  ;;  %v2408_v55 = vadd.f32 %v2361_v28, %v2287_v13  ;;  %v8533_v42 = vrot.slane %v6431_v41, 1  ;;  %v8534_v3 = vrot.slane %v6440_v31, 2 }
 0x167   : > { %v685_v50 = vsel %vm672_vm1, %v683_v5, %v8531_v39  ;;  %v611_v23 = vadd.f32 %v563_v10, %v473_v11  ;;  %v8535_v39 = vrot.slane %v6451_v8, 3  ;;  %v8536_v30 = vrot.slane %v6269_v47, 3  ;;  %v8540_v47 = vld [vmem:[#allocation39_spill] sm:$0xff] }
 0x168   : > { %v2636_v34 = vsel %vm550_vm0, %v8533_v42, %v2635_v40  ;;  %v2757_v43 = vsel %vm672_vm1, %v8534_v3, %v2756_v57  ;;  %v1392_v13 = vmul.f32 %v8528_v22, %v4330_v12  ;;  %v2529_v62 = vadd.f32 %v2482_v4, %v2408_v55  ;;  %v8538_v57 = vld [vmem:[#allocation80_spill] sm:$0xff]  ;;  %v8541_v4 = vld [vmem:[#allocation7_spill] sm:$0xff] }
 0x169   : > { %v2878_v5 = vsel %vm794_vm2, %v8535_v39, %v2877_v29  ;;  %v807_v28 = vsel %vm794_vm2, %v805_v44, %v8536_v30  ;;  %v733_v46 = vadd.f32 %v685_v50, %v611_v23  ;;  %v1081_v58 = vrot.slane %v1029_v60, 1  ;;  %3167 = vadd.xlane.f32.xlu1 %v3138_v9 }
 0x16a   : > { %v1202_v40 = vrot.slane %v1150_v14, 2  ;;  %v8537_v10 = vrot.slane %v6459_v53, 4  ;;  %v8539_v42 = vrot.slane %v8538_v57, 4  ;;  %v1323_v3 = vrot.slane %v1271_v21, 3 }
 0x16b   : > { %v1546_v44 = vmul.f32 %v8540_v47, %v4340_v16  ;;  %v2562_v39 = vadd.f32 %v2546_v36, %v2529_v62  ;;  %v855_v30 = vadd.f32 %v807_v28, %v733_v46  ;;  %v994_v60 = vmul.f32 %v8528_v22, %v8541_v4 }
 0x16c   : > { %v2999_v11 = vsel %vm916_vm3, %v8537_v10, %v2998_v19  ;;  %v929_v29 = vsel %vm916_vm3, %v927_v0, %v8539_v42  ;;  %v1667_v50 = vmul.f32 %v8540_v47, %v4342_v17  ;;  %v1444_v14 = vrot.slane %v1392_v13, 4  ;;  %v6538_v10 = vld [vmem:[%s4326_s11 + $0x78] sm:$0xff] }
 0x16d   : > { %v1511_v9 = vmul.f32 %v8540_v47, %v4338_v15  ;;  %v1788_v0 = vmul.f32 %v8540_v47, %v4344_v18  ;;  %v1909_v19 = vmul.f32 %v8540_v47, %v4384_v37  ;;  %v2683_v21 = vadd.f32 %v2636_v34, %v2562_v39  ;;  %8545 = vst [vmem:[#allocation88_spill] sm:$0xff] %v6538_v10 }
 0x16e   : > { %v977_v55 = vadd.f32 %v929_v29, %v855_v30  ;;  %v8542_v46 = vrot.slane %v6293_v49, 1  ;;  %v8543_v22 = vrot.slane %v6305_v26, 2  ;;  %v8544_v23 = vrot.slane %v6312_v25, 3 }
 0x16f   : > { %v1598_v13 = vrot.slane %v1546_v44, 1  ;;  %v2063_v57 = vmul.f32 %v6538_v10, %v4428_v59  ;;  %v2184_v34 = vmul.f32 %v6538_v10, %v4432_v63  ;;  %v2804_v49 = vadd.f32 %v2757_v43, %v2683_v21  ;;  %v6559_v21 = vld [vmem:[%s4326_s11 + $0x90] sm:$0xff] }
 0x170   : > { %v1083_v62 = vsel %vm550_vm0, %v1081_v58, %v8542_v46  ;;  %v1204_v36 = vsel %vm672_vm1, %v1202_v40, %v8543_v22  ;;  %v1325_v28 = vsel %vm794_vm2, %v1323_v3, %v8544_v23  ;;  %v1010_v58 = vadd.f32 %v994_v60, %v977_v55  ;;  %8548 = vst [vmem:[#allocation89_spill] sm:$0xff] %v6559_v21 }
 0x171   : > { %v1719_v42 = vrot.slane %v1667_v50, 2  ;;  %v2305_v26 = vmul.f32 %v6538_v10, %v4492_v35  ;;  %v8546_v25 = vrot.slane %v6319_v52, 4  ;;  %v1840_v29 = vrot.slane %v1788_v0, 3 }
 0x172   : > { %v1961_v3 = vrot.slane %v1909_v19, 4  ;;  %v2115_v47 = vrot.slane %v2063_v57, 1  ;;  %v2925_v44 = vadd.f32 %v2878_v5, %v2804_v49  ;;  %v1131_v39 = vadd.f32 %v1083_v62, %v1010_v58 }
 0x173   : > { %v1446_v40 = vsel %vm916_vm3, %v1444_v14, %v8546_v25  ;;  %v2236_v30 = vrot.slane %v2184_v34, 2  ;;  %v2426_v46 = vmul.f32 %v6538_v10, %v4499_v56  ;;  %v8547_v43 = vrot.slane %v6337_v20, 1  ;;  %v8550_v20 = vld [vmem:[#allocation84_spill] sm:$0xff] }
 0x174   : > { %v6556_v50 = vmul.f32 %v6538_v10, %v4399_v45  ;;  %v2357_v52 = vrot.slane %v2305_v26, 3  ;;  %v2580_v14 = vmul.f32 %v6559_v21, %v4529_v38  ;;  %v3046_v5 = vadd.f32 %v2999_v11, %v2925_v44 }
 0x175   : > { %v1600_v60 = vsel %vm550_vm0, %v1598_v13, %v8547_v43  ;;  %v1252_v0 = vadd.f32 %v1204_v36, %v1131_v39  ;;  %v8549_v19 = vrot.slane %v6344_v48, 2  ;;  %v2478_v62 = vrot.slane %v2426_v46, 4  ;;  %v6580_v48 = vld [vmem:[%s7798_s3] ss:$0 sm:$0xff]  ;;  %v6618_v39 = vld [vmem:[%s4326_s11 + $0xb0] sm:$0xff] }
 0x176   : > { %v8551_v22 = vrot.slane %v8550_v20, 3  ;;  %v8552_v13 = vrot.slane %v6370_v6, 4  ;;  %v8553_v34 = vrot.slane %v6386_v51, 1  ;;  %v2632_v11 = vrot.slane %v2580_v14, 1  ;;  %8559 = vst [vmem:[#allocation19_spill] sm:$0xff] %v6618_v39  ;;  %v8566_v20 = vld [vmem:[#allocation4_spill] sm:$0xff] }
 0x177   : > { %v1721_v55 = vsel %vm672_vm1, %v1719_v42, %v8549_v19  ;;  %v6583_v36 = vadd.f32 %v6580_v48, %v3046_v5  ;;  %v1373_v58 = vadd.f32 %v1325_v28, %v1252_v0  ;;  %v8555_v6 = vrot.slane %v6395_v1, 2  ;;  %v6625_v43 = vld [vmem:[%s4326_s11 + $0xb8] sm:$0xf]  ;;  %v8564_v5 = vld [vmem:[#allocation82_spill] sm:$0xff] }
 0x178   : > { %v1842_v23 = vsel %vm794_vm2, %v1840_v29, %v8551_v22  ;;  %v1963_v57 = vsel %vm916_vm3, %v1961_v3, %v8552_v13  ;;  %v6575_v49 = vsel %vm550_vm0, %v2115_v47, %v8553_v34  ;;  %v6592_v51 = vmul.f32 %v6559_v21, %v8532_v24  ;;  %v8557_v47 = vld [vmem:[#allocation86_spill] sm:$0xff]  ;;  %8562 = vst [vmem:[#allocation21_spill] sm:$0xff] %v6625_v43 }
 0x179   : > { %8554 = vst [vmem:[#allocation90_spill] sm:$0xff] %v6583_v36  ;;  %v6588_v42 = vsel %vm672_vm1, %v2236_v30, %v8555_v6  ;;  %v8556_v26 = vrot.slane %v6408_v54, 3  ;;  %v6601_v29 = vmul.f32 %v6559_v21, %v4532_v32  ;;  %v6605_v28 = vmul.f32 %v6559_v21, %v4534_v61  ;;  %3087 = vadd.xlane.f32.xlu0 %v6583_v36  ;;  %v8560_v30 = vld [vmem:[#allocation3_spill] sm:$0xff]  ;;  %v8565_v19 = vld [vmem:[#allocation2_spill] sm:$0xff]  ;;  %v8567_v6 = vld [vmem:[#allocation5_spill] sm:$0xff] }
 0x17a   : > { %v6609_v1 = vmul.f32 %v6559_v21, %v8505_v33  ;;  %v1494_v3 = vadd.f32 %v1446_v40, %v1373_v58  ;;  %v8558_v54 = vrot.slane %v8557_v47, 4  ;;  %v6622_v46 = vmul.f32 %v6618_v39, %v8560_v30 }
 0x17b   : > { %v6597_v25 = vsel %vm794_vm2, %v2357_v52, %v8556_v26  ;;  %v525_v52 = vmul.f32 %v6625_v43, %v8560_v30  ;;  %v8563_v14 = vrot.slane %v6431_v41, 1  ;;  %v3128_v0 = vmul.f32 %v8564_v5, %v8564_v5 }
 0x17c   : > { %v6615_v44 = vsel %vm916_vm3, %v2478_v62, %v8558_v54  ;;  %8561 = vst [vmem:[#allocation22_spill] sm:$0xff] %v6622_v46  ;;  %v484_v62 = vmul.f32 %v6618_v39, %v8565_v19  ;;  %v6640_v22 = vmul.f32 %v6618_v39, %v8566_v20  ;;  %v1527_v13 = vadd.f32 %v1511_v9, %v1494_v3 }
 0x17d   : > { %v6632_v40 = vsel %vm550_vm0, %v2632_v11, %v8563_v14  ;;  %v8077_v34 = vrot.slane %v6622_v46, 1  ;;  %v589_v58 = vrot.slane %v525_v52, 1  ;;  %v647_v41 = vmul.f32 %v6625_v43, %v8566_v20 }
 0x17e   : > { %v6648_v26 = vmul.f32 %v6618_v39, %v8567_v6  ;;  %v769_v47 = vmul.f32 %v6625_v43, %v8567_v6  ;;  %v6654_v54 = vmul.f32 %v6618_v39, %v4315_v7  ;;  %v1648_v9 = vadd.f32 %v1600_v60, %v1527_v13  ;;  %v4150_v13 = vld [vmem:[%s4326_s11 + $0xc8] sm:$0xff] }
 0x17f   : > { %v590_v3 = vsel %vm550_vm0, %v8077_v34, %v589_v58  ;;  %v711_v52 = vrot.slane %v647_v41, 2  ;;  %v891_v14 = vmul.f32 %v6625_v43, %v4315_v7  ;;  %v8568_v19 = vrot.slane %v6640_v22, 2  ;;  %v4151_v43 = vld [vmem:[%s4326_s11 + $0xe0] sm:$0xff] }
 0x180   : > { %v622_v11 = vadd.f32 %v590_v3, %v484_v62  ;;  %v8075_v5 = vrot.slane %v6648_v26, 3  ;;  %v833_v21 = vrot.slane %v769_v47, 3  ;;  %v8076_v10 = vrot.slane %v6654_v54, 4  ;;  %v8569_v47 = vld [vmem:[#allocation74_spill] sm:$0xff] }
 0x181   : > { %v1769_v36 = vadd.f32 %v1721_v55, %v1648_v9  ;;  %v712_v39 = vsel %vm672_vm1, %v8568_v19, %v711_v52  ;;  %v955_v60 = vrot.slane %v891_v14, 4  ;;  %v1005_v46 = vmul.f32 %v4150_v13, %v8541_v4  ;;  %3147 = vadd.xlane.f32.xlu0 %v3128_v0  ;;  %v8571_v14 = vld [vmem:[#allocation10_spill] sm:$0xff] }
 0x182   : > { %v744_v58 = vadd.f32 %v712_v39, %v622_v11  ;;  %v834_v41 = vsel %vm794_vm2, %v8075_v5, %v833_v21  ;;  %v6672_v62 = vmul.f32 %v4150_v13, %v8512_v27  ;;  %v1046_v3 = vmul.f32 %v8569_v47, %v8512_v27 }
 0x183   : > { %v1890_v55 = vadd.f32 %v1842_v23, %v1769_v36  ;;  %v956_v19 = vsel %vm916_vm3, %v8076_v10, %v955_v60  ;;  %v6680_v9 = vmul.f32 %v4150_v13, %v8404_v2  ;;  %v1167_v39 = vmul.f32 %v8569_v47, %v8404_v2 }
 0x184   : > { %v866_v11 = vadd.f32 %v834_v41, %v744_v58  ;;  %v8080_v21 = vrot.slane %v6672_v62, 1  ;;  %v1109_v52 = vrot.slane %v1046_v3, 1  ;;  %v6686_v5 = vmul.f32 %v4150_v13, %v8571_v14 }
 0x185   : > { %8570 = vst [vmem:[#allocation24_spill] sm:$0xff] %v6680_v9  ;;  %v2011_v23 = vadd.f32 %v1963_v57, %v1890_v55  ;;  %v1230_v0 = vrot.slane %v1167_v39, 2  ;;  %v1288_v60 = vmul.f32 %v8569_v47, %v8571_v14  ;;  %v2753_v10 = vrot.slane %v6601_v29, 2 }
 0x186   : > { %v988_v34 = vadd.f32 %v956_v19, %v866_v11  ;;  %v1110_v58 = vsel %vm550_vm0, %v8080_v21, %v1109_v52  ;;  %v6696_v41 = vmul.f32 %v4150_v13, %v4330_v12  ;;  %v8082_v57 = vrot.slane %v6686_v5, 3 }
 0x187   : > { %v2044_v3 = vadd.f32 %v6556_v50, %v2011_v23  ;;  %v1351_v55 = vrot.slane %v1288_v60, 3  ;;  %v1409_v39 = vmul.f32 %v8569_v47, %v4330_v12  ;;  %v2874_v36 = vrot.slane %v6605_v28, 3  ;;  %v4152_v60 = vld [vmem:[%s4326_s11 + $0xe8] sm:$0xf] }
 0x188   : > { %v1021_v29 = vadd.f32 %v1005_v46, %v988_v34  ;;  %v8572_v19 = vrot.slane %v6680_v9, 2  ;;  %v6708_v52 = vmul.f32 %v4151_v43, %v4340_v16  ;;  %v1563_v21 = vmul.f32 %v4152_v60, %v4340_v16 }
 0x189   : > { %v2165_v13 = vadd.f32 %v6575_v49, %v2044_v3  ;;  %v1472_v23 = vrot.slane %v1409_v39, 4  ;;  %v2995_v47 = vrot.slane %v6609_v1, 4  ;;  %v6716_v46 = vmul.f32 %v4151_v43, %v4342_v17 }
 0x18a   : > { %v1231_v11 = vsel %vm672_vm1, %v8572_v19, %v1230_v0  ;;  %v1142_v28 = vadd.f32 %v1110_v58, %v1021_v29  ;;  %v1684_v34 = vmul.f32 %v4152_v60, %v4342_v17  ;;  %v1352_v49 = vsel %vm794_vm2, %v8082_v57, %v1351_v55 }
 0x18b   : > { %8573 = vst [vmem:[#allocation26_spill] sm:$0xff] %v6716_v46  ;;  %v2286_v0 = vadd.f32 %v6588_v42, %v2165_v13  ;;  %v8084_v3 = vrot.slane %v6708_v52, 1  ;;  %v1626_v39 = vrot.slane %v1563_v21, 1  ;;  %v8574_v19 = vrot.slane %v6440_v31, 2 }
 0x18c   : > { %v1263_v1 = vadd.f32 %v1231_v11, %v1142_v28  ;;  %v6728_v58 = vmul.f32 %v4151_v43, %v4344_v18  ;;  %v1805_v29 = vmul.f32 %v4152_v60, %v4344_v18  ;;  %v8576_v42 = vrot.slane %v6696_v41, 4 }
 0x18d   : > { %v2755_v50 = vsel %vm672_vm1, %v2753_v10, %v8574_v19  ;;  %v2407_v9 = vadd.f32 %v6597_v25, %v2286_v0  ;;  %v1522_v55 = vmul.f32 %v4151_v43, %v4338_v15  ;;  %v6737_v21 = vmul.f32 %v4151_v43, %v4384_v37 }
 0x18e   : > { %8575 = vst [vmem:[#allocation43_spill] sm:$0xff] %v6728_v58  ;;  %v1473_v13 = vsel %vm916_vm3, %v8576_v42, %v1472_v23  ;;  %v1384_v31 = vadd.f32 %v1352_v49, %v1263_v1  ;;  %v8083_v10 = vrot.slane %v6716_v46, 2  ;;  %v1747_v11 = vrot.slane %v1684_v34, 2  ;;  %v8579_v1 = vld [vmem:[#allocation75_spill] sm:$0xff] }
 0x18f   : > { %v1926_v28 = vmul.f32 %v4152_v60, %v4384_v37  ;;  %v2528_v19 = vadd.f32 %v6615_v44, %v2407_v9  ;;  %v8577_v57 = vrot.slane %v6451_v8, 3  ;;  %v8578_v0 = vrot.slane %v6459_v53, 4 }
 0x190   : > { %v1627_v43 = vsel %vm550_vm0, %v8084_v3, %v1626_v39  ;;  %v1505_v49 = vadd.f32 %v1473_v13, %v1384_v31  ;;  %v8087_v34 = vrot.slane %v6728_v58, 3  ;;  %v1868_v60 = vrot.slane %v1805_v29, 3  ;;  %v461_v13 = vld [vmem:[%s4326_s11 + $0x110] sm:$0xff] }
 0x191   : > { %v2876_v25 = vsel %vm794_vm2, %v2874_v36, %v8577_v57  ;;  %v2997_v23 = vsel %vm916_vm3, %v2995_v47, %v8578_v0  ;;  %v6754_v44 = vmul.f32 %v4428_v59, %v8579_v1  ;;  %v2561_v8 = vadd.f32 %v6592_v51, %v2528_v19  ;;  %v8580_v36 = vld [vmem:[#allocation52_spill] sm:$0xff] }
 0x192   : > { %v8088_v53 = vrot.slane %v6737_v21, 4  ;;  %v1989_v9 = vrot.slane %v1926_v28, 4  ;;  %v2080_v57 = vmul.f32 %v4428_v59, %v8580_v36  ;;  %v1538_v47 = vadd.f32 %v1522_v55, %v1505_v49  ;;  %v462_v28 = vld [vmem:[%s4326_s11 + $0x118] sm:$0xf] }
 0x193   : > { %v1748_v39 = vsel %vm672_vm1, %v8083_v10, %v1747_v11  ;;  %v6765_v29 = vmul.f32 %v4432_v63, %v8579_v1  ;;  %v2201_v42 = vmul.f32 %v4432_v63, %v8580_v36  ;;  %v2682_v51 = vadd.f32 %v6632_v40, %v2561_v8 }
 0x194   : > { %v2039_v31 = vmul.f32 %v4399_v45, %v8579_v1  ;;  %v6775_v55 = vmul.f32 %v4492_v35, %v8579_v1  ;;  %v2322_v11 = vmul.f32 %v4492_v35, %v8580_v36  ;;  %v1659_v19 = vadd.f32 %v1627_v43, %v1538_v47 }
 0x195   : > { %v1869_v0 = vsel %vm794_vm2, %v8087_v34, %v1868_v60  ;;  %v6786_v40 = vmul.f32 %v4499_v56, %v8579_v1  ;;  %v2803_v8 = vadd.f32 %v2755_v50, %v2682_v51  ;;  %v1990_v10 = vsel %vm916_vm3, %v8088_v53, %v1989_v9 }
 0x196   : > { %v2143_v3 = vrot.slane %v2080_v57, 1  ;;  %v2443_v46 = vmul.f32 %v4499_v56, %v8580_v36  ;;  %v1780_v43 = vadd.f32 %v1748_v39, %v1659_v19  ;;  %v2264_v58 = vrot.slane %v2201_v42, 2 }
 0x197   : > { %v6795_v60 = vmul.f32 %v4529_v38, %v461_v13  ;;  %v2924_v34 = vadd.f32 %v2876_v25, %v2803_v8  ;;  %v8091_v1 = vrot.slane %v6775_v55, 3  ;;  %v2385_v49 = vrot.slane %v2322_v11, 3 }
 0x198   : > { %v2597_v50 = vmul.f32 %v4529_v38, %v462_v28  ;;  %v1901_v51 = vadd.f32 %v1869_v0, %v1780_v43  ;;  %v8089_v9 = vrot.slane %v6786_v40, 4  ;;  %v2506_v57 = vrot.slane %v2443_v46, 4 }
 0x199   : > { %8581 = vst [vmem:[#allocation45_spill] sm:$0xff] %v6795_v60  ;;  %v8090_v53 = vrot.slane %v6795_v60, 1  ;;  %v3045_v36 = vadd.f32 %v2997_v23, %v2924_v34  ;;  %v6802_v19 = vmul.f32 %v4532_v32, %v461_v13  ;;  %v2718_v42 = vmul.f32 %v4532_v32, %v462_v28 }
 0x19a   : > { %v2660_v39 = vrot.slane %v2597_v50, 1  ;;  %v2022_v47 = vadd.f32 %v1990_v10, %v1901_v51  ;;  %v6806_v25 = vmul.f32 %v4534_v61, %v461_v13  ;;  %v8583_v0 = vrot.slane %v6754_v44, 1 }
 0x19b   : > { %v6809_v11 = vadd.f32 %v6580_v48, %v3045_v36  ;;  %v8584_v8 = vrot.slane %v6765_v29, 2  ;;  %v2556_v34 = vmul.f32 %v8532_v24, %v461_v13  ;;  %v2386_v10 = vsel %vm794_vm2, %v8091_v1, %v2385_v49  ;;  %v8587_v1 = vld [vmem:[#allocation2_spill] sm:$0xff] }
 0x19c   : > { %v2144_v46 = vsel %vm550_vm0, %v8583_v0, %v2143_v3  ;;  %v2055_v43 = vadd.f32 %v2039_v31, %v2022_v47  ;;  %v2507_v50 = vsel %vm916_vm3, %v8089_v9, %v2506_v57  ;;  %v2839_v51 = vmul.f32 %v4534_v61, %v462_v28  ;;  %v8585_v47 = vld [vmem:[#allocation58_spill] sm:$0xff]  ;;  %v6838_v9 = vld [vmem:[%s4326_s11 + $0xa8] sm:$0xff] }
 0x19d   : > { %8582 = vst [vmem:[#allocation46_spill] sm:$0xff] %v6809_v11  ;;  %v2265_v23 = vsel %vm672_vm1, %v8584_v8, %v2264_v58  ;;  %3085 = vadd.xlane.f32.xlu2 %v6809_v11  ;;  %v2661_v3 = vsel %vm550_vm0, %v8090_v53, %v2660_v39  ;;  %v2781_v31 = vrot.slane %v2718_v42, 2  ;;  %v3137_v36 = vmul.f32 %v8585_v47, %v8585_v47  ;;  %v8588_v58 = vld [vmem:[#allocation90_spill] sm:$0xff] }
 0x19e   : > { %v2176_v49 = vadd.f32 %v2144_v46, %v2055_v43  ;;  %v6834_v57 = vmul.f32 %v8505_v33, %v461_v13  ;;  %v2960_v8 = vmul.f32 %v8505_v33, %v462_v28  ;;  %8586 = vst [vmem:[#allocation9_spill] sm:$0xff] %v6838_v9  ;;  %v523_v39 = vmul.f32 %v6838_v9, %v8560_v30 }
 0x19f   : > { %3165 = vadd.xlane.f32.xlu0 %v3137_v36  ;;  %v645_v42 = vmul.f32 %v6838_v9, %v8566_v20  ;;  %v767_v53 = vmul.f32 %v6838_v9, %v8567_v6  ;;  %v889_v46 = vmul.f32 %v6838_v9, %v4315_v7  ;;  %v2902_v13 = vrot.slane %v2839_v51, 3  ;;  %v4154_v36 = vld [vmem:[%s4326_s11 + $0xc0] sm:$0xff] }
 0x1a0   : > { %v2297_v43 = vadd.f32 %v2265_v23, %v2176_v49  ;;  %v483_v28 = vmul.f32 %v6838_v9, %v8587_v1  ;;  %v1044_v0 = vmul.f32 %v4154_v36, %v8512_v27  ;;  %v3130_v47 = vmul.f32 %v8588_v58, %v8588_v58  ;;  %v8590_v9 = vld [vmem:[#allocation22_spill] sm:$0xff] }
 0x1a1   : > { %v586_v60 = vrot.slane %v523_v39, 1  ;;  %v708_v24 = vrot.slane %v645_v42, 2  ;;  %v830_v33 = vrot.slane %v767_v53, 3  ;;  %v8589_v6 = vrot.slane %v6802_v19, 2 }
 0x1a2   : > { %v2418_v61 = vadd.f32 %v2386_v10, %v2297_v43  ;;  %v8104_v23 = vrot.slane %v6834_v57, 4  ;;  %v1165_v51 = vmul.f32 %v4154_v36, %v8404_v2  ;;  %v3023_v49 = vrot.slane %v2960_v8, 4 }
 0x1a3   : > { %v2782_v20 = vsel %vm672_vm1, %v8589_v6, %v2781_v31  ;;  %v8591_v7 = vrot.slane %v8590_v9, 1  ;;  %v8592_v58 = vrot.slane %v6640_v22, 2  ;;  %v952_v53 = vrot.slane %v889_v46, 4 }
 0x1a4   : > { %v2539_v10 = vadd.f32 %v2507_v50, %v2418_v61  ;;  %v6867_v42 = vmul.f32 %v6809_v11, %v6809_v11  ;;  %v1106_v31 = vrot.slane %v1044_v0, 1  ;;  %v8593_v43 = vrot.slane %v6806_v25, 3 }
 0x1a5   : > { %v588_v27 = vsel %vm550_vm0, %v586_v60, %v8591_v7  ;;  %v710_v39 = vsel %vm672_vm1, %v708_v24, %v8592_v58  ;;  %3151 = vadd.xlane.f32.xlu2 %v3130_v47  ;;  %v8594_v9 = vrot.slane %v6648_v26, 3  ;;  %v1227_v22 = vrot.slane %v1165_v51, 2  ;;  %v4155_v58 = vld [vmem:[%s4326_s11 + $0xd8] sm:$0xff] }
 0x1a6   : > { %v621_v6 = vadd.f32 %v588_v27, %v483_v28  ;;  %v2903_v8 = vsel %vm794_vm2, %v8593_v43, %v2902_v13  ;;  %v1286_v24 = vmul.f32 %v4154_v36, %v8571_v14  ;;  %v2572_v60 = vadd.f32 %v2556_v34, %v2539_v10  ;;  %v8597_v10 = vld [vmem:[#allocation24_spill] sm:$0xff] }
 0x1a7   : > { %v832_v7 = vsel %vm794_vm2, %v830_v33, %v8594_v9  ;;  %v1407_v50 = vmul.f32 %v4154_v36, %v4330_v12  ;;  %v1561_v27 = vmul.f32 %v4155_v58, %v4340_v16  ;;  %v3024_v0 = vsel %vm916_vm3, %v8104_v23, %v3023_v49 }
 0x1a8   : > { %v743_v61 = vadd.f32 %v710_v39, %v621_v6  ;;  %v8595_v47 = vrot.slane %v6654_v54, 4  ;;  %v1004_v33 = vmul.f32 %v4154_v36, %v8541_v4  ;;  %v1682_v46 = vmul.f32 %v4155_v58, %v4342_v17 }
 0x1a9   : > { %v2693_v13 = vadd.f32 %v2661_v3, %v2572_v60  ;;  %v8596_v28 = vrot.slane %v6672_v62, 1  ;;  %v1803_v39 = vmul.f32 %v4155_v58, %v4344_v18  ;;  %v8598_v6 = vrot.slane %v8597_v10, 2  ;;  %v8599_v62 = vld [vmem:[#allocation77_spill] sm:$0xff] }
 0x1aa   : > { %v954_v26 = vsel %vm916_vm3, %v952_v53, %v8595_v47  ;;  %v865_v34 = vadd.f32 %v832_v7, %v743_v61  ;;  %v1348_v54 = vrot.slane %v1286_v24, 3  ;;  %v1521_v53 = vmul.f32 %v4155_v58, %v4338_v15  ;;  %v6903_v24 = vld [vmem:[%s4326_s11 + $0x108] sm:$0xff] }
 0x1ab   : > { %v1108_v51 = vsel %vm550_vm0, %v1106_v31, %v8596_v28  ;;  %v1229_v49 = vsel %vm672_vm1, %v1227_v22, %v8598_v6  ;;  %v1924_v36 = vmul.f32 %v4155_v58, %v4384_v37  ;;  %v2814_v43 = vadd.f32 %v2782_v20, %v2693_v13 }
 0x1ac   : > { %v987_v9 = vadd.f32 %v954_v26, %v865_v34  ;;  %v1469_v3 = vrot.slane %v1407_v50, 4  ;;  %v1623_v7 = vrot.slane %v1561_v27, 1  ;;  %v1744_v60 = vrot.slane %v1682_v46, 2 }
 0x1ad   : > { %v2078_v61 = vmul.f32 %v4428_v59, %v8599_v62  ;;  %v2199_v31 = vmul.f32 %v4432_v63, %v8599_v62  ;;  %v2320_v47 = vmul.f32 %v4492_v35, %v8599_v62  ;;  %v2935_v22 = vadd.f32 %v2903_v8, %v2814_v43 }
 0x1ae   : > { %v1020_v28 = vadd.f32 %v1004_v33, %v987_v9  ;;  %v1865_v10 = vrot.slane %v1803_v39, 3  ;;  %v2441_v20 = vmul.f32 %v4499_v56, %v8599_v62  ;;  %v8600_v50 = vrot.slane %v6686_v5, 3 }
 0x1af   : > { %v1986_v27 = vrot.slane %v1924_v36, 4  ;;  %v2140_v26 = vrot.slane %v2078_v61, 1  ;;  %v2261_v46 = vrot.slane %v2199_v31, 2  ;;  %v3056_v13 = vadd.f32 %v3024_v0, %v2935_v22 }
 0x1b0   : > { %v1350_v58 = vsel %vm794_vm2, %v1348_v54, %v8600_v50  ;;  %v1141_v34 = vadd.f32 %v1108_v51, %v1020_v28  ;;  %v8601_v6 = vrot.slane %v6696_v41, 4  ;;  %v2382_v43 = vrot.slane %v2320_v47, 3  ;;  %v8603_v51 = vld [vmem:[#allocation26_spill] sm:$0xff] }
 0x1b1   : > { %v8602_v33 = vrot.slane %v6708_v52, 1  ;;  %v6918_v5 = vmul.f32 %v4399_v45, %v8599_v62  ;;  %v2503_v54 = vrot.slane %v2441_v20, 4  ;;  %v6922_v36 = vmul.f32 %v4529_v38, %v6903_v24 }
 0x1b2   : > { %v1471_v8 = vsel %vm916_vm3, %v1469_v3, %v8601_v6  ;;  %v6925_v0 = vadd.f32 %v6580_v48, %v3056_v13  ;;  %v1262_v41 = vadd.f32 %v1229_v49, %v1141_v34  ;;  %v8604_v9 = vrot.slane %v8603_v51, 2  ;;  %v8605_v3 = vld [vmem:[#allocation43_spill] sm:$0xff] }
 0x1b3   : > { %v1625_v39 = vsel %vm550_vm0, %v1623_v7, %v8602_v33  ;;  %v8606_v61 = vrot.slane %v8605_v3, 3  ;;  %v8607_v62 = vrot.slane %v6737_v21, 4  ;;  %v8608_v47 = vrot.slane %v6754_v44, 1  ;;  %v4156_v44 = vld [vmem:[%s4326_s11 + $0x48] sm:$0xff]  ;;  %v8615_v3 = vld [vmem:[#allocation5_spill] sm:$0xff] }
 0x1b4   : > { %v1746_v52 = vsel %vm672_vm1, %v1744_v60, %v8604_v9  ;;  %v8609_v28 = vrot.slane %v6765_v29, 2  ;;  %v6948_v60 = vmul.f32 %v4532_v32, %v6903_v24  ;;  %3107 = vadd.xlane.f32.xlu1 %v6925_v0  ;;  %v8610_v21 = vrot.slane %v6775_v55, 3  ;;  %v8611_v29 = vld [vmem:[#allocation81_spill] sm:$0xff]  ;;  %v8613_v55 = vld [vmem:[#allocation4_spill] sm:$0xff] }
 0x1b5   : > { %v1867_v7 = vsel %vm794_vm2, %v1865_v10, %v8606_v61  ;;  %v1988_v31 = vsel %vm916_vm3, %v1986_v27, %v8607_v62  ;;  %v6939_v22 = vsel %vm550_vm0, %v2140_v26, %v8608_v47  ;;  %v1383_v10 = vadd.f32 %v1350_v58, %v1262_v41 }
 0x1b6   : > { %v6944_v49 = vsel %vm672_vm1, %v2261_v46, %v8609_v28  ;;  %v6954_v20 = vsel %vm794_vm2, %v2382_v43, %v8610_v21  ;;  %v511_v50 = vmul.f32 %v4156_v44, %v8560_v30  ;;  %v6960_v27 = vmul.f32 %v8611_v29, %v8560_v30 }
 0x1b7   : > { %v8612_v26 = vrot.slane %v6786_v40, 4  ;;  %v475_v58 = vmul.f32 %v4156_v44, %v8587_v1  ;;  %v633_v34 = vmul.f32 %v4156_v44, %v8613_v55  ;;  %v1504_v6 = vadd.f32 %v1471_v8, %v1383_v10 }
 0x1b8   : > { %v566_v43 = vrot.slane %v511_v50, 1  ;;  %v8105_v33 = vrot.slane %v6960_v27, 1  ;;  %v6973_v41 = vmul.f32 %v8611_v29, %v8613_v55  ;;  %v755_v61 = vmul.f32 %v4156_v44, %v8615_v3  ;;  %v8616_v50 = vld [vmem:[#allocation6_spill] sm:$0xff] }
 0x1b9   : > { %v6965_v46 = vsel %vm916_vm3, %v2503_v54, %v8612_v26  ;;  %v8614_v54 = vld [vmem:[#allocation36_spill] sm:$0xff]  ;;  %v688_v9 = vrot.slane %v633_v34, 2  ;;  %v1537_v62 = vadd.f32 %v1521_v53, %v1504_v6  ;;  %v6987_v28 = vmul.f32 %v8611_v29, %v8615_v3 }
 0x1ba   : > { %v6978_v51 = vmul.f32 %v8614_v54, %v6903_v24  ;;  %v568_v8 = vsel %vm550_vm0, %v566_v43, %v8105_v33  ;;  %v8106_v47 = vrot.slane %v6973_v41, 2  ;;  %v810_v21 = vrot.slane %v755_v61, 3  ;;  %v4157_v43 = vld [vmem:[%s4326_s11 + $0x60] sm:$0xff]  ;;  %v8617_v61 = vld [vmem:[#allocation8_spill] sm:$0xff] }
 0x1bb   : > { %v613_v10 = vadd.f32 %v568_v8, %v475_v58  ;;  %v877_v26 = vmul.f32 %v4156_v44, %v8616_v50  ;;  %v6992_v34 = vmul.f32 %v8611_v29, %v8616_v50  ;;  %v1658_v23 = vadd.f32 %v1625_v39, %v1537_v62 }
 0x1bc   : > { %v690_v53 = vsel %vm672_vm1, %v688_v9, %v8106_v47  ;;  %v8107_v6 = vrot.slane %v6987_v28, 3  ;;  %v996_v33 = vmul.f32 %v4157_v43, %v8541_v4  ;;  %v1032_v44 = vmul.f32 %v4157_v43, %v8617_v61  ;;  %3149 = vadd.xlane.f32.xlu1 %v6867_v42  ;;  %v8618_v9 = vld [vmem:[#allocation83_spill] sm:$0xff] }
 0x1bd   : > { %v735_v40 = vadd.f32 %v690_v53, %v613_v10  ;;  %v932_v13 = vrot.slane %v877_v26, 4  ;;  %v8109_v58 = vrot.slane %v6992_v34, 4  ;;  %v1779_v29 = vadd.f32 %v1746_v52, %v1658_v23 }
 0x1be   : > { %v812_v39 = vsel %vm794_vm2, %v810_v21, %v8107_v6  ;;  %v7008_v62 = vmul.f32 %v8618_v9, %v8617_v61  ;;  %v1153_v8 = vmul.f32 %v4157_v43, %v8404_v2  ;;  %v1086_v26 = vrot.slane %v1032_v44, 1 }
 0x1bf   : > { %v857_v47 = vadd.f32 %v812_v39, %v735_v40  ;;  %v934_v10 = vsel %vm916_vm3, %v932_v13, %v8109_v58  ;;  %v7016_v42 = vmul.f32 %v8618_v9, %v8404_v2  ;;  %v1900_v23 = vadd.f32 %v1867_v7, %v1779_v29 }
 0x1c0   : > { %8619 = vst [vmem:[#allocation47_spill] sm:$0xff] %v7008_v62  ;;  %v8111_v52 = vrot.slane %v7008_v62, 1  ;;  %v1207_v21 = vrot.slane %v1153_v8, 2  ;;  %v1274_v53 = vmul.f32 %v4157_v43, %v8571_v14  ;;  %v7023_v40 = vmul.f32 %v8618_v9, %v8571_v14  ;;  %v8623_v62 = vld [vmem:[#allocation85_spill] sm:$0xff] }
 0x1c1   : > { %v979_v6 = vadd.f32 %v934_v10, %v857_v47  ;;  %v1395_v13 = vmul.f32 %v4157_v43, %v4330_v12  ;;  %v2021_v44 = vadd.f32 %v1988_v31, %v1900_v23  ;;  %v7031_v29 = vmul.f32 %v8618_v9, %v4330_v12  ;;  %v8620_v47 = vld [vmem:[#allocation40_spill] sm:$0xff] }
 0x1c2   : > { %v1088_v39 = vsel %vm550_vm0, %v1086_v26, %v8111_v52  ;;  %v1328_v7 = vrot.slane %v1274_v53, 3  ;;  %v2958_v8 = vmul.f32 %v8620_v47, %v6903_v24  ;;  %v8113_v58 = vrot.slane %v7023_v40, 3  ;;  %v8622_v23 = vld [vmem:[#allocation88_spill] sm:$0xff] }
 0x1c3   : > { %v1012_v10 = vadd.f32 %v996_v33, %v979_v6  ;;  %v1449_v11 = vrot.slane %v1395_v13, 4  ;;  %v2054_v4 = vadd.f32 %v6918_v5, %v2021_v44  ;;  %v8621_v31 = vrot.slane %v7016_v42, 2 }
 0x1c4   : > { %v8115_v26 = vrot.slane %v7031_v29, 4  ;;  %v1549_v53 = vmul.f32 %v8622_v23, %v4340_v16  ;;  %v2899_v9 = vrot.slane %v6978_v51, 3  ;;  %v7046_v33 = vmul.f32 %v8623_v62, %v4340_v16 }
 0x1c5   : > { %v1209_v43 = vsel %vm672_vm1, %v1207_v21, %v8621_v31  ;;  %v1133_v52 = vadd.f32 %v1088_v39, %v1012_v10  ;;  %v1670_v6 = vmul.f32 %v8622_v23, %v4342_v17  ;;  %v2175_v5 = vadd.f32 %v6939_v22, %v2054_v4 }
 0x1c6   : > { %v1330_v21 = vsel %vm794_vm2, %v1328_v7, %v8113_v58  ;;  %v1513_v13 = vmul.f32 %v8622_v23, %v4338_v15  ;;  %v7058_v51 = vmul.f32 %v8623_v62, %v4342_v17  ;;  %v1451_v39 = vsel %vm916_vm3, %v1449_v11, %v8115_v26 }
 0x1c7   : > { %v1254_v44 = vadd.f32 %v1209_v43, %v1133_v52  ;;  %v1603_v10 = vrot.slane %v1549_v53, 1  ;;  %v2296_v4 = vadd.f32 %v6944_v49, %v2175_v5  ;;  %v1724_v22 = vrot.slane %v1670_v6, 2  ;;  %v8624_v53 = vld [vmem:[#allocation35_spill] sm:$0xff]  ;;  %v8625_v5 = vld [vmem:[#allocation45_spill] sm:$0xff] }
 0x1c8   : > { %v1791_v7 = vmul.f32 %v8622_v23, %v4344_v18  ;;  %v7069_v58 = vmul.f32 %v8623_v62, %v4344_v18  ;;  %v1912_v43 = vmul.f32 %v8622_v23, %v4384_v37  ;;  %v7076_v11 = vmul.f32 %v8623_v62, %v4384_v37 }
 0x1c9   : > { %v1375_v15 = vadd.f32 %v1330_v21, %v1254_v44  ;;  %v2417_v49 = vadd.f32 %v6954_v20, %v2296_v4  ;;  %v2555_v6 = vmul.f32 %v8624_v53, %v6903_v24  ;;  %v8626_v26 = vrot.slane %v8625_v5, 1 }
 0x1ca   : > { %v8627_v31 = vrot.slane %v6922_v36, 1  ;;  %v8628_v44 = vrot.slane %v6802_v19, 2  ;;  %v8629_v52 = vrot.slane %v6948_v60, 2  ;;  %v8630_v62 = vrot.slane %v6806_v25, 3 }
 0x1cb   : > { %v3020_v20 = vrot.slane %v2958_v8, 4  ;;  %v1496_v4 = vadd.f32 %v1451_v39, %v1375_v15  ;;  %v2538_v24 = vadd.f32 %v6965_v46, %v2417_v49  ;;  %v8631_v5 = vrot.slane %v7046_v33, 1  ;;  %v8633_v15 = vld [vmem:[#allocation89_spill] sm:$0xff]  ;;  %v8634_v46 = vld [vmem:[#allocation87_spill] sm:$0xff] }
 0x1cc   : > { %v2659_v21 = vsel %vm550_vm0, %v8627_v31, %v8626_v26  ;;  %v2780_v23 = vsel %vm672_vm1, %v8629_v52, %v8628_v44  ;;  %v2901_v37 = vsel %vm794_vm2, %v2899_v9, %v8630_v62  ;;  %v1845_v18 = vrot.slane %v1791_v7, 3 }
 0x1cd   : > { %v1605_v36 = vsel %vm550_vm0, %v1603_v10, %v8631_v5  ;;  %v8118_v26 = vrot.slane %v7069_v58, 3  ;;  %v1529_v19 = vadd.f32 %v1513_v13, %v1496_v4  ;;  %v8632_v60 = vrot.slane %v7058_v51, 2 }
 0x1ce   : > { %v1966_v52 = vrot.slane %v1912_v43, 4  ;;  %v8120_v25 = vrot.slane %v7076_v11, 4  ;;  %v2571_v9 = vadd.f32 %v2555_v6, %v2538_v24  ;;  %v2066_v8 = vmul.f32 %v8633_v15, %v4428_v59 }
 0x1cf   : > { %v1726_v31 = vsel %vm672_vm1, %v1724_v22, %v8632_v60  ;;  %v7107_v39 = vmul.f32 %v8634_v46, %v4428_v59  ;;  %v2187_v10 = vmul.f32 %v8633_v15, %v4432_v63  ;;  %v1650_v7 = vadd.f32 %v1605_v36, %v1529_v19 }
 0x1d0   : > { %v7113_v13 = vmul.f32 %v8634_v46, %v4432_v63  ;;  %v2308_v22 = vmul.f32 %v8633_v15, %v4492_v35  ;;  %v7119_v43 = vmul.f32 %v8634_v46, %v4492_v35  ;;  %v2692_v49 = vadd.f32 %v2659_v21, %v2571_v9 }
 0x1d1   : > { %v1847_v6 = vsel %vm794_vm2, %v1845_v18, %v8118_v26  ;;  %v2429_v44 = vmul.f32 %v8633_v15, %v4499_v56  ;;  %v7128_v62 = vmul.f32 %v8634_v46, %v4499_v56  ;;  %v8635_v4 = vrot.slane %v6834_v57, 4 }
 0x1d2   : > { %v1771_v5 = vadd.f32 %v1726_v31, %v1650_v7  ;;  %v1968_v21 = vsel %vm916_vm3, %v1966_v52, %v8120_v25  ;;  %v2030_v36 = vmul.f32 %v8633_v15, %v4399_v45  ;;  %v2813_v18 = vadd.f32 %v2780_v23, %v2692_v49  ;;  %v8636_v52 = vld [vmem:[#allocation9_spill] sm:$0xff]  ;;  %v8637_v23 = vld [vmem:[#allocation19_spill] sm:$0xff] }
 0x1d3   : > { %v3022_v24 = vsel %vm916_vm3, %v3020_v20, %v8635_v4  ;;  %v2120_v19 = vrot.slane %v2066_v8, 1  ;;  %v8124_v60 = vrot.slane %v7107_v39, 1  ;;  %v2241_v9 = vrot.slane %v2187_v10, 2 }
 0x1d4   : > { %v1892_v26 = vadd.f32 %v1847_v6, %v1771_v5  ;;  %v8123_v46 = vrot.slane %v7113_v13, 2  ;;  %v2362_v56 = vrot.slane %v2308_v22, 3  ;;  %v8122_v57 = vrot.slane %v7119_v43, 3 }
 0x1d5   : > { %v2934_v20 = vadd.f32 %v2901_v37, %v2813_v18  ;;  %v2483_v31 = vrot.slane %v2429_v44, 4  ;;  %v8121_v7 = vrot.slane %v7128_v62, 4  ;;  %v2583_v4 = vmul.f32 %v8636_v52, %v4529_v38 }
 0x1d6   : > { %v2013_v25 = vadd.f32 %v1968_v21, %v1892_v26  ;;  %v7146_v15 = vmul.f32 %v8637_v23, %v4529_v38  ;;  %v2704_v8 = vmul.f32 %v8636_v52, %v4532_v32  ;;  %v2122_v22 = vsel %vm550_vm0, %v2120_v19, %v8124_v60 }
 0x1d7   : > { %v3055_v10 = vadd.f32 %v3022_v24, %v2934_v20  ;;  %v7155_v37 = vmul.f32 %v8637_v23, %v4532_v32  ;;  %v2243_v26 = vsel %vm672_vm1, %v2241_v9, %v8123_v46  ;;  %v2547_v6 = vmul.f32 %v8636_v52, %v8624_v53 }
 0x1d8   : > { %v2046_v49 = vadd.f32 %v2030_v36, %v2013_v25  ;;  %v2364_v24 = vsel %vm794_vm2, %v2362_v56, %v8122_v57  ;;  %v2485_v5 = vsel %vm916_vm3, %v2483_v31, %v8121_v7  ;;  %v2637_v25 = vrot.slane %v2583_v4, 1  ;;  %v4158_v56 = vld [vmem:[%s4326_s11 + $0x58] sm:$0xf] }
 0x1d9   : > { %v7163_v44 = vadd.f32 %v6580_v48, %v3055_v10  ;;  %v2638_v36 = vrot.slane %v7146_v15, 1  ;;  %v2758_v18 = vrot.slane %v2704_v8, 2  ;;  %v2825_v19 = vmul.f32 %v8636_v52, %v8614_v54 }
 0x1da   : > { %v2167_v21 = vadd.f32 %v2122_v22, %v2046_v49  ;;  %v2759_v20 = vrot.slane %v7155_v37, 2  ;;  %v513_v10 = vmul.f32 %v4158_v56, %v8560_v30  ;;  %v635_v31 = vmul.f32 %v4158_v56, %v8613_v55  ;;  %v4159_v22 = vld [vmem:[%s4326_s11 + $0x50] sm:$0xff] }
 0x1db   : > { %3105 = vadd.xlane.f32.xlu0 %v7163_v44  ;;  %v3139_v9 = vmul.f32 %v7163_v44, %v7163_v44  ;;  %v476_v8 = vmul.f32 %v4159_v22, %v8587_v1  ;;  %v757_v49 = vmul.f32 %v4158_v56, %v8615_v3  ;;  %v879_v7 = vmul.f32 %v4158_v56, %v8616_v50 }
 0x1dc   : > { %v2288_v4 = vadd.f32 %v2243_v26, %v2167_v21  ;;  %v7187_v57 = vmul.f32 %v8637_v23, %v8614_v54  ;;  %v2946_v46 = vmul.f32 %v8636_v52, %v8620_v47  ;;  %v569_v30 = vrot.slane %v513_v10, 1  ;;  %v4160_v10 = vld [vmem:[%s4326_s11 + $0x70] sm:$0xf] }
 0x1dd   : > { %3169 = vadd.xlane.f32.xlu2 %v3139_v9  ;;  %v691_v60 = vrot.slane %v635_v31, 2  ;;  %v7193_v26 = vmul.f32 %v8637_v23, %v8620_v47  ;;  %v3140_v1 = vmul.f32 %v6925_v0, %v6925_v0  ;;  %v813_v3 = vrot.slane %v757_v49, 3 }
 0x1de   : > { %v2409_v55 = vadd.f32 %v2364_v24, %v2288_v4  ;;  %v8638_v50 = vrot.slane %v6960_v27, 1  ;;  %v8639_v9 = vrot.slane %v6973_v41, 2  ;;  %v935_v52 = vrot.slane %v879_v7, 4 }
 0x1df   : > { %v1034_v24 = vmul.f32 %v4160_v10, %v8617_v61  ;;  %v2639_v4 = vsel %vm550_vm0, %v2637_v25, %v2638_v36  ;;  %v2879_v49 = vrot.slane %v2825_v19, 3  ;;  %v2880_v27 = vrot.slane %v7187_v57, 3 }
 0x1e0   : > { %v570_v21 = vsel %vm550_vm0, %v8638_v50, %v569_v30  ;;  %v692_v56 = vsel %vm672_vm1, %v8639_v9, %v691_v60  ;;  %v2530_v31 = vadd.f32 %v2485_v5, %v2409_v55  ;;  %v8640_v30 = vrot.slane %v6987_v28, 3 }
 0x1e1   : > { %v614_v22 = vadd.f32 %v570_v21, %v476_v8  ;;  %v1155_v60 = vmul.f32 %v4160_v10, %v8404_v2  ;;  %v2760_v61 = vsel %vm672_vm1, %v2758_v18, %v2759_v20  ;;  %v3000_v5 = vrot.slane %v2946_v46, 4  ;;  %v8642_v21 = vld [vmem:[#allocation7_spill] sm:$0xff] }
 0x1e2   : > { %v814_v41 = vsel %vm794_vm2, %v8640_v30, %v813_v3  ;;  %v2563_v7 = vadd.f32 %v2547_v6, %v2530_v31  ;;  %v3001_v25 = vrot.slane %v7193_v26, 4  ;;  %v8641_v19 = vrot.slane %v6992_v34, 4  ;;  %v4161_v6 = vld [vmem:[%s4326_s11 + $0x68] sm:$0xff] }
 0x1e3   : > { %v736_v55 = vadd.f32 %v692_v56, %v614_v22  ;;  %3171 = vadd.xlane.f32.xlu0 %v3140_v1  ;;  %v1089_v50 = vrot.slane %v1034_v24, 1  ;;  %v1276_v28 = vmul.f32 %v4160_v10, %v8571_v14  ;;  %v997_v9 = vmul.f32 %v4161_v6, %v8642_v21  ;;  %v8643_v14 = vld [vmem:[#allocation47_spill] sm:$0xff] }
 0x1e4   : > { %v936_v8 = vsel %vm916_vm3, %v8641_v19, %v935_v52  ;;  %v2684_v3 = vadd.f32 %v2639_v4, %v2563_v7  ;;  %v2881_v46 = vsel %vm794_vm2, %v2879_v49, %v2880_v27  ;;  %v1210_v18 = vrot.slane %v1155_v60, 2  ;;  %v8649_v21 = vld [vmem:[#allocation11_spill] sm:$0xff] }
 0x1e5   : > { %v858_v2 = vadd.f32 %v814_v41, %v736_v55  ;;  %v1397_v1 = vmul.f32 %v4160_v10, %v4330_v12  ;;  %v3002_v52 = vsel %vm916_vm3, %v3000_v5, %v3001_v25  ;;  %v8644_v24 = vrot.slane %v8643_v14, 1  ;;  %v4162_v12 = vld [vmem:[%s4326_s11 + $0x88] sm:$0xf] }
 0x1e6   : > { %v2805_v56 = vadd.f32 %v2760_v61, %v2684_v3  ;;  %v1331_v4 = vrot.slane %v1276_v28, 3  ;;  %v8645_v41 = vrot.slane %v7016_v42, 2  ;;  %v1551_v10 = vmul.f32 %v4162_v12, %v4340_v16 }
 0x1e7   : > { %v980_v34 = vadd.f32 %v936_v8, %v858_v2  ;;  %v1090_v31 = vsel %vm550_vm0, %v8644_v24, %v1089_v50  ;;  %v1452_v60 = vrot.slane %v1397_v1, 4  ;;  %v8646_v5 = vrot.slane %v7023_v40, 3  ;;  %v8648_v2 = vld [vmem:[#allocation12_spill] sm:$0xff]  ;;  %v4163_v40 = vld [vmem:[%s4326_s11 + $0x80] sm:$0xff] }
 0x1e8   : > { %v2926_v22 = vadd.f32 %v2881_v46, %v2805_v56  ;;  %v1211_v49 = vsel %vm672_vm1, %v8645_v41, %v1210_v18  ;;  %v1672_v19 = vmul.f32 %v4162_v12, %v4342_v17  ;;  %v8647_v42 = vrot.slane %v7031_v29, 4  ;;  %v8650_v17 = vld [vmem:[#allocation18_spill] sm:$0xff]  ;;  %v3094_v41 = vpop.xlane.xlu0 %3093 }
 0x1e9   : > { %v1013_v30 = vadd.f32 %v997_v9, %v980_v34  ;;  %v1332_v55 = vsel %vm794_vm2, %v8646_v5, %v1331_v4  ;;  %v1606_v3 = vrot.slane %v1551_v10, 1  ;;  %v1793_v16 = vmul.f32 %v4162_v12, %v8648_v2  ;;  %v4164_v4 = vld [vmem:[%s4326_s11 + $0xa0] sm:$0xf]  ;;  %v7269_v10 = vpop.xlane.xlu2 %3077  ;;  %v4017_v2 = vld [vmem:[%s7801_s6 + $0x38] sm:$0xff] }
 0x1ea   : > { %v3047_v7 = vadd.f32 %v3002_v52, %v2926_v22  ;;  %v1453_v28 = vsel %vm916_vm3, %v8647_v42, %v1452_v60  ;;  %v1514_v9 = vmul.f32 %v4163_v40, %v8649_v21  ;;  %v1727_v46 = vrot.slane %v1672_v19, 2  ;;  %v4165_v19 = vld [vmem:[%s4326_s11 + $0x98] sm:$0xff]  ;;  %v8655_v42 = vld [vmem:[#allocation31_spill] sm:$0xff]  ;;  %4026 = vmatpush.bf16.msra.mxu2 %v4017_v2  ;;  %3545 = vmatpush.bf16.msra.mxu0 %v4017_v2  ;;  %s3935_s11 = sshll.u32 %s8694_s30, 1 }
 0x1eb   : > { %v1134_v61 = vadd.f32 %v1090_v31, %v1013_v30  ;;  %v1914_v18 = vmul.f32 %v4162_v12, %v8650_v17  ;;  %v8651_v1 = vrot.slane %v7046_v33, 1  ;;  %v1848_v56 = vrot.slane %v1793_v16, 3  ;;  %v7263_v33 = vpop.xlane.xlu1 %3083  ;;  %s409_s20 = sadd.s32 %s3936_s12, %s3935_s11 }
 0x1ec   : > { %v7243_v8 = vadd.f32 %v6580_v48, %v3047_v7  ;;  %v8652_v14 = vrot.slane %v7058_v51, 2  ;;  %v2068_v22 = vmul.f32 %v4164_v4, %v4428_v59  ;;  %v2189_v12 = vmul.f32 %v4164_v4, %v4432_v63  ;;  %s3937_s21 = sshll.u32 %s409_s20, 3 }
 0x1ed   : > { %v1255_v50 = vadd.f32 %v1211_v49, %v1134_v61  ;;  %v1607_v29 = vsel %vm550_vm0, %v8651_v1, %v1606_v3  ;;  %v1969_v31 = vrot.slane %v1914_v18, 4  ;;  %v8653_v49 = vrot.slane %v7069_v58, 3  ;;  %v8658_v18 = vld [vmem:[#allocation21_spill] sm:$0xff]  ;;  %s7720_s23 = scalar_lea.vmem %s7796_s1, %s3937_s21  ;;  %s7732_s27 = scalar_lea.vmem %s7805_s10, %s3937_s21 }
 0x1ee   : > { %3089 = vadd.xlane.f32.xlu1 %v7243_v8  ;;  %v3131_v52 = vmul.f32 %v7243_v8, %v7243_v8  ;;  %v1728_v24 = vsel %vm672_vm1, %v8652_v14, %v1727_v46  ;;  %v8654_v7 = vrot.slane %v7076_v11, 4  ;;  %v2123_v5 = vrot.slane %v2068_v22, 1 }
 0x1ef   : > { %v1376_v6 = vadd.f32 %v1332_v55, %v1255_v50  ;;  %v1849_v60 = vsel %vm794_vm2, %v8653_v49, %v1848_v56  ;;  %v2310_v59 = vmul.f32 %v4164_v4, %v4492_v35  ;;  %v2031_v50 = vmul.f32 %v4165_v19, %v4399_v45  ;;  %v4016_v45 = vld [vmem:[%s7801_s6 + $0x30] sm:$0xff] }
 0x1f0   : > { %3153 = vadd.xlane.f32.xlu0 %v3131_v52  ;;  %v1970_v61 = vsel %vm916_vm3, %v8654_v7, %v1969_v31  ;;  %v2431_v58 = vmul.f32 %v4164_v4, %v8655_v42  ;;  %v7278_v3 = vmul.f32 0.25, %v3094_v41  ;;  %v8656_v11 = vrot.slane %v7107_v39, 1  ;;  %v3096_v21 = vpop.xlane.xlu0 %3095  ;;  %4027 = vmatpush.bf16.msra.mxu2 %v4016_v45  ;;  %v4014_v7 = vld [vmem:[%s7801_s6 + $0x20] sm:$0xff] }
 0x1f1   : > { %v1497_v48 = vadd.f32 %v1453_v28, %v1376_v6  ;;  %v2244_v28 = vrot.slane %v2189_v12, 2  ;;  %v2365_v6 = vrot.slane %v2310_v59, 3  ;;  %v8657_v46 = vrot.slane %v7113_v13, 2  ;;  %3546 = vmatpush.bf16.msra.mxu0 %v4016_v45  ;;  %v4166_v45 = vld [vmem:[%s7798_s3] ss:$0 sm:$0xff] }
 0x1f2   : > { %v2124_v16 = vsel %vm550_vm0, %v8656_v11, %v2123_v5  ;;  %v2486_v40 = vrot.slane %v2431_v58, 4  ;;  %v2585_v39 = vmul.f32 %v8658_v18, %v4529_v38  ;;  %v2706_v14 = vmul.f32 %v8658_v18, %v4532_v32 }
 0x1f3   : > { %v1530_v34 = vadd.f32 %v1514_v9, %v1497_v48  ;;  %v3158_v9 = vpop.xlane.xlu1 %3157  ;;  %v2245_v17 = vsel %vm672_vm1, %v8657_v46, %v2244_v28  ;;  %v3197_v48 = vmul.f32 %v7278_v3, %v7278_v3  ;;  %v8660_v31 = vrot.slane %v7128_v62, 4  ;;  %v4015_v62 = vld [vmem:[%s7801_s6 + $0x28] sm:$0xff] }
 0x1f4   : > { %v3181_v1 = vmul.f32 0.25, %v3158_v9  ;;  %v2640_v38 = vrot.slane %v2585_v39, 1  ;;  %v2827_v22 = vmul.f32 %v8658_v18, %v8614_v54  ;;  %v2548_v32 = vmul.f32 %v8637_v23, %v8624_v53  ;;  %4028 = vmatpush.bf16.msra.mxu2 %v4015_v62 }
 0x1f5   : > { %v1651_v30 = vadd.f32 %v1607_v29, %v1530_v34  ;;  %v3080_v29 = vpop.xlane.xlu2 %3079  ;;  %v8659_v34 = vrot.slane %v7119_v43, 3  ;;  %v2487_v4 = vsel %vm916_vm3, %v8660_v31, %v2486_v40  ;;  %v2761_v49 = vrot.slane %v2706_v14, 2  ;;  %3547 = vmatpush.bf16.msra.mxu0 %v4015_v62 }
 0x1f6   : > { %v2641_v53 = vsel %vm550_vm0, %v2638_v36, %v2640_v38  ;;  %v2882_v23 = vrot.slane %v2827_v22, 3  ;;  %v7334_v36 = vmul.f32 0.25, %v3080_v29 }
 0x1f7   : > { %v1772_v51 = vadd.f32 %v1728_v24, %v1651_v30  ;;  %v2366_v52 = vsel %vm794_vm2, %v8659_v34, %v2365_v6  ;;  %v3213_v24 = vsub.f32 %v3181_v1, %v3197_v48  ;;  %v7306_v30 = vmul.f32 0.25, %v3096_v21 }
 0x1f8   : > { %v3100_v54 = vpop.xlane.xlu0 %3099  ;;  %4029 = vmatpush.bf16.msra.mxu2 %v4014_v7  ;;  %v2883_v15 = vsel %vm794_vm2, %v2880_v27, %v2882_v23  ;;  %v3190_v6 = vmul.f32 %v7334_v36, %v7334_v36 }
 0x1f9   : > { %v1893_v55 = vadd.f32 %v1849_v60, %v1772_v51  ;;  %v7308_v43 = vadd.f32 1e-06, %v3213_v24  ;;  %v2948_v60 = vmul.f32 %v8658_v18, %v8620_v47  ;;  %3548 = vmatpush.bf16.msra.mxu0 %v4014_v7  ;;  %v7363_v18 = vmul.f32 0.25, %v7269_v10  ;;  %v4011_v10 = vld [vmem:[%s7801_s6 + $0x8] sm:$0xff] }
 0x1fa   : > { %v7372_v29 = vmul.f32 0.25, %v3100_v54 }
 0x1fb   : > { %v2014_v63 = vadd.f32 %v1970_v61, %v1893_v55  ;;  %4088 = vrsqrt.f32 %v7308_v43  ;;  %v3160_v51 = vpop.xlane.xlu1 %3159  ;;  %v3198_v61 = vmul.f32 %v7306_v30, %v7306_v30  ;;  %v2762_v55 = vsel %vm672_vm1, %v2759_v20, %v2761_v49  ;;  %v4010_v49 = vld [vmem:[%s7801_s6] sm:$0xff] }
 0x1fc   : > { %v3182_v47 = vmul.f32 0.25, %v3160_v51  ;;  %v3003_v19 = vrot.slane %v2948_v60, 4  ;;  %vm3339_vm6 = vweird.f32 %v7308_v43 }
 0x1fd   : > { %v2047_v35 = vadd.f32 %v2031_v50, %v2014_v63  ;;  %v3098_v5 = vpop.xlane.xlu2 %3097 }
 0x1fe   : > { %v3214_v50 = vsub.f32 %v3182_v47, %v3198_v61  ;;  %v3004_v20 = vsel %vm916_vm3, %v3001_v25, %v3003_v19  ;;  %v4012_v25 = vld [vmem:[%s7801_s6 + $0x10] sm:$0xff]  ;;  %v7365_v39 = vmul.f32 0.25, %v3098_v5 }
 0x1ff   : > { %v2168_v56 = vadd.f32 %v2124_v16, %v2047_v35  ;;  %v4013_v16 = vld [vmem:[%s7801_s6 + $0x18] sm:$0xff] }
 0x200   : > { %v7336_v28 = vadd.f32 1e-06, %v3214_v50  ;;  %v7345_v57 = vpop.xlane.xlu0 %3081  ;;  %4030 = vmatpush.bf16.msra.mxu2 %v4013_v16  ;;  %3549 = vmatpush.bf16.msra.mxu0 %v4013_v16  ;;  %v3199_v31 = vmul.f32 %v7365_v39, %v7365_v39  ;;  %v8664_v50 = vld [vmem:[#allocation16_spill] sm:$0xff] }
 0x201   : > { %v2289_v13 = vadd.f32 %v2245_v17, %v2168_v56  ;;  %v7329_v58 = vpop.eup %4088 }
 0x202   : > { %v3334_v37 = vmul.f32 %v7329_v58, %v7308_v43  ;;  %4090 = vrsqrt.f32 %v7336_v28  ;;  %vm3340_vm4 = vweird.f32 %v7329_v58  ;;  %vm3349_vm8 = vweird.f32 %v7336_v28 }
 0x203   : > { %v2410_v41 = vadd.f32 %v2366_v52, %v2289_v13  ;;  %v3144_v27 = vpop.xlane.xlu1 %3143  ;;  %v3189_v13 = vmul.f32 %v7363_v18, %v7363_v18  ;;  %vm7395_vm7 = vmor %vm3339_vm6, %vm3340_vm4 }
 0x204   : > { %v3335_v11 = vmul.f32 %v7329_v58, %v3334_v37  ;;  %v3174_v35 = vmul.f32 0.25, %v3144_v27  ;;  %4031 = vmatpush.bf16.msra.mxu2 %v4012_v25  ;;  %3550 = vmatpush.bf16.msra.mxu0 %v4012_v25 }
 0x205   : > { %v2531_v12 = vadd.f32 %v2487_v4, %v2410_v41  ;;  %v7352_v40 = vpop.xlane.xlu2 %3103  ;;  %v3200_v41 = vmul.f32 %v7372_v29, %v7372_v29 }
 0x206   : > { %v3336_v21 = vmul.f32 0.5, %v3335_v11  ;;  %v3206_v9 = vsub.f32 %v3174_v35, %v3190_v6 }
 0x207   : > { %v2564_v59 = vadd.f32 %v2548_v32, %v2531_v12 }
 0x208   : > { %v4091_v17 = vpop.eup %4090  ;;  %v7367_v48 = vadd.f32 1e-06, %v3206_v9  ;;  %v3337_v34 = vsub.f32 1.5, %v3336_v21  ;;  %v3142_v24 = vpop.xlane.xlu0 %3141  ;;  %4032 = vmatpush.bf16.msra.mxu2 %v4011_v10  ;;  %3551 = vmatpush.bf16.msra.mxu0 %v4011_v10 }
 0x209   : > { %v2685_v42 = vadd.f32 %v2641_v53, %v2564_v59  ;;  %v3344_v56 = vmul.f32 %v4091_v17, %v7336_v28  ;;  %v3173_v22 = vmul.f32 0.25, %v3142_v24  ;;  %vm3350_vm5 = vweird.f32 %v4091_v17  ;;  %v7414_v28 = vld [vmem:[%s7799_s4] ss:$0 sm:$0xff] }
 0x20a   : > { %4092 = vrsqrt.f32 %v7367_v48  ;;  %v3338_v60 = vmul.f32 %v7329_v58, %v3337_v34  ;;  %vm3351_vm9 = vmor %vm3349_vm8, %vm3350_vm5  ;;  %vm3269_vm13 = vweird.f32 %v7367_v48 }
 0x20b   : > { %v2806_v63 = vadd.f32 %v2762_v55, %v2685_v42  ;;  %v3345_v52 = vmul.f32 %v4091_v17, %v3344_v56  ;;  %v3162_v14 = vpop.xlane.xlu1 %3161  ;;  %v3205_v54 = vsub.f32 %v3173_v22, %v3189_v13  ;;  %v8663_v55 = vld [vmem:[#allocation63_spill] sm:$0xff]  ;;  %v3230_v42 = vsub.f32 %v8664_v50, %v7306_v30  ;;  %v7423_v30 = vld [vmem:[%s7800_s5] ss:$0 sm:$0xff] }
 0x20c   : > { %v3183_v4 = vmul.f32 0.25, %v3162_v14  ;;  %4033 = vmatpush.bf16.msra.mxu2 %v4010_v49  ;;  %v3229_v19 = vsub.f32 %v8663_v55, %v7278_v3  ;;  %v3342_v43 = vsel %vm7395_vm7, %v7329_v58, %v3338_v60  ;;  %3552 = vmatpush.bf16.msra.mxu0 %v4010_v49  ;;  %v8665_v60 = vld [vmem:[#allocation15_spill] sm:$0xff]  ;;  %v8668_v55 = vld [vmem:[#allocation28_spill] sm:$0xff] }
 0x20d   : > { %v2927_v2 = vadd.f32 %v2883_v15, %v2806_v63  ;;  %v3164_v38 = vpop.xlane.xlu2 %3163  ;;  %v3346_v32 = vmul.f32 0.5, %v3345_v52  ;;  %v3237_v23 = vadd.f32 1e-06, %v3205_v54 }
 0x20e   : > { %v3184_v62 = vmul.f32 0.25, %v3164_v38  ;;  %v3215_v12 = vsub.f32 %v3183_v4, %v3199_v31  ;;  %v3421_v63 = vmul.f32 %v3342_v43, %v3229_v19  ;;  %v3222_v19 = vsub.f32 %v8668_v55, %v7334_v36 }
 0x20f   : > { %v3048_v26 = vadd.f32 %v3004_v20, %v2927_v2  ;;  %v3347_v51 = vsub.f32 1.5, %v3346_v32  ;;  %vm3259_vm12 = vweird.f32 %v3237_v23 }
 0x210   : > { %v3216_v7 = vsub.f32 %v3184_v62, %v3200_v41  ;;  %v7391_v53 = vadd.f32 1e-06, %v3215_v12  ;;  %v7393_v61 = vpop.eup %4092  ;;  %v3441_v58 = vmul.f32 %v7414_v28, %v3421_v63  ;;  %v7440_v10 = vpop.xlane.xlu0 %3087  ;;  %v7445_v62 = vmul.f32 0.25, %v7345_v57 }
 0x211   : > { %v7360_v46 = vadd.f32 %v4166_v45, %v3048_v26  ;;  %v3348_v5 = vmul.f32 %v4091_v17, %v3347_v51  ;;  %v3264_v3 = vmul.f32 %v7393_v61, %v7367_v48  ;;  %vm3270_vm11 = vweird.f32 %v7393_v61 }
 0x212   : > { %v7400_v59 = vadd.f32 1e-06, %v3216_v7  ;;  %4094 = vrsqrt.f32 %v7391_v53  ;;  %v3461_v21 = vadd.f32 %v7423_v30, %v3441_v58  ;;  %v3221_v12 = vsub.f32 %v8665_v60, %v7363_v18  ;;  %vm7450_vm15 = vmor %vm3269_vm13, %vm3270_vm11 }
 0x213   : > { %3091 = vadd.xlane.f32.xlu2 %v7360_v46  ;;  %v3132_v1 = vmul.f32 %v7360_v46, %v7360_v46  ;;  %v3352_v15 = vsel %vm3351_vm9, %v4091_v17, %v3348_v5  ;;  %v3265_v11 = vmul.f32 %v7393_v61, %v3264_v3  ;;  %v7436_v45 = vpop.xlane.xlu1 %3101  ;;  %v7462_v5 = vmul.f32 0.25, %v7263_v33  ;;  %v8670_v33 = vld [vmem:[#allocation44_spill] sm:$0xff] }
 0x214   : > { %4096 = vrsqrt.f32 %v7400_v59  ;;  %v3422_v37 = vmul.f32 %v3352_v15, %v3230_v42  ;;  %v3191_v43 = vmul.f32 %v7445_v62, %v7445_v62  ;;  %vm3359_vm2 = vweird.f32 %v7391_v53  ;;  %v8669_v42 = vld [vmem:[#allocation37_spill] sm:$0xff] }
 0x215   : > { %3155 = vadd.xlane.f32.xlu1 %v3132_v1  ;;  %4098 = vrsqrt.f32 %v3237_v23  ;;  %v3266_v9 = vmul.f32 0.5, %v3265_v11  ;;  %v3146_v14 = vpop.xlane.xlu2 %3145  ;;  %v3232_v15 = vsub.f32 %v8669_v42, %v7372_v29  ;;  %vm3369_vm4 = vweird.f32 %v7400_v59 }
 0x216   : > { %v3442_v20 = vmul.f32 %v7414_v28, %v3422_v37  ;;  %v3175_v51 = vmul.f32 0.25, %v3146_v14  ;;  %v7501_v14 = vmul.f32 0.25, %v7440_v10 }
 0x217   : > { %v3267_v24 = vsub.f32 1.5, %v3266_v9  ;;  %v7495_v9 = vmul.f32 0.25, %v7436_v45 }
 0x218   : > { %v7425_v2 = vpop.eup %4094  ;;  %v3462_v26 = vadd.f32 %v7423_v30, %v3442_v20  ;;  %v3148_v7 = vpop.xlane.xlu0 %3147  ;;  %v3207_v36 = vsub.f32 %v3175_v51, %v3191_v43 }
 0x219   : > { %v3354_v16 = vmul.f32 %v7425_v2, %v7391_v53  ;;  %v3268_v22 = vmul.f32 %v7393_v61, %v3267_v24  ;;  %vm3360_vm0 = vweird.f32 %v7425_v2  ;;  %v7480_v53 = vmul.f32 0.25, %v7352_v40 }
 0x21a   : > { %v7428_v27 = vpop.eup %4096  ;;  %v3473_v34 = vpack.c.bf16 %v3462_v26, %v3461_v21  ;;  %vm3361_vm3 = vmor %vm3359_vm2, %vm3360_vm0  ;;  %v3176_v37 = vmul.f32 0.25, %v3148_v7  ;;  %v3201_v45 = vmul.f32 %v7495_v9, %v7495_v9 }
 0x21b   : > { %v4099_v6 = vpop.eup %4098  ;;  %v3364_v35 = vmul.f32 %v7428_v27, %v7400_v59  ;;  %v3355_v17 = vmul.f32 %v7425_v2, %v3354_v16  ;;  %v3168_v49 = vpop.xlane.xlu1 %3167  ;;  %vm3370_vm1 = vweird.f32 %v7428_v27  ;;  %v3272_v18 = vsel %vm7450_vm15, %v7393_v61, %v3268_v22 }
 0x21c   : > { %v3254_v25 = vmul.f32 %v4099_v6, %v3237_v23  ;;  %3573 = vmatmul.bf16.vlgmr.msra.gmra.mxu2 %v3473_v34  ;;  %vm3260_vm10 = vweird.f32 %v4099_v6  ;;  %v3231_v61 = vsub.f32 %v8670_v33, %v7365_v39  ;;  %vm3371_vm5 = vmor %vm3369_vm4, %vm3370_vm1  ;;  %v3414_v3 = vmul.f32 %v3272_v18, %v3222_v19 }
 0x21d   : > { %v3365_v1 = vmul.f32 %v7428_v27, %v3364_v35  ;;  %v3356_v13 = vmul.f32 0.5, %v3355_v17  ;;  %vm3261_vm14 = vmor %vm3259_vm12, %vm3260_vm10  ;;  %v3086_v50 = vpop.xlane.xlu2 %3085  ;;  %v3192_v59 = vmul.f32 %v7462_v5, %v7462_v5  ;;  %v3186_v20 = vmul.f32 0.25, %v3168_v49 }
 0x21e   : > { %v3255_v56 = vmul.f32 %v4099_v6, %v3254_v25  ;;  %v3434_v39 = vmul.f32 %v7414_v28, %v3414_v3  ;;  %v7488_v35 = vadd.f32 1e-06, %v3207_v36  ;;  %v3202_v40 = vmul.f32 %v7480_v53, %v7480_v53 }
 0x21f   : > { %v3366_v31 = vmul.f32 0.5, %v3365_v1  ;;  %v3357_v41 = vsub.f32 1.5, %v3356_v13  ;;  %v3208_v25 = vsub.f32 %v3176_v37, %v3192_v59  ;;  %v7516_v60 = vmul.f32 0.25, %v3086_v50 }
 0x220   : > { %v3256_v52 = vmul.f32 0.5, %v3255_v56  ;;  %v3166_v21 = vpop.xlane.xlu0 %3165  ;;  %v3218_v17 = vsub.f32 %v3186_v20, %v3202_v40  ;;  %4100 = vrsqrt.f32 %v7488_v35  ;;  %vm3279_vm7 = vweird.f32 %v7488_v35 }
 0x221   : > { %v3367_v32 = vsub.f32 1.5, %v3366_v31  ;;  %v3358_v23 = vmul.f32 %v7425_v2, %v3357_v41  ;;  %v7503_v24 = vadd.f32 1e-06, %v3208_v25  ;;  %v3185_v13 = vmul.f32 0.25, %v3166_v21 }
 0x222   : > { %v3257_v4 = vsub.f32 1.5, %v3256_v52  ;;  %v3194_v41 = vmul.f32 %v7501_v14, %v7501_v14 }
 0x223   : > { %v3368_v47 = vmul.f32 %v7428_v27, %v3367_v32  ;;  %v3362_v29 = vsel %vm3361_vm3, %v7425_v2, %v3358_v23  ;;  %v3454_v2 = vadd.f32 %v7423_v30, %v3434_v39  ;;  %4102 = vrsqrt.f32 %v7503_v24 }
 0x224   : > { %v3258_v38 = vmul.f32 %v4099_v6, %v3257_v4  ;;  %v3423_v16 = vmul.f32 %v3362_v29, %v3231_v61  ;;  %v7508_v4 = vadd.f32 1e-06, %v3218_v17  ;;  %v3217_v10 = vsub.f32 %v3185_v13, %v3201_v45  ;;  %v8673_v45 = vld [vmem:[#allocation76_spill] sm:$0xff] }
 0x225   : > { %v3372_v58 = vsel %vm3371_vm5, %v7428_v27, %v3368_v47  ;;  %v3152_v34 = vpop.xlane.xlu2 %3151  ;;  %v3193_v23 = vmul.f32 %v7516_v60, %v7516_v60  ;;  %vm3289_vm11 = vweird.f32 %v7503_v24 }
 0x226   : > { %v3262_v57 = vsel %vm3261_vm14, %v4099_v6, %v3258_v38  ;;  %v3424_v6 = vmul.f32 %v3372_v58, %v3232_v15  ;;  %v3443_v27 = vmul.f32 %v7414_v28, %v3423_v16  ;;  %v3178_v38 = vmul.f32 0.25, %v3152_v34  ;;  %v7513_v32 = vpop.eup %4100 }
 0x227   : > { %v3413_v48 = vmul.f32 %v3262_v57, %v3221_v12  ;;  %v3108_v26 = vpop.xlane.xlu1 %3107  ;;  %4104 = vrsqrt.f32 %v7508_v4  ;;  %v3274_v54 = vmul.f32 %v7513_v32, %v7488_v35  ;;  %v7520_v51 = vadd.f32 1e-06, %v3217_v10 }
 0x228   : > { %v3444_v56 = vmul.f32 %v7414_v28, %v3424_v6  ;;  %v3463_v52 = vadd.f32 %v7423_v30, %v3443_v27  ;;  %v3210_v12 = vsub.f32 %v3178_v38, %v3194_v41  ;;  %v7549_v39 = vmul.f32 0.25, %v3108_v26 }
 0x229   : > { %v3433_v63 = vmul.f32 %v7414_v28, %v3413_v48  ;;  %v7522_v57 = vpop.eup %4102  ;;  %v3275_v48 = vmul.f32 %v7513_v32, %v3274_v54  ;;  %4106 = vrsqrt.f32 %v7520_v51  ;;  %vm3280_vm6 = vweird.f32 %v7513_v32 }
 0x22a   : > { %v3464_v31 = vadd.f32 %v7423_v30, %v3444_v56  ;;  %v7526_v47 = vadd.f32 1e-06, %v3210_v12  ;;  %v3284_v19 = vmul.f32 %v7522_v57, %v7503_v24  ;;  %v3204_v26 = vmul.f32 %v7549_v39, %v7549_v39  ;;  %vm7567_vm8 = vmor %vm3279_vm7, %vm3280_vm6 }
 0x22b   : > { %v3453_v11 = vadd.f32 %v7423_v30, %v3433_v63  ;;  %v3276_v50 = vmul.f32 0.5, %v3275_v48  ;;  %v3223_v38 = vsub.f32 %v8673_v45, %v7445_v62  ;;  %vm3290_vm9 = vweird.f32 %v7522_v57 }
 0x22c   : > { %v3474_v22 = vpack.c.bf16 %v3464_v31, %v3463_v52  ;;  %4108 = vrsqrt.f32 %v7526_v47  ;;  %v3285_v33 = vmul.f32 %v7522_v57, %v3284_v19  ;;  %vm3291_vm12 = vmor %vm3289_vm11, %vm3290_vm9  ;;  %vm3389_vm13 = vweird.f32 %v7508_v4 }
 0x22d   : > { %v3469_v1 = vpack.c.bf16 %v3454_v2, %v3453_v11  ;;  %v7528_v18 = vpop.eup %4104  ;;  %v3277_v59 = vsub.f32 1.5, %v3276_v50  ;;  %vm3379_vm1 = vweird.f32 %v7520_v51  ;;  %vm3309_vm2 = vweird.f32 %v7526_v47 }
 0x22e   : > { %3578 = vmatmul.bf16.gmra.mxu2 %v3474_v22  ;;  %v3384_v43 = vmul.f32 %v7528_v18, %v7508_v4  ;;  %v3286_v20 = vmul.f32 0.5, %v3285_v33  ;;  %vm3390_vm10 = vweird.f32 %v7528_v18 }
 0x22f   : > { %3553 = vmatmul.bf16.vlgmr.msra.gmra.mxu0 %v3469_v1  ;;  %v3150_v49 = vpop.xlane.xlu1 %3149  ;;  %v7542_v36 = vpop.eup %4106  ;;  %v3278_v2 = vmul.f32 %v7513_v32, %v3277_v59  ;;  %vm3391_vm14 = vmor %vm3389_vm13, %vm3390_vm10 }
 0x230   : > { %v3177_v7 = vmul.f32 0.25, %v3150_v49  ;;  %v3385_v63 = vmul.f32 %v7528_v18, %v3384_v43  ;;  %v3374_v11 = vmul.f32 %v7542_v36, %v7520_v51  ;;  %v3287_v21 = vsub.f32 1.5, %v3286_v20 }
 0x231   : > { %v3282_v22 = vsel %vm7567_vm8, %v7513_v32, %v3278_v2  ;;  %vm3380_vm15 = vweird.f32 %v7542_v36 }
 0x232   : > { %v3209_v55 = vsub.f32 %v3177_v7, %v3193_v23  ;;  %v7547_v58 = vpop.eup %4108  ;;  %v3386_v6 = vmul.f32 0.5, %v3385_v63  ;;  %v3375_v17 = vmul.f32 %v7542_v36, %v3374_v11  ;;  %v3288_v41 = vmul.f32 %v7522_v57, %v3287_v21  ;;  %v8674_v7 = vld [vmem:[#allocation82_spill] sm:$0xff]  ;;  %vm3381_vm3 = vmor %vm3379_vm1, %vm3380_vm15 }
 0x233   : > { %v3304_v40 = vmul.f32 %v7547_v58, %v7526_v47  ;;  %v3415_v32 = vmul.f32 %v3282_v22, %v3223_v38  ;;  %v3224_v23 = vsub.f32 %v8674_v7, %v7462_v5  ;;  %vm3310_vm0 = vweird.f32 %v7547_v58  ;;  %v8679_v47 = vld [vmem:[#allocation90_spill] sm:$0xff] }
 0x234   : > { %v7537_v42 = vadd.f32 1e-06, %v3209_v55  ;;  %v3387_v52 = vsub.f32 1.5, %v3386_v6  ;;  %v3376_v35 = vmul.f32 0.5, %v3375_v17  ;;  %v3292_v19 = vsel %vm3291_vm12, %v7522_v57, %v3288_v41  ;;  %v8676_v6 = vld [vmem:[#allocation58_spill] sm:$0xff]  ;;  %vm7620_vm4 = vmor %vm3309_vm2, %vm3310_vm0 }
 0x235   : > { %v3305_v13 = vmul.f32 %v7547_v58, %v3304_v40  ;;  %v3416_v43 = vmul.f32 %v3292_v19, %v3224_v23  ;;  %v3435_v33 = vmul.f32 %v7414_v28, %v3415_v32  ;;  %v3233_v40 = vsub.f32 %v8676_v6, %v7495_v9  ;;  %v4024_v6 = vld [vmem:[%s7803_s8 + $0x30] sm:$0xff] }
 0x236   : > { %4110 = vrsqrt.f32 %v7537_v42  ;;  %v3388_v62 = vmul.f32 %v7528_v18, %v3387_v52  ;;  %v3377_v55 = vsub.f32 1.5, %v3376_v35  ;;  %v3226_v52 = vsub.f32 %v8679_v47, %v7501_v14 }
 0x237   : > { %v3306_v54 = vmul.f32 0.5, %v3305_v13  ;;  %v3455_v11 = vadd.f32 %v7423_v30, %v3435_v33  ;;  %vm3299_vm6 = vweird.f32 %v7537_v42 }
 0x238   : > { %v3392_v5 = vsel %vm3391_vm14, %v7528_v18, %v3388_v62 }
 0x239   : > { %v3307_v50 = vsub.f32 1.5, %v3306_v54 }
 0x23b   : > { %v3308_v20 = vmul.f32 %v7547_v58, %v3307_v50 }
 0x23c   : > { %v7564_v56 = vpop.eup %4110 }
 0x23d   : > { %v3294_v10 = vmul.f32 %v7564_v56, %v7537_v42  ;;  %v3312_v9 = vsel %vm7620_vm4, %v7547_v58, %v3308_v20  ;;  %vm3300_vm5 = vweird.f32 %v7564_v56  ;;  %v8680_v58 = vld [vmem:[#allocation46_spill] sm:$0xff] }
 0x23e   : > { %v3225_v62 = vsub.f32 %v8680_v58, %v7516_v60  ;;  %vm3301_vm8 = vmor %vm3299_vm6, %vm3300_vm5 }
 0x23f   : > { %v3295_v24 = vmul.f32 %v7564_v56, %v3294_v10  ;;  %v3418_v10 = vmul.f32 %v3312_v9, %v3226_v52 }
 0x241   : > { %v3296_v57 = vmul.f32 0.5, %v3295_v24 }
 0x243   : > { %v3297_v2 = vsub.f32 1.5, %v3296_v57 }
 0x245   : > { %v3298_v13 = vmul.f32 %v7564_v56, %v3297_v2 }
 0x247   : > { %v3302_v23 = vsel %vm3301_vm8, %v7564_v56, %v3298_v13 }
 0x248   : > { %v3417_v42 = vmul.f32 %v3302_v23, %v3225_v62 }
 0x24e   : > { %v3106_v15 = vpop.xlane.xlu0 %3105 }
 0x24f   : > { %v7540_v61 = vmul.f32 0.25, %v3106_v15 }
 0x250   : > { %v3170_v3 = vpop.xlane.xlu2 %3169 }
 0x251   : > { %v3203_v37 = vmul.f32 %v7540_v61, %v7540_v61  ;;  %v3187_v29 = vmul.f32 0.25, %v3170_v3  ;;  %v8675_v3 = vld [vmem:[#allocation78_spill] sm:$0xff]  ;;  %v3235_v60 = vsub.f32 %v7163_v44, %v7540_v61 }
 0x252   : > { %v3234_v63 = vsub.f32 %v8675_v3, %v7480_v53 }
 0x253   : > { %v3219_v16 = vsub.f32 %v3187_v29, %v3203_v37  ;;  %v3436_v37 = vmul.f32 %v7414_v28, %v3416_v43  ;;  %v3378_v29 = vmul.f32 %v7542_v36, %v3377_v55  ;;  %v3438_v55 = vmul.f32 %v7414_v28, %v3418_v10 }
 0x254   : > { %v3426_v18 = vmul.f32 %v3392_v5, %v3234_v63  ;;  %v3437_v43 = vmul.f32 %v7414_v28, %v3417_v42 }
 0x255   : > { %v7556_v25 = vadd.f32 1e-06, %v3219_v16  ;;  %v3456_v16 = vadd.f32 %v7423_v30, %v3436_v37  ;;  %v3458_v50 = vadd.f32 %v7423_v30, %v3438_v55 }
 0x256   : > { %v3172_v27 = vpop.xlane.xlu0 %3171  ;;  %v3457_v56 = vadd.f32 %v7423_v30, %v3437_v43 }
 0x257   : > { %4112 = vrsqrt.f32 %v7556_v25  ;;  %v3188_v1 = vmul.f32 0.25, %v3172_v27  ;;  %v3382_v27 = vsel %vm3381_vm3, %v7542_v36, %v3378_v29  ;;  %vm3399_vm9 = vweird.f32 %v7556_v25 }
 0x258   : > { %v3425_v17 = vmul.f32 %v3382_v27, %v3233_v40  ;;  %v3471_v44 = vpack.c.bf16 %v3458_v50, %v3457_v56  ;;  %v4022_v27 = vld [vmem:[%s7803_s8 + $0x20] sm:$0xff] }
 0x259   : > { %v3220_v31 = vsub.f32 %v3188_v1, %v3204_v26  ;;  %v3470_v26 = vpack.c.bf16 %v3456_v16, %v3455_v11  ;;  %v3446_v1 = vmul.f32 %v7414_v28, %v3426_v18  ;;  %v4025_v11 = vld [vmem:[%s7803_s8 + $0x38] sm:$0xff] }
 0x25a   : > { %v3445_v36 = vmul.f32 %v7414_v28, %v3425_v17  ;;  %4034 = vmatpush.bf16.msra.mxu3 %v4025_v11  ;;  %3718 = vmatpush.bf16.msra.mxu1 %v4025_v11 }
 0x25b   : > { %v7581_v49 = vadd.f32 1e-06, %v3220_v31  ;;  %3558 = vmatmul.bf16.gmra.mxu0 %v3470_v26  ;;  %v3466_v35 = vadd.f32 %v7423_v30, %v3446_v1 }
 0x25c   : > { %v3465_v41 = vadd.f32 %v7423_v30, %v3445_v36 }
 0x25d   : > { %v7585_v12 = vpop.eup %4112  ;;  %4114 = vrsqrt.f32 %v7581_v49  ;;  %vm3409_vm12 = vweird.f32 %v7581_v49 }
 0x25e   : > { %v3394_v48 = vmul.f32 %v7585_v12, %v7556_v25  ;;  %vm3400_vm7 = vweird.f32 %v7585_v12  ;;  %v3475_v32 = vpack.c.bf16 %v3466_v35, %v3465_v41  ;;  %4035 = vmatpush.bf16.msra.mxu3 %v4024_v6  ;;  %3719 = vmatpush.bf16.msra.mxu1 %v4024_v6 }
 0x25f   : > { %vm3401_vm10 = vmor %vm3399_vm9, %vm3400_vm7 }
 0x260   : > { %v3395_v15 = vmul.f32 %v7585_v12, %v3394_v48  ;;  %3583 = vmatmul.bf16.gmra.mxu2 %v3475_v32 }
 0x261   : > { %v3090_v31 = vpop.xlane.xlu1 %3089 }
 0x262   : > { %v3396_v53 = vmul.f32 0.5, %v3395_v15  ;;  %v7633_v22 = vmul.f32 0.25, %v3090_v31  ;;  %v4020_v31 = vld [vmem:[%s7803_s8 + $0x10] sm:$0xff] }
 0x263   : > { %v7602_v4 = vpop.eup %4114  ;;  %v3154_v38 = vpop.xlane.xlu0 %3153 }
 0x264   : > { %v3404_v59 = vmul.f32 %v7602_v4, %v7581_v49  ;;  %v3397_v34 = vsub.f32 1.5, %v3396_v53  ;;  %v3179_v54 = vmul.f32 0.25, %v3154_v38  ;;  %v3195_v48 = vmul.f32 %v7633_v22, %v7633_v22 }
 0x265   : > { %vm3410_vm11 = vweird.f32 %v7602_v4  ;;  %v3227_v52 = vsub.f32 %v7243_v8, %v7633_v22  ;;  %v4019_v8 = vld [vmem:[%s7803_s8 + $0x8] sm:$0xff] }
 0x266   : > { %v3405_v51 = vmul.f32 %v7602_v4, %v3404_v59  ;;  %v3398_v14 = vmul.f32 %v7585_v12, %v3397_v34  ;;  %v3211_v19 = vsub.f32 %v3179_v54, %v3195_v48  ;;  %vm3411_vm13 = vmor %vm3409_vm12, %vm3410_vm11  ;;  %v4021_v34 = vld [vmem:[%s7803_s8 + $0x18] sm:$0xff] }
 0x268   : > { %v3406_v45 = vmul.f32 0.5, %v3405_v51  ;;  %v3402_v24 = vsel %vm3401_vm10, %v7585_v12, %v3398_v14  ;;  %v3236_v12 = vsub.f32 %v6925_v0, %v7549_v39  ;;  %v3243_v33 = vadd.f32 1e-06, %v3211_v19  ;;  %v4023_v51 = vld [vmem:[%s7803_s8 + $0x28] sm:$0xff] }
 0x269   : > { %v3427_v15 = vmul.f32 %v3402_v24, %v3235_v60  ;;  %4036 = vmatpush.bf16.msra.mxu3 %v4023_v51  ;;  %3720 = vmatpush.bf16.msra.mxu1 %v4023_v51 }
 0x26a   : > { %v3407_v7 = vsub.f32 1.5, %v3406_v45  ;;  %4116 = vrsqrt.f32 %v3243_v33  ;;  %vm3319_vm15 = vweird.f32 %v3243_v33 }
 0x26b   : > { %v3447_v3 = vmul.f32 %v7414_v28, %v3427_v15  ;;  %3563 = vmatmul.bf16.gmra.mxu0 %v3471_v44 }
 0x26c   : > { %v3408_v25 = vmul.f32 %v7602_v4, %v3407_v7  ;;  %v7697_v7 = vld [vmem:[%s7802_s7] ss:$0 sm:$0xff] }
 0x26d   : > { %v3467_v37 = vadd.f32 %v7423_v30, %v3447_v3  ;;  %4037 = vmatpush.bf16.msra.mxu3 %v4022_v27  ;;  %3721 = vmatpush.bf16.msra.mxu1 %v4022_v27 }
 0x26e   : > { %v3412_v61 = vsel %vm3411_vm13, %v7602_v4, %v3408_v25 }
 0x26f   : > { %v3428_v5 = vmul.f32 %v3412_v61, %v3236_v12 }
 0x270   : > { %v4117_v57 = vpop.eup %4116 }
 0x271   : > { %v3448_v63 = vmul.f32 %v7414_v28, %v3428_v5  ;;  %v3314_v0 = vmul.f32 %v4117_v57, %v3243_v33  ;;  %vm3320_vm14 = vweird.f32 %v4117_v57  ;;  %4038 = vmatpush.bf16.msra.mxu3 %v4021_v34  ;;  %3722 = vmatpush.bf16.msra.mxu1 %v4021_v34 }
 0x272   : > { %vm3321_vm0 = vmor %vm3319_vm15, %vm3320_vm14 }
 0x273   : > { %v3468_v29 = vadd.f32 %v7423_v30, %v3448_v63  ;;  %v3315_v20 = vmul.f32 %v4117_v57, %v3314_v0 }
 0x275   : > { %v3476_v49 = vpack.c.bf16 %v3468_v29, %v3467_v37  ;;  %v3316_v40 = vmul.f32 0.5, %v3315_v20  ;;  %4039 = vmatpush.bf16.msra.mxu3 %v4020_v31  ;;  %3723 = vmatpush.bf16.msra.mxu1 %v4020_v31 }
 0x277   : > { %3588 = vmatmul.bf16.gmra.mxu2 %v3476_v49  ;;  %v3317_v26 = vsub.f32 1.5, %v3316_v40 }
 0x279   : > { %v3318_v21 = vmul.f32 %v4117_v57, %v3317_v26  ;;  %4040 = vmatpush.bf16.msra.mxu3 %v4019_v8  ;;  %3724 = vmatpush.bf16.msra.mxu1 %v4019_v8 }
 0x27b   : > { %v3322_v47 = vsel %vm3321_vm0, %v4117_v57, %v3318_v21 }
 0x27c   : > { %v3419_v13 = vmul.f32 %v3322_v47, %v3227_v52 }
 0x27e   : > { %v3439_v35 = vmul.f32 %v7414_v28, %v3419_v13 }
 0x280   : > { %v3459_v58 = vadd.f32 %v7423_v30, %v3439_v35 }
 0x286   : > { %v3092_v39 = vpop.xlane.xlu2 %3091 }
 0x287   : > { %v3116_v59 = vmul.f32 0.25, %v3092_v39 }
 0x288   : > { %v3156_v18 = vpop.xlane.xlu1 %3155 }
 0x289   : > { %v3196_v4 = vmul.f32 %v3116_v59, %v3116_v59  ;;  %v3180_v53 = vmul.f32 0.25, %v3156_v18  ;;  %v3228_v41 = vsub.f32 %v7360_v46, %v3116_v59  ;;  %v4018_v46 = vld [vmem:[%s7803_s8] sm:$0xff] }
 0x28a   : > { %4041 = vmatpush.bf16.msra.mxu3 %v4018_v46  ;;  %3725 = vmatpush.bf16.msra.mxu1 %v4018_v46 }
 0x28b   : > { %v3212_v16 = vsub.f32 %v3180_v53, %v3196_v4 }
 0x28d   : > { %v3244_v2 = vadd.f32 1e-06, %v3212_v16 }
 0x28f   : > { %4118 = vrsqrt.f32 %v3244_v2  ;;  %vm3329_vm2 = vweird.f32 %v3244_v2 }
 0x295   : > { %v4119_v17 = vpop.eup %4118 }
 0x296   : > { %v3324_v1 = vmul.f32 %v4119_v17, %v3244_v2  ;;  %vm3330_vm1 = vweird.f32 %v4119_v17 }
 0x297   : > { %vm3331_vm3 = vmor %vm3329_vm2, %vm3330_vm1 }
 0x298   : > { %v3325_v9 = vmul.f32 %v4119_v17, %v3324_v1 }
 0x29a   : > { %v3326_v36 = vmul.f32 0.5, %v3325_v9 }
 0x29c   : > { %v3327_v45 = vsub.f32 1.5, %v3326_v36 }
 0x29e   : > { %v3328_v38 = vmul.f32 %v4119_v17, %v3327_v45 }
 0x29f   : > { %v3574_v32 = vpop.f32.mrf.mxu2 }
 0x2a0   : > { %v3332_v22 = vsel %vm3331_vm3, %v4119_v17, %v3328_v38 }
 0x2a1   : > { %v3420_v10 = vmul.f32 %v3332_v22, %v3228_v41 }
 0x2a3   : > { %v3440_v14 = vmul.f32 %v7414_v28, %v3420_v10  ;;  %v3575_v28 = vadd.f32 %v7697_v7, %v3574_v32 }
 0x2a5   : > { %v3460_v62 = vadd.f32 %v7423_v30, %v3440_v14  ;;  %v3618_v48 = vmul.f32 0.01, %v3575_v28  ;;  %vm3602_vm4 = vcmp.gt.f32.partialorder %v3575_v28, 0.0 }
 0x2a7   : > { %v3472_v54 = vpack.c.bf16 %v3460_v62, %v3459_v58  ;;  %v3576_v23 = vpop.f32.mrf.mxu2  ;;  %v3634_v30 = vsel %vm3602_vm4, %v3575_v28, %v3618_v48 }
 0x2a8   : > { %v3577_v42 = vadd.f32 %v7697_v7, %v3576_v23 }
 0x2a9   : > { %3568 = vmatmul.bf16.gmra.mxu0 %v3472_v54 }
 0x2aa   : > { %v3619_v55 = vmul.f32 0.01, %v3577_v42  ;;  %vm3603_vm5 = vcmp.gt.f32.partialorder %v3577_v42, 0.0 }
 0x2ac   : > { %v3635_v24 = vsel %vm3603_vm5, %v3577_v42, %v3619_v55  ;;  %v3554_v19 = vpop.f32.mrf.mxu0 }
 0x2ad   : > { %v3646_v60 = vpack.c.bf16 %v3635_v24, %v3634_v30  ;;  %v3555_v43 = vadd.f32 %v7697_v7, %v3554_v19 }
 0x2af   : > { %3746 = vmatmul.bf16.vlgmr.msra.gmra.mxu3 %v3646_v60  ;;  %v3610_v15 = vmul.f32 0.01, %v3555_v43  ;;  %vm3594_vm6 = vcmp.gt.f32.partialorder %v3555_v43, 0.0 }
 0x2b1   : > { %v3579_v50 = vpop.f32.mrf.mxu2  ;;  %v3626_v44 = vsel %vm3594_vm6, %v3555_v43, %v3610_v15  ;;  %v3775_v43 = vld [vmem:[%s7720_s23 + $0x40] sm:$0xff]  ;;  %v3776_v15 = vld [vmem:[%s7720_s23 + $0x48] sm:$0xff] }
 0x2b2   : > { %v3580_v33 = vadd.f32 %v7697_v7, %v3579_v50 }
 0x2b4   : > { %v3556_v25 = vpop.f32.mrf.mxu0  ;;  %v3620_v63 = vmul.f32 0.01, %v3580_v33  ;;  %vm3604_vm8 = vcmp.gt.f32.partialorder %v3580_v33, 0.0 }
 0x2b5   : > { %v3557_v56 = vadd.f32 %v7697_v7, %v3556_v25 }
 0x2b6   : > { %v3636_v49 = vsel %vm3604_vm8, %v3580_v33, %v3620_v63 }
 0x2b7   : > { %v3611_v12 = vmul.f32 0.01, %v3557_v56  ;;  %vm3595_vm7 = vcmp.gt.f32.partialorder %v3557_v56, 0.0 }
 0x2b9   : > { %v3627_v61 = vsel %vm3595_vm7, %v3557_v56, %v3611_v12  ;;  %v3581_v3 = vpop.f32.mrf.mxu2 }
 0x2ba   : > { %v3642_v5 = vpack.c.bf16 %v3627_v61, %v3626_v44  ;;  %v3582_v37 = vadd.f32 %v7697_v7, %v3581_v3  ;;  %v3767_v61 = vld [vmem:[%s7720_s23] sm:$0xff] }
 0x2bc   : > { %3726 = vmatmul.bf16.vlgmr.msra.gmra.mxu1 %v3642_v5  ;;  %v3621_v29 = vmul.f32 0.01, %v3582_v37  ;;  %vm3605_vm9 = vcmp.gt.f32.partialorder %v3582_v37, 0.0 }
 0x2be   : > { %v3637_v57 = vsel %vm3605_vm9, %v3582_v37, %v3621_v29  ;;  %v3768_v37 = vld [vmem:[%s7720_s23 + $0x8] sm:$0xff] }
 0x2bf   : > { %v3647_v0 = vpack.c.bf16 %v3637_v57, %v3636_v49 }
 0x2c1   : > { %3751 = vmatmul.bf16.gmra.mxu3 %v3647_v0  ;;  %v3777_v0 = vld [vmem:[%s7720_s23 + $0x50] sm:$0xff] }
 0x2d8   : > { %v3559_v39 = vpop.f32.mrf.mxu0 }
 0x2d9   : > { %v3560_v59 = vadd.f32 %v7697_v7, %v3559_v39 }
 0x2db   : > { %v3612_v20 = vmul.f32 0.01, %v3560_v59  ;;  %vm3596_vm10 = vcmp.gt.f32.partialorder %v3560_v59, 0.0 }
 0x2dd   : > { %v3628_v16 = vsel %vm3596_vm10, %v3560_v59, %v3612_v20  ;;  %v3778_v20 = vld [vmem:[%s7720_s23 + $0x58] sm:$0xff] }
 0x2e0   : > { %v3561_v18 = vpop.f32.mrf.mxu0 }
 0x2e1   : > { %v3562_v4 = vadd.f32 %v7697_v7, %v3561_v18 }
 0x2e3   : > { %v3613_v53 = vmul.f32 0.01, %v3562_v4  ;;  %vm3597_vm11 = vcmp.gt.f32.partialorder %v3562_v4, 0.0  ;;  %v3584_v11 = vpop.f32.mrf.mxu2 }
 0x2e4   : > { %v3585_v51 = vadd.f32 %v7697_v7, %v3584_v11 }
 0x2e5   : > { %v3629_v6 = vsel %vm3597_vm11, %v3562_v4, %v3613_v53 }
 0x2e6   : > { %v3643_v40 = vpack.c.bf16 %v3629_v6, %v3628_v16  ;;  %v3622_v21 = vmul.f32 0.01, %v3585_v51  ;;  %vm3606_vm12 = vcmp.gt.f32.partialorder %v3585_v51, 0.0  ;;  %v3769_v16 = vld [vmem:[%s7720_s23 + $0x10] sm:$0xff] }
 0x2e8   : > { %v3564_v2 = vpop.f32.mrf.mxu0  ;;  %3731 = vmatmul.bf16.gmra.mxu1 %v3643_v40  ;;  %v3638_v52 = vsel %vm3606_vm12, %v3585_v51, %v3622_v21  ;;  %v3770_v51 = vld [vmem:[%s7720_s23 + $0x18] sm:$0xff] }
 0x2e9   : > { %v3565_v26 = vadd.f32 %v7697_v7, %v3564_v2 }
 0x2eb   : > { %v3586_v27 = vpop.f32.mrf.mxu2  ;;  %v3614_v9 = vmul.f32 0.01, %v3565_v26  ;;  %vm3598_vm14 = vcmp.gt.f32.partialorder %v3565_v26, 0.0 }
 0x2ec   : > { %v3587_v17 = vadd.f32 %v7697_v7, %v3586_v27 }
 0x2ed   : > { %v3630_v38 = vsel %vm3598_vm14, %v3565_v26, %v3614_v9 }
 0x2ee   : > { %v3623_v1 = vmul.f32 0.01, %v3587_v17  ;;  %vm3607_vm13 = vcmp.gt.f32.partialorder %v3587_v17, 0.0 }
 0x2f0   : > { %v3566_v34 = vpop.f32.mrf.mxu0  ;;  %v3639_v36 = vsel %vm3607_vm13, %v3587_v17, %v3623_v1  ;;  %v3771_v17 = vld [vmem:[%s7720_s23 + $0x20] sm:$0xff] }
 0x2f1   : > { %v3567_v47 = vadd.f32 %v7697_v7, %v3566_v34  ;;  %v3648_v31 = vpack.c.bf16 %v3639_v36, %v3638_v52 }
 0x2f3   : > { %v3615_v13 = vmul.f32 0.01, %v3567_v47  ;;  %vm3599_vm15 = vcmp.gt.f32.partialorder %v3567_v47, 0.0  ;;  %3756 = vmatmul.bf16.gmra.mxu3 %v3648_v31  ;;  %v3772_v31 = vld [vmem:[%s7720_s23 + $0x28] sm:$0xff] }
 0x2f5   : > { %v3631_v41 = vsel %vm3599_vm15, %v3567_v47, %v3615_v13  ;;  %v3779_v47 = vld [vmem:[%s7720_s23 + $0x60] sm:$0xff] }
 0x2f6   : > { %v3644_v35 = vpack.c.bf16 %v3631_v41, %v3630_v38 }
 0x2f8   : > { %3736 = vmatmul.bf16.gmra.mxu1 %v3644_v35  ;;  %v3780_v35 = vld [vmem:[%s7720_s23 + $0x68] sm:$0xff] }
 0x2fa   : > { %v3589_v45 = vpop.f32.mrf.mxu2 }
 0x2fb   : > { %v3590_v8 = vadd.f32 %v7697_v7, %v3589_v45 }
 0x2fd   : > { %v3624_v10 = vmul.f32 0.01, %v3590_v8  ;;  %vm3608_vm0 = vcmp.gt.f32.partialorder %v3590_v8, 0.0 }
 0x2ff   : > { %v3640_v46 = vsel %vm3608_vm0, %v3590_v8, %v3624_v10 }
 0x302   : > { %v3591_v22 = vpop.f32.mrf.mxu2 }
 0x303   : > { %v3592_v14 = vadd.f32 %v7697_v7, %v3591_v22 }
 0x305   : > { %v3625_v58 = vmul.f32 0.01, %v3592_v14  ;;  %vm3609_vm1 = vcmp.gt.f32.partialorder %v3592_v14, 0.0 }
 0x307   : > { %v3641_v62 = vsel %vm3609_vm1, %v3592_v14, %v3625_v58  ;;  %v3781_v58 = vld [vmem:[%s7720_s23 + $0x70] sm:$0xff] }
 0x308   : > { %v3649_v54 = vpack.c.bf16 %v3641_v62, %v3640_v46 }
 0x30a   : > { %3761 = vmatmul.bf16.gmra.mxu3 %v3649_v54 }
 0x326   : > { %v3569_v32 = vpop.f32.mrf.mxu0 }
 0x327   : > { %v3570_v28 = vadd.f32 %v7697_v7, %v3569_v32  ;;  %v3782_v32 = vld [vmem:[%s7720_s23 + $0x78] sm:$0xff] }
 0x329   : > { %v3616_v48 = vmul.f32 0.01, %v3570_v28  ;;  %vm3600_vm2 = vcmp.gt.f32.partialorder %v3570_v28, 0.0 }
 0x32b   : > { %v3632_v30 = vsel %vm3600_vm2, %v3570_v28, %v3616_v48  ;;  %v3773_v48 = vld [vmem:[%s7720_s23 + $0x30] sm:$0xff] }
 0x32e   : > { %v3571_v23 = vpop.f32.mrf.mxu0 }
 0x32f   : > { %v3572_v42 = vadd.f32 %v7697_v7, %v3571_v23  ;;  %v7725_v7 = vld [vmem:[%s7804_s9] ss:$0 sm:$0xff] }
 0x331   : > { %v3617_v55 = vmul.f32 0.01, %v3572_v42  ;;  %vm3601_vm3 = vcmp.gt.f32.partialorder %v3572_v42, 0.0 }
 0x332   : > { %v3747_v19 = vpop.f32.mrf.mxu3 }
 0x333   : > { %v3633_v24 = vsel %vm3601_vm3, %v3572_v42, %v3617_v55  ;;  %v3748_v25 = vadd.f32 %v7725_v7, %v3747_v19 }
 0x334   : > { %v3645_v60 = vpack.c.bf16 %v3633_v24, %v3632_v30  ;;  %v3774_v24 = vld [vmem:[%s7720_s23 + $0x38] sm:$0xff] }
 0x335   : > { %v3791_v56 = vadd.f32 %v3775_v43, %v3748_v25 }
 0x336   : > { %3741 = vmatmul.bf16.gmra.mxu1 %v3645_v60 }
 0x337   : > { %3807 = vst [vmem:[%s7732_s27 + $0x40] sm:$0xff] %v3791_v56 }
 0x339   : > { %v3727_v44 = vpop.f32.mrf.mxu1 }
 0x33a   : > { %v3749_v50 = vpop.f32.mrf.mxu3  ;;  %v3728_v5 = vadd.f32 %v7725_v7, %v3727_v44 }
 0x33b   : > { %v3750_v12 = vadd.f32 %v7725_v7, %v3749_v50 }
 0x33c   : > { %v3783_v3 = vadd.f32 %v3767_v61, %v3728_v5 }
 0x33d   : > { %v3792_v33 = vadd.f32 %v3776_v15, %v3750_v12 }
 0x33e   : > { %3799 = vst [vmem:[%s7732_s27] sm:$0xff] %v3783_v3 }
 0x33f   : > { %3808 = vst [vmem:[%s7732_s27 + $0x48] sm:$0xff] %v3792_v33 }
 0x341   : > { %v3729_v63 = vpop.f32.mrf.mxu1 }
 0x342   : > { %v3730_v29 = vadd.f32 %v7725_v7, %v3729_v63 }
 0x344   : > { %v3784_v49 = vadd.f32 %v3768_v37, %v3730_v29  ;;  %v3752_v57 = vpop.f32.mrf.mxu3 }
 0x345   : > { %v3753_v39 = vadd.f32 %v7725_v7, %v3752_v57 }
 0x346   : > { %3800 = vst [vmem:[%s7732_s27 + $0x8] sm:$0xff] %v3784_v49 }
 0x347   : > { %v3793_v59 = vadd.f32 %v3777_v0, %v3753_v39 }
 0x349   : > { %3809 = vst [vmem:[%s7732_s27 + $0x50] sm:$0xff] %v3793_v59 }
 0x34c   : > { %v3754_v18 = vpop.f32.mrf.mxu3 }
 0x34d   : > { %v3755_v4 = vadd.f32 %v7725_v7, %v3754_v18 }
 0x34f   : > { %v3794_v53 = vadd.f32 %v3778_v20, %v3755_v4 }
 0x351   : > { %3810 = vst [vmem:[%s7732_s27 + $0x58] sm:$0xff] %v3794_v53 }
 0x365   : > { %v3732_v11 = vpop.f32.mrf.mxu1 }
 0x366   : > { %v3733_v6 = vadd.f32 %v7725_v7, %v3732_v11 }
 0x368   : > { %v3785_v40 = vadd.f32 %v3769_v16, %v3733_v6 }
 0x36a   : > { %3801 = vst [vmem:[%s7732_s27 + $0x10] sm:$0xff] %v3785_v40 }
 0x36d   : > { %v3734_v2 = vpop.f32.mrf.mxu1 }
 0x36e   : > { %v3735_v26 = vadd.f32 %v7725_v7, %v3734_v2 }
 0x370   : > { %v3786_v27 = vadd.f32 %v3770_v51, %v3735_v26 }
 0x372   : > { %3802 = vst [vmem:[%s7732_s27 + $0x18] sm:$0xff] %v3786_v27 }
 0x375   : > { %v3737_v21 = vpop.f32.mrf.mxu1 }
 0x376   : > { %v3738_v1 = vadd.f32 %v7725_v7, %v3737_v21  ;;  %v3757_v9 = vpop.f32.mrf.mxu3 }
 0x377   : > { %v3758_v52 = vadd.f32 %v7725_v7, %v3757_v9 }
 0x378   : > { %v3787_v34 = vadd.f32 %v3771_v17, %v3738_v1 }
 0x379   : > { %v3795_v36 = vadd.f32 %v3779_v47, %v3758_v52 }
 0x37a   : > { %3803 = vst [vmem:[%s7732_s27 + $0x20] sm:$0xff] %v3787_v34 }
 0x37b   : > { %3811 = vst [vmem:[%s7732_s27 + $0x60] sm:$0xff] %v3795_v36 }
 0x37d   : > { %v3739_v13 = vpop.f32.mrf.mxu1 }
 0x37e   : > { %v3740_v45 = vadd.f32 %v7725_v7, %v3739_v13  ;;  %v3759_v41 = vpop.f32.mrf.mxu3 }
 0x37f   : > { %v3760_v8 = vadd.f32 %v7725_v7, %v3759_v41 }
 0x380   : > { %v3788_v38 = vadd.f32 %v3772_v31, %v3740_v45 }
 0x381   : > { %v3796_v22 = vadd.f32 %v3780_v35, %v3760_v8 }
 0x382   : > { %3804 = vst [vmem:[%s7732_s27 + $0x28] sm:$0xff] %v3788_v38 }
 0x383   : > { %3812 = vst [vmem:[%s7732_s27 + $0x68] sm:$0xff] %v3796_v22 }
 0x38d   : > { %v3762_v10 = vpop.f32.mrf.mxu3 }
 0x38e   : > { %v3763_v14 = vadd.f32 %v7725_v7, %v3762_v10 }
 0x390   : > { %v3797_v46 = vadd.f32 %v3781_v58, %v3763_v14 }
 0x392   : > { %3813 = vst [vmem:[%s7732_s27 + $0x70] sm:$0xff] %v3797_v46 }
 0x395   : > { %v3764_v62 = vpop.f32.mrf.mxu3 }
 0x396   : > { %v3765_v54 = vadd.f32 %v7725_v7, %v3764_v62 }
 0x398   : > { %v3798_v28 = vadd.f32 %v3782_v32, %v3765_v54 }
 0x39a   : > { %3814 = vst [vmem:[%s7732_s27 + $0x78] sm:$0xff] %v3798_v28 }
 0x3b3   : > { %v3742_v23 = vpop.f32.mrf.mxu1 }
 0x3b4   : > { %v3743_v42 = vadd.f32 %v7725_v7, %v3742_v23 }
 0x3b6   : > { %v3789_v55 = vadd.f32 %v3773_v48, %v3743_v42 }
 0x3b8   : > { %3805 = vst [vmem:[%s7732_s27 + $0x30] sm:$0xff] %v3789_v55 }
 0x3bb   : > { %v3744_v30 = vpop.f32.mrf.mxu1 }
 0x3bc   : > { %v3745_v60 = vadd.f32 %v7725_v7, %v3744_v30 }
 0x3be   : > { %v3790_v19 = vadd.f32 %v3774_v24, %v3745_v60 }
 0x3c0   : > { %3806 = vst [vmem:[%s7732_s27 + $0x38] sm:$0xff] %v3790_v19 }
 0x3c1 PF: > { %s20_s17 = sadd.s32 1, %s4205_s17   ;;  %s8681_s13 = smov %s4197_s15 }
 0x3c2   : > { %p17_p7 = scmp.ge.s32.totalorder %s20_s17, 6   ;;  %s8682_s14 = smov %s4201_s16 }
 0x3c3   : > { %s8683_s15 = smov %s8686_s18  ;;  %s8684_s16 = smov %s8690_s19 }
 0x3c4   :  { %19 = sbr.rel (!%p17_p7) target bundleno = 3 (0x3), region = 94 }

</bundles_post_ra>
